<compile_context>
chip_gen: v7x
topology: tpu7x:2x2x1
jax: 0.10.0
libtpu: 0.0.40
codegen_flags: <defaults>
</compile_context>

<pallas_src>
import functools

import numpy as np
import jax
import jax.numpy as jnp
from jax.experimental import pallas as pl

C1, C2, NUM_CLASSES = 8, 16, 4          # num_ftrs = C2 = 16
DROPOUT_RATE = 0.5


# --------------------------------------------------------------------------------------
# In-kernel helpers (traced inside the fused Pallas kernel)
# --------------------------------------------------------------------------------------

def _shift_cols(a, s):
    """result[:, p] = a[:, p + s], zero-filled where p + s falls outside [0, m)."""
    if s == 0:
        return a
    c, m = a.shape
    z = jnp.zeros((c, abs(s)), jnp.float32)
    if s > 0:
        return jnp.concatenate([a[:, s:], z], axis=1)
    return jnp.concatenate([z, a[:, : m + s]], axis=1)


def _conv3x3(a, w_mat, bias, masks, h, w, *, relu, residual=None, sel=None):
    """3x3 pad-1 conv on a lane-dense (cin, n*h*w) activation.

    The nine shifted+masked taps are stacked along sublanes into a (9*cin, m) matrix
    and contracted with w_mat (cout, 9*cin) in a single MXU matmul.

    w_mat: BN scale folded in, tap-major / cin-minor column order (matches the stack).
    masks: (9, m) precomputed boundary masks, one row per tap.
    sel:   optional even-position column-selection matrix (stride 2), applied pre-bias.
    """
    taps = []
    k = 0
    for di in range(3):
        for dj in range(3):
            s = (di - 1) * w + (dj - 1)
            taps.append(_shift_cols(a, s) * masks[k:k + 1, :])
            k += 1
    tap_stack = jnp.concatenate(taps, axis=0)                     # (9*cin, m)
    y = jnp.dot(w_mat, tap_stack, preferred_element_type=jnp.float32)
    if sel is not None:
        y = jnp.dot(y, sel, preferred_element_type=jnp.float32)
    y = y + bias
    if residual is not None:
        y = y + residual
    if relu:
        y = jnp.maximum(y, 0.0)
    return y


# --------------------------------------------------------------------------------------
# The fused Pallas kernel: features -> GAP -> flatten -> dropout -> Linear
# --------------------------------------------------------------------------------------

def _resnet_fused_kernel(x_ref,
                         w_stem_ref, b_stem_ref,
                         w_b1c1_ref, b_b1c1_ref, w_b1c2_ref, b_b1c2_ref,
                         w_b2c1_ref, b_b2c1_ref, w_b2c2_ref, b_b2c2_ref,
                         w_ds_ref, b_ds_ref,
                         w_fc_ref, b_fc_ref, keep_ref,
                         mask_full_ref, mask_half_ref, sel_ref, pool_ref,
                         out_ref, *, n, h, w):
    masks_full = mask_full_ref[...]                               # (9, n*h*w)
    masks_half = mask_half_ref[...]                               # (9, n*(h/2)*(w/2))
    sel = sel_ref[...]                                            # (n*h*w, n*(h/2)*(w/2))

    x = x_ref[...]                                                # (3, n*h*w)

    # ---- stem: conv3x3 + folded-BN + ReLU ----
    a = _conv3x3(x, w_stem_ref[...], b_stem_ref[...], masks_full, h, w, relu=True)

    # ---- BasicBlock 1 (identity shortcut) ----
    t = _conv3x3(a, w_b1c1_ref[...], b_b1c1_ref[...], masks_full, h, w, relu=True)
    a = _conv3x3(t, w_b1c2_ref[...], b_b1c2_ref[...], masks_full, h, w,
                 relu=True, residual=a)

    # ---- BasicBlock 2 (stride 2, 1x1 downsample shortcut; shortcut never leaves VMEM) ----
    # pool-first ordering: select even positions on the C1-channel tensor, then 1x1 conv.
    a_half = jnp.dot(a, sel, preferred_element_type=jnp.float32)  # (C1, n*(h/2)*(w/2))
    ds = jnp.dot(w_ds_ref[...], a_half,
                 preferred_element_type=jnp.float32) + b_ds_ref[...]
    t = _conv3x3(a, w_b2c1_ref[...], b_b2c1_ref[...], masks_full, h, w,
                 relu=True, sel=sel)
    a = _conv3x3(t, w_b2c2_ref[...], b_b2c2_ref[...], masks_half, h // 2, w // 2,
                 relu=True, residual=ds)

    # ---- AdaptiveAvgPool2d(1) + flatten -> (C2, n) ----
    feat = jnp.dot(a, pool_ref[...], preferred_element_type=jnp.float32)   # (C2, n)

    # ---- classifier: Dropout (pre-drawn keep mask) + Linear(num_ftrs, 4) ----
    feat = feat * keep_ref[...]
    out_ref[...] = (jnp.dot(w_fc_ref[...], feat, preferred_element_type=jnp.float32)
                    + b_fc_ref[...])                              # (4, n)


# --------------------------------------------------------------------------------------
# Host-side constants: tap masks, stride-2 selection matrix, GAP pooling matrix
# --------------------------------------------------------------------------------------

def make_constants(n, h, w):
    """Built ONCE with numpy; passed to the kernel as plain f32 inputs."""
    def tap_masks(hh, ww):
        m = n * hh * ww
        p = np.arange(m)
        r = p % (hh * ww)
        i, j = r // ww, r % ww
        rows = []
        for di in range(3):
            for dj in range(3):
                ii, jj = i + (di - 1), j + (dj - 1)
                ok = (ii >= 0) & (ii < hh) & (jj >= 0) & (jj < ww)
                rows.append(ok.astype(np.float32))
        return np.stack(rows, axis=0)                             # (9, m)

    ho, wo = h // 2, w // 2
    mf, md = n * h * w, n * ho * wo

    sel = np.zeros((mf, md), np.float32)
    col = np.arange(md)
    img = col // (ho * wo)
    rr = col % (ho * wo)
    tgt = img * (h * w) + (rr // wo) * 2 * w + (rr % wo) * 2
    sel[tgt, col] = 1.0                                           # even (i, j) selection

    pool = np.zeros((md, n), np.float32)
    rows = np.arange(md)
    pool[rows, rows // (ho * wo)] = 1.0 / (ho * wo)               # per-image spatial mean

    return dict(masks_full=jnp.asarray(tap_masks(h, w)),
                masks_half=jnp.asarray(tap_masks(ho, wo)),
                sel=jnp.asarray(sel),
                pool=jnp.asarray(pool))


# --------------------------------------------------------------------------------------
# Parameters: init (synthetic "original_model") + one-time prep (BN folding, re-layout)
# --------------------------------------------------------------------------------------

def init_params(key):
    ks = jax.random.split(key, 14)

    def conv_w(k, shape):
        fan_in = shape[1] * shape[2] * shape[3]
        return jax.random.normal(k, shape, jnp.float32) * (2.0 / fan_in) ** 0.5

    def bn(k, c):
        k1, k2 = jax.random.split(k)
        scale = 1.0 + 0.1 * jax.random.normal(k1, (c,), jnp.float32)  # gamma / sqrt(var+eps)
        bias = 0.1 * jax.random.normal(k2, (c,), jnp.float32)         # beta - mean*scale
        return scale, bias

    p = {}
    p["conv1_w"] = conv_w(ks[0], (C1, 3, 3, 3));     p["bn1_s"], p["bn1_b"] = bn(ks[1], C1)
    p["b1_conv1_w"] = conv_w(ks[2], (C1, C1, 3, 3)); p["b1_bn1_s"], p["b1_bn1_b"] = bn(ks[3], C1)
    p["b1_conv2_w"] = conv_w(ks[4], (C1, C1, 3, 3)); p["b1_bn2_s"], p["b1_bn2_b"] = bn(ks[5], C1)
    p["b2_conv1_w"] = conv_w(ks[6], (C2, C1, 3, 3)); p["b2_bn1_s"], p["b2_bn1_b"] = bn(ks[7], C2)
    p["b2_conv2_w"] = conv_w(ks[8], (C2, C2, 3, 3)); p["b2_bn2_s"], p["b2_bn2_b"] = bn(ks[9], C2)
    p["b2_down_w"] = conv_w(ks[10], (C2, C1, 1, 1)); p["b2_bnd_s"], p["b2_bnd_b"] = bn(ks[11], C2)
    p["fc_w"] = jax.random.normal(ks[12], (NUM_CLASSES, C2), jnp.float32) * (1.0 / C2) ** 0.5
    p["fc_b"] = 0.01 * jax.random.normal(ks[13], (NUM_CLASSES,), jnp.float32)
    return p


def _fold(w_oihw, scale):
    """(O,I,kh,kw) conv weight * BN scale -> (O, kh*kw*I), tap-major / cin-minor columns."""
    o, i, kh, kw = w_oihw.shape
    wm = jnp.transpose(w_oihw, (0, 2, 3, 1)).reshape(o, kh * kw * i)
    return wm * scale[:, None]


def prepare_params(p):
    """One-time prep: fold BN scales into weights, reshape everything to kernel layout."""
    return dict(
        w_stem=_fold(p["conv1_w"], p["bn1_s"]),       b_stem=p["bn1_b"][:, None],
        w_b1c1=_fold(p["b1_conv1_w"], p["b1_bn1_s"]), b_b1c1=p["b1_bn1_b"][:, None],
        w_b1c2=_fold(p["b1_conv2_w"], p["b1_bn2_s"]), b_b1c2=p["b1_bn2_b"][:, None],
        w_b2c1=_fold(p["b2_conv1_w"], p["b2_bn1_s"]), b_b2c1=p["b2_bn1_b"][:, None],
        w_b2c2=_fold(p["b2_conv2_w"], p["b2_bn2_s"]), b_b2c2=p["b2_bn2_b"][:, None],
        w_ds=p["b2_down_w"][:, :, 0, 0] * p["b2_bnd_s"][:, None], b_ds=p["b2_bnd_b"][:, None],
        w_fc=p["fc_w"], b_fc=p["fc_b"][:, None],
    )


def make_dropout_mask(key, n, *, rate=DROPOUT_RATE, training=False):
    """(C2, n) keep-mask in {0, 1/(1-rate)} (train) or all-ones (eval)."""
    if training and rate > 0.0:
        keep = jax.random.bernoulli(key, 1.0 - rate, (C2, n)).astype(jnp.float32)
        return keep / (1.0 - rate)
    return jnp.ones((C2, n), jnp.float32)


# --------------------------------------------------------------------------------------
# Forward: one pallas_call, no grid, everything resident in VMEM
# --------------------------------------------------------------------------------------

@jax.jit
def resnet_with_dropout_forward(prep, consts, x_nchw, keep_mask):
    n, cin, h, w = x_nchw.shape
    # NCHW -> (C, N*H*W) lane-dense layout (single tiny XLA transpose outside the kernel)
    x_cm = jnp.transpose(x_nchw.astype(jnp.float32), (1, 0, 2, 3)).reshape(cin, n * h * w)

    kernel = functools.partial(_resnet_fused_kernel, n=n, h=h, w=w)
    logits_kn = pl.pallas_call(
        kernel,
        out_shape=jax.ShapeDtypeStruct((NUM_CLASSES, n), jnp.float32),
    )(x_cm,
      prep["w_stem"], prep["b_stem"],
      prep["w_b1c1"], prep["b_b1c1"], prep["w_b1c2"], prep["b_b1c2"],
      prep["w_b2c1"], prep["b_b2c1"], prep["w_b2c2"], prep["b_b2c2"],
      prep["w_ds"], prep["b_ds"],
      prep["w_fc"], prep["b_fc"], keep_mask,
      consts["masks_full"], consts["masks_half"], consts["sel"], consts["pool"])
    return logits_kn.T                                            # (N, 4), PyTorch layout


# --------------------------------------------------------------------------------------
# Pure-JAX reference (same module semantics) for a correctness check
# --------------------------------------------------------------------------------------

def _reference_forward(p, x_nchw, keep_mask):
    def conv_bn(x, wgt, s, b, stride, relu, residual=None):
        kh, kw = wgt.shape[2], wgt.shape[3]
        y = jax.lax.conv_general_dilated(
            x, wgt, (stride, stride), [(kh // 2, kh // 2), (kw // 2, kw // 2)],
            dimension_numbers=("NCHW", "OIHW", "NCHW"))
        y = y * s[None, :, None, None] + b[None, :, None, None]
        if residual is not None:
            y = y + residual
        return jnp.maximum(y, 0.0) if relu else y

    x = x_nchw.astype(jnp.float32)
    x = conv_bn(x, p["conv1_w"], p["bn1_s"], p["bn1_b"], 1, True)
    t = conv_bn(x, p["b1_conv1_w"], p["b1_bn1_s"], p["b1_bn1_b"], 1, True)
    x = conv_bn(t, p["b1_conv2_w"], p["b1_bn2_s"], p["b1_bn2_b"], 1, True, residual=x)
    ds = conv_bn(x, p["b2_down_w"], p["b2_bnd_s"], p["b2_bnd_b"], 2, False)
    t = conv_bn(x, p["b2_conv1_w"], p["b2_bn1_s"], p["b2_bn1_b"], 2, True)
    x = conv_bn(t, p["b2_conv2_w"], p["b2_bn2_s"], p["b2_bn2_b"], 1, True, residual=ds)
    feat = jnp.mean(x, axis=(2, 3)) * keep_mask.T                 # GAP + flatten + dropout
    return feat @ p["fc_w"].T + p["fc_b"][None, :]


# --------------------------------------------------------------------------------------
# Main
# --------------------------------------------------------------------------------------

if __name__ == "__main__":
    key = jax.random.PRNGKey(0)
    pkey, xkey, dkey = jax.random.split(key, 3)
    params = init_params(pkey)
    prep = prepare_params(params)          # BN folding / re-layout done ONCE, not per call

    # PyTorch-style NCHW input: batch=2, channels=3, 16x16 spatial.
    x = jax.random.normal(xkey, (2, 3, 16, 16), jnp.float32)
    consts = make_constants(n=x.shape[0], h=x.shape[2], w=x.shape[3])   # host-side, once

    # eval mode (Dropout is identity, matching nn.Dropout().eval())
    keep_eval = make_dropout_mask(dkey, x.shape[0], training=False)
    out_eval = resnet_with_dropout_forward(prep, consts, x, keep_eval)

    # train mode (dropout mask sampled with jax.random, applied inside the fused kernel)
    keep_train = make_dropout_mask(dkey, x.shape[0], training=True)
    out_train = resnet_with_dropout_forward(prep, consts, x, keep_train)

    jax.block_until_ready((out_eval, out_train))

    # correctness check against a pure-JAX reference of the same module
    ref_eval = _reference_forward(params, x, keep_eval)
    ref_train = _reference_forward(params, x, keep_train)
    assert out_eval.shape == (2, NUM_CLASSES) and out_train.shape == (2, NUM_CLASSES)
    assert bool(jnp.all(jnp.isfinite(out_eval))) and bool(jnp.all(jnp.isfinite(out_train)))
    assert bool(jnp.allclose(out_eval, ref_eval, rtol=5e-2, atol=5e-2))
    assert bool(jnp.allclose(out_train, ref_train, rtol=5e-2, atol=5e-2))
    print("KERNEL_OK")
</pallas_src>

<mosaic_0001>
module attributes {stable_mosaic.version = 11 : i64} {
  func.func @_resnet_fused_kernel(%arg0: memref<3x512xf32, #tpu.memory_space<vmem>>, %arg1: memref<8x27xf32, #tpu.memory_space<vmem>>, %arg2: memref<8x1xf32, #tpu.memory_space<vmem>>, %arg3: memref<8x72xf32, #tpu.memory_space<vmem>>, %arg4: memref<8x1xf32, #tpu.memory_space<vmem>>, %arg5: memref<8x72xf32, #tpu.memory_space<vmem>>, %arg6: memref<8x1xf32, #tpu.memory_space<vmem>>, %arg7: memref<16x72xf32, #tpu.memory_space<vmem>>, %arg8: memref<16x1xf32, #tpu.memory_space<vmem>>, %arg9: memref<16x144xf32, #tpu.memory_space<vmem>>, %arg10: memref<16x1xf32, #tpu.memory_space<vmem>>, %arg11: memref<16x8xf32, #tpu.memory_space<vmem>>, %arg12: memref<16x1xf32, #tpu.memory_space<vmem>>, %arg13: memref<4x16xf32, #tpu.memory_space<vmem>>, %arg14: memref<4x1xf32, #tpu.memory_space<vmem>>, %arg15: memref<16x2xf32, #tpu.memory_space<vmem>>, %arg16: memref<9x512xf32, #tpu.memory_space<vmem>>, %arg17: memref<9x128xf32, #tpu.memory_space<vmem>>, %arg18: memref<512x128xf32, #tpu.memory_space<vmem>>, %arg19: memref<128x2xf32, #tpu.memory_space<vmem>>, %arg20: memref<4x2xf32, #tpu.memory_space<vmem>>) attributes {dimension_semantics = [], scalar_prefetch = 0 : i64, scratch_operands = 0 : i64, tpu.core_type = #tpu.core_type<tc>} {
    %c0 = arith.constant 0 : index
    %c0_0 = arith.constant 0 : index
    %0 = vector.load %arg16[%c0, %c0_0] : memref<9x512xf32, #tpu.memory_space<vmem>>, vector<9x512xf32>
    %c0_1 = arith.constant 0 : index
    %c0_2 = arith.constant 0 : index
    %1 = vector.load %arg17[%c0_1, %c0_2] : memref<9x128xf32, #tpu.memory_space<vmem>>, vector<9x128xf32>
    %c0_3 = arith.constant 0 : index
    %c0_4 = arith.constant 0 : index
    %2 = vector.load %arg18[%c0_3, %c0_4] : memref<512x128xf32, #tpu.memory_space<vmem>>, vector<512x128xf32>
    %c0_5 = arith.constant 0 : index
    %c0_6 = arith.constant 0 : index
    %3 = vector.load %arg0[%c0_5, %c0_6] : memref<3x512xf32, #tpu.memory_space<vmem>>, vector<3x512xf32>
    %c0_7 = arith.constant 0 : index
    %c0_8 = arith.constant 0 : index
    %4 = vector.load %arg1[%c0_7, %c0_8] : memref<8x27xf32, #tpu.memory_space<vmem>>, vector<8x27xf32>
    %c0_9 = arith.constant 0 : index
    %c0_10 = arith.constant 0 : index
    %5 = vector.load %arg2[%c0_9, %c0_10] : memref<8x1xf32, #tpu.memory_space<vmem>>, vector<8x1xf32>
    %cst = arith.constant 0.000000e+00 : f32
    %6 = vector.broadcast %cst : f32 to vector<3x17xf32>
    %7 = vector.extract_strided_slice %3 {offsets = [0, 0], sizes = [3, 495], strides = [1, 1]} : vector<3x512xf32> to vector<3x495xf32>
    %8 = tpu.concatenate %6, %7 in 1 : vector<3x17xf32>, vector<3x495xf32> -> vector<3x512xf32>
    %9 = vector.extract_strided_slice %0 {offsets = [0, 0], sizes = [1, 512], strides = [1, 1]} : vector<9x512xf32> to vector<1x512xf32>
    %10 = vector.broadcast %9 : vector<1x512xf32> to vector<3x512xf32>
    %11 = arith.mulf %8, %10 : vector<3x512xf32>
    %cst_11 = arith.constant 0.000000e+00 : f32
    %12 = vector.broadcast %cst_11 : f32 to vector<3x16xf32>
    %13 = vector.extract_strided_slice %3 {offsets = [0, 0], sizes = [3, 496], strides = [1, 1]} : vector<3x512xf32> to vector<3x496xf32>
    %14 = tpu.concatenate %12, %13 in 1 : vector<3x16xf32>, vector<3x496xf32> -> vector<3x512xf32>
    %15 = vector.extract_strided_slice %0 {offsets = [1, 0], sizes = [1, 512], strides = [1, 1]} : vector<9x512xf32> to vector<1x512xf32>
    %16 = vector.broadcast %15 : vector<1x512xf32> to vector<3x512xf32>
    %17 = arith.mulf %14, %16 : vector<3x512xf32>
    %cst_12 = arith.constant 0.000000e+00 : f32
    %18 = vector.broadcast %cst_12 : f32 to vector<3x15xf32>
    %19 = vector.extract_strided_slice %3 {offsets = [0, 0], sizes = [3, 497], strides = [1, 1]} : vector<3x512xf32> to vector<3x497xf32>
    %20 = tpu.concatenate %18, %19 in 1 : vector<3x15xf32>, vector<3x497xf32> -> vector<3x512xf32>
    %21 = vector.extract_strided_slice %0 {offsets = [2, 0], sizes = [1, 512], strides = [1, 1]} : vector<9x512xf32> to vector<1x512xf32>
    %22 = vector.broadcast %21 : vector<1x512xf32> to vector<3x512xf32>
    %23 = arith.mulf %20, %22 : vector<3x512xf32>
    %cst_13 = arith.constant 0.000000e+00 : f32
    %24 = vector.broadcast %cst_13 : f32 to vector<3x1xf32>
    %25 = vector.extract_strided_slice %3 {offsets = [0, 0], sizes = [3, 511], strides = [1, 1]} : vector<3x512xf32> to vector<3x511xf32>
    %26 = tpu.concatenate %24, %25 in 1 : vector<3x1xf32>, vector<3x511xf32> -> vector<3x512xf32>
    %27 = vector.extract_strided_slice %0 {offsets = [3, 0], sizes = [1, 512], strides = [1, 1]} : vector<9x512xf32> to vector<1x512xf32>
    %28 = vector.broadcast %27 : vector<1x512xf32> to vector<3x512xf32>
    %29 = arith.mulf %26, %28 : vector<3x512xf32>
    %30 = vector.extract_strided_slice %0 {offsets = [4, 0], sizes = [1, 512], strides = [1, 1]} : vector<9x512xf32> to vector<1x512xf32>
    %31 = vector.broadcast %30 : vector<1x512xf32> to vector<3x512xf32>
    %32 = arith.mulf %3, %31 : vector<3x512xf32>
    %cst_14 = arith.constant 0.000000e+00 : f32
    %33 = vector.broadcast %cst_14 : f32 to vector<3x1xf32>
    %34 = vector.extract_strided_slice %3 {offsets = [0, 1], sizes = [3, 511], strides = [1, 1]} : vector<3x512xf32> to vector<3x511xf32>
    %35 = tpu.concatenate %34, %33 in 1 : vector<3x511xf32>, vector<3x1xf32> -> vector<3x512xf32>
    %36 = vector.extract_strided_slice %0 {offsets = [5, 0], sizes = [1, 512], strides = [1, 1]} : vector<9x512xf32> to vector<1x512xf32>
    %37 = vector.broadcast %36 : vector<1x512xf32> to vector<3x512xf32>
    %38 = arith.mulf %35, %37 : vector<3x512xf32>
    %cst_15 = arith.constant 0.000000e+00 : f32
    %39 = vector.broadcast %cst_15 : f32 to vector<3x15xf32>
    %40 = vector.extract_strided_slice %3 {offsets = [0, 15], sizes = [3, 497], strides = [1, 1]} : vector<3x512xf32> to vector<3x497xf32>
    %41 = tpu.concatenate %40, %39 in 1 : vector<3x497xf32>, vector<3x15xf32> -> vector<3x512xf32>
    %42 = vector.extract_strided_slice %0 {offsets = [6, 0], sizes = [1, 512], strides = [1, 1]} : vector<9x512xf32> to vector<1x512xf32>
    %43 = vector.broadcast %42 : vector<1x512xf32> to vector<3x512xf32>
    %44 = arith.mulf %41, %43 : vector<3x512xf32>
    %cst_16 = arith.constant 0.000000e+00 : f32
    %45 = vector.broadcast %cst_16 : f32 to vector<3x16xf32>
    %46 = vector.extract_strided_slice %3 {offsets = [0, 16], sizes = [3, 496], strides = [1, 1]} : vector<3x512xf32> to vector<3x496xf32>
    %47 = tpu.concatenate %46, %45 in 1 : vector<3x496xf32>, vector<3x16xf32> -> vector<3x512xf32>
    %48 = vector.extract_strided_slice %0 {offsets = [7, 0], sizes = [1, 512], strides = [1, 1]} : vector<9x512xf32> to vector<1x512xf32>
    %49 = vector.broadcast %48 : vector<1x512xf32> to vector<3x512xf32>
    %50 = arith.mulf %47, %49 : vector<3x512xf32>
    %cst_17 = arith.constant 0.000000e+00 : f32
    %51 = vector.broadcast %cst_17 : f32 to vector<3x17xf32>
    %52 = vector.extract_strided_slice %3 {offsets = [0, 17], sizes = [3, 495], strides = [1, 1]} : vector<3x512xf32> to vector<3x495xf32>
    %53 = tpu.concatenate %52, %51 in 1 : vector<3x495xf32>, vector<3x17xf32> -> vector<3x512xf32>
    %54 = vector.extract_strided_slice %0 {offsets = [8, 0], sizes = [1, 512], strides = [1, 1]} : vector<9x512xf32> to vector<1x512xf32>
    %55 = vector.broadcast %54 : vector<1x512xf32> to vector<3x512xf32>
    %56 = arith.mulf %53, %55 : vector<3x512xf32>
    %57 = tpu.concatenate %11, %17, %23, %29, %32, %38, %44, %50, %56 in 0 : vector<3x512xf32>, vector<3x512xf32>, vector<3x512xf32>, vector<3x512xf32>, vector<3x512xf32>, vector<3x512xf32>, vector<3x512xf32>, vector<3x512xf32>, vector<3x512xf32> -> vector<27x512xf32>
    %cst_18 = arith.constant dense<0.000000e+00> : vector<8x512xf32>
    %58 = tpu.matmul %4, %57, %cst_18 {dimension_numbers = #tpu.dot_dimension_numbers<[1], [0], [0], [1], [0, 0, 1, 1], [], []>} : vector<8x27xf32>, vector<27x512xf32>, vector<8x512xf32> -> vector<8x512xf32>
    %59 = vector.broadcast %5 : vector<8x1xf32> to vector<8x512xf32>
    %60 = arith.addf %58, %59 : vector<8x512xf32>
    %cst_19 = arith.constant 0.000000e+00 : f32
    %61 = vector.broadcast %cst_19 : f32 to vector<8x512xf32>
    %62 = arith.maximumf %60, %61 : vector<8x512xf32>
    %c0_20 = arith.constant 0 : index
    %c0_21 = arith.constant 0 : index
    %63 = vector.load %arg3[%c0_20, %c0_21] : memref<8x72xf32, #tpu.memory_space<vmem>>, vector<8x72xf32>
    %c0_22 = arith.constant 0 : index
    %c0_23 = arith.constant 0 : index
    %64 = vector.load %arg4[%c0_22, %c0_23] : memref<8x1xf32, #tpu.memory_space<vmem>>, vector<8x1xf32>
    %cst_24 = arith.constant 0.000000e+00 : f32
    %65 = vector.broadcast %cst_24 : f32 to vector<8x17xf32>
    %66 = vector.extract_strided_slice %62 {offsets = [0, 0], sizes = [8, 495], strides = [1, 1]} : vector<8x512xf32> to vector<8x495xf32>
    %67 = tpu.concatenate %65, %66 in 1 : vector<8x17xf32>, vector<8x495xf32> -> vector<8x512xf32>
    %68 = vector.extract_strided_slice %0 {offsets = [0, 0], sizes = [1, 512], strides = [1, 1]} : vector<9x512xf32> to vector<1x512xf32>
    %69 = vector.broadcast %68 : vector<1x512xf32> to vector<8x512xf32>
    %70 = arith.mulf %67, %69 : vector<8x512xf32>
    %cst_25 = arith.constant 0.000000e+00 : f32
    %71 = vector.broadcast %cst_25 : f32 to vector<8x16xf32>
    %72 = vector.extract_strided_slice %62 {offsets = [0, 0], sizes = [8, 496], strides = [1, 1]} : vector<8x512xf32> to vector<8x496xf32>
    %73 = tpu.concatenate %71, %72 in 1 : vector<8x16xf32>, vector<8x496xf32> -> vector<8x512xf32>
    %74 = vector.extract_strided_slice %0 {offsets = [1, 0], sizes = [1, 512], strides = [1, 1]} : vector<9x512xf32> to vector<1x512xf32>
    %75 = vector.broadcast %74 : vector<1x512xf32> to vector<8x512xf32>
    %76 = arith.mulf %73, %75 : vector<8x512xf32>
    %cst_26 = arith.constant 0.000000e+00 : f32
    %77 = vector.broadcast %cst_26 : f32 to vector<8x15xf32>
    %78 = vector.extract_strided_slice %62 {offsets = [0, 0], sizes = [8, 497], strides = [1, 1]} : vector<8x512xf32> to vector<8x497xf32>
    %79 = tpu.concatenate %77, %78 in 1 : vector<8x15xf32>, vector<8x497xf32> -> vector<8x512xf32>
    %80 = vector.extract_strided_slice %0 {offsets = [2, 0], sizes = [1, 512], strides = [1, 1]} : vector<9x512xf32> to vector<1x512xf32>
    %81 = vector.broadcast %80 : vector<1x512xf32> to vector<8x512xf32>
    %82 = arith.mulf %79, %81 : vector<8x512xf32>
    %cst_27 = arith.constant 0.000000e+00 : f32
    %83 = vector.broadcast %cst_27 : f32 to vector<8x1xf32>
    %84 = vector.extract_strided_slice %62 {offsets = [0, 0], sizes = [8, 511], strides = [1, 1]} : vector<8x512xf32> to vector<8x511xf32>
    %85 = tpu.concatenate %83, %84 in 1 : vector<8x1xf32>, vector<8x511xf32> -> vector<8x512xf32>
    %86 = vector.extract_strided_slice %0 {offsets = [3, 0], sizes = [1, 512], strides = [1, 1]} : vector<9x512xf32> to vector<1x512xf32>
    %87 = vector.broadcast %86 : vector<1x512xf32> to vector<8x512xf32>
    %88 = arith.mulf %85, %87 : vector<8x512xf32>
    %89 = vector.extract_strided_slice %0 {offsets = [4, 0], sizes = [1, 512], strides = [1, 1]} : vector<9x512xf32> to vector<1x512xf32>
    %90 = vector.broadcast %89 : vector<1x512xf32> to vector<8x512xf32>
    %91 = arith.mulf %62, %90 : vector<8x512xf32>
    %cst_28 = arith.constant 0.000000e+00 : f32
    %92 = vector.broadcast %cst_28 : f32 to vector<8x1xf32>
    %93 = vector.extract_strided_slice %62 {offsets = [0, 1], sizes = [8, 511], strides = [1, 1]} : vector<8x512xf32> to vector<8x511xf32>
    %94 = tpu.concatenate %93, %92 in 1 : vector<8x511xf32>, vector<8x1xf32> -> vector<8x512xf32>
    %95 = vector.extract_strided_slice %0 {offsets = [5, 0], sizes = [1, 512], strides = [1, 1]} : vector<9x512xf32> to vector<1x512xf32>
    %96 = vector.broadcast %95 : vector<1x512xf32> to vector<8x512xf32>
    %97 = arith.mulf %94, %96 : vector<8x512xf32>
    %cst_29 = arith.constant 0.000000e+00 : f32
    %98 = vector.broadcast %cst_29 : f32 to vector<8x15xf32>
    %99 = vector.extract_strided_slice %62 {offsets = [0, 15], sizes = [8, 497], strides = [1, 1]} : vector<8x512xf32> to vector<8x497xf32>
    %100 = tpu.concatenate %99, %98 in 1 : vector<8x497xf32>, vector<8x15xf32> -> vector<8x512xf32>
    %101 = vector.extract_strided_slice %0 {offsets = [6, 0], sizes = [1, 512], strides = [1, 1]} : vector<9x512xf32> to vector<1x512xf32>
    %102 = vector.broadcast %101 : vector<1x512xf32> to vector<8x512xf32>
    %103 = arith.mulf %100, %102 : vector<8x512xf32>
    %cst_30 = arith.constant 0.000000e+00 : f32
    %104 = vector.broadcast %cst_30 : f32 to vector<8x16xf32>
    %105 = vector.extract_strided_slice %62 {offsets = [0, 16], sizes = [8, 496], strides = [1, 1]} : vector<8x512xf32> to vector<8x496xf32>
    %106 = tpu.concatenate %105, %104 in 1 : vector<8x496xf32>, vector<8x16xf32> -> vector<8x512xf32>
    %107 = vector.extract_strided_slice %0 {offsets = [7, 0], sizes = [1, 512], strides = [1, 1]} : vector<9x512xf32> to vector<1x512xf32>
    %108 = vector.broadcast %107 : vector<1x512xf32> to vector<8x512xf32>
    %109 = arith.mulf %106, %108 : vector<8x512xf32>
    %cst_31 = arith.constant 0.000000e+00 : f32
    %110 = vector.broadcast %cst_31 : f32 to vector<8x17xf32>
    %111 = vector.extract_strided_slice %62 {offsets = [0, 17], sizes = [8, 495], strides = [1, 1]} : vector<8x512xf32> to vector<8x495xf32>
    %112 = tpu.concatenate %111, %110 in 1 : vector<8x495xf32>, vector<8x17xf32> -> vector<8x512xf32>
    %113 = vector.extract_strided_slice %0 {offsets = [8, 0], sizes = [1, 512], strides = [1, 1]} : vector<9x512xf32> to vector<1x512xf32>
    %114 = vector.broadcast %113 : vector<1x512xf32> to vector<8x512xf32>
    %115 = arith.mulf %112, %114 : vector<8x512xf32>
    %116 = tpu.concatenate %70, %76, %82, %88, %91, %97, %103, %109, %115 in 0 : vector<8x512xf32>, vector<8x512xf32>, vector<8x512xf32>, vector<8x512xf32>, vector<8x512xf32>, vector<8x512xf32>, vector<8x512xf32>, vector<8x512xf32>, vector<8x512xf32> -> vector<72x512xf32>
    %cst_32 = arith.constant dense<0.000000e+00> : vector<8x512xf32>
    %117 = tpu.matmul %63, %116, %cst_32 {dimension_numbers = #tpu.dot_dimension_numbers<[1], [0], [0], [1], [0, 0, 1, 1], [], []>} : vector<8x72xf32>, vector<72x512xf32>, vector<8x512xf32> -> vector<8x512xf32>
    %118 = vector.broadcast %64 : vector<8x1xf32> to vector<8x512xf32>
    %119 = arith.addf %117, %118 : vector<8x512xf32>
    %cst_33 = arith.constant 0.000000e+00 : f32
    %120 = vector.broadcast %cst_33 : f32 to vector<8x512xf32>
    %121 = arith.maximumf %119, %120 : vector<8x512xf32>
    %c0_34 = arith.constant 0 : index
    %c0_35 = arith.constant 0 : index
    %122 = vector.load %arg5[%c0_34, %c0_35] : memref<8x72xf32, #tpu.memory_space<vmem>>, vector<8x72xf32>
    %c0_36 = arith.constant 0 : index
    %c0_37 = arith.constant 0 : index
    %123 = vector.load %arg6[%c0_36, %c0_37] : memref<8x1xf32, #tpu.memory_space<vmem>>, vector<8x1xf32>
    %cst_38 = arith.constant 0.000000e+00 : f32
    %124 = vector.broadcast %cst_38 : f32 to vector<8x17xf32>
    %125 = vector.extract_strided_slice %121 {offsets = [0, 0], sizes = [8, 495], strides = [1, 1]} : vector<8x512xf32> to vector<8x495xf32>
    %126 = tpu.concatenate %124, %125 in 1 : vector<8x17xf32>, vector<8x495xf32> -> vector<8x512xf32>
    %127 = vector.extract_strided_slice %0 {offsets = [0, 0], sizes = [1, 512], strides = [1, 1]} : vector<9x512xf32> to vector<1x512xf32>
    %128 = vector.broadcast %127 : vector<1x512xf32> to vector<8x512xf32>
    %129 = arith.mulf %126, %128 : vector<8x512xf32>
    %cst_39 = arith.constant 0.000000e+00 : f32
    %130 = vector.broadcast %cst_39 : f32 to vector<8x16xf32>
    %131 = vector.extract_strided_slice %121 {offsets = [0, 0], sizes = [8, 496], strides = [1, 1]} : vector<8x512xf32> to vector<8x496xf32>
    %132 = tpu.concatenate %130, %131 in 1 : vector<8x16xf32>, vector<8x496xf32> -> vector<8x512xf32>
    %133 = vector.extract_strided_slice %0 {offsets = [1, 0], sizes = [1, 512], strides = [1, 1]} : vector<9x512xf32> to vector<1x512xf32>
    %134 = vector.broadcast %133 : vector<1x512xf32> to vector<8x512xf32>
    %135 = arith.mulf %132, %134 : vector<8x512xf32>
    %cst_40 = arith.constant 0.000000e+00 : f32
    %136 = vector.broadcast %cst_40 : f32 to vector<8x15xf32>
    %137 = vector.extract_strided_slice %121 {offsets = [0, 0], sizes = [8, 497], strides = [1, 1]} : vector<8x512xf32> to vector<8x497xf32>
    %138 = tpu.concatenate %136, %137 in 1 : vector<8x15xf32>, vector<8x497xf32> -> vector<8x512xf32>
    %139 = vector.extract_strided_slice %0 {offsets = [2, 0], sizes = [1, 512], strides = [1, 1]} : vector<9x512xf32> to vector<1x512xf32>
    %140 = vector.broadcast %139 : vector<1x512xf32> to vector<8x512xf32>
    %141 = arith.mulf %138, %140 : vector<8x512xf32>
    %cst_41 = arith.constant 0.000000e+00 : f32
    %142 = vector.broadcast %cst_41 : f32 to vector<8x1xf32>
    %143 = vector.extract_strided_slice %121 {offsets = [0, 0], sizes = [8, 511], strides = [1, 1]} : vector<8x512xf32> to vector<8x511xf32>
    %144 = tpu.concatenate %142, %143 in 1 : vector<8x1xf32>, vector<8x511xf32> -> vector<8x512xf32>
    %145 = vector.extract_strided_slice %0 {offsets = [3, 0], sizes = [1, 512], strides = [1, 1]} : vector<9x512xf32> to vector<1x512xf32>
    %146 = vector.broadcast %145 : vector<1x512xf32> to vector<8x512xf32>
    %147 = arith.mulf %144, %146 : vector<8x512xf32>
    %148 = vector.extract_strided_slice %0 {offsets = [4, 0], sizes = [1, 512], strides = [1, 1]} : vector<9x512xf32> to vector<1x512xf32>
    %149 = vector.broadcast %148 : vector<1x512xf32> to vector<8x512xf32>
    %150 = arith.mulf %121, %149 : vector<8x512xf32>
    %cst_42 = arith.constant 0.000000e+00 : f32
    %151 = vector.broadcast %cst_42 : f32 to vector<8x1xf32>
    %152 = vector.extract_strided_slice %121 {offsets = [0, 1], sizes = [8, 511], strides = [1, 1]} : vector<8x512xf32> to vector<8x511xf32>
    %153 = tpu.concatenate %152, %151 in 1 : vector<8x511xf32>, vector<8x1xf32> -> vector<8x512xf32>
    %154 = vector.extract_strided_slice %0 {offsets = [5, 0], sizes = [1, 512], strides = [1, 1]} : vector<9x512xf32> to vector<1x512xf32>
    %155 = vector.broadcast %154 : vector<1x512xf32> to vector<8x512xf32>
    %156 = arith.mulf %153, %155 : vector<8x512xf32>
    %cst_43 = arith.constant 0.000000e+00 : f32
    %157 = vector.broadcast %cst_43 : f32 to vector<8x15xf32>
    %158 = vector.extract_strided_slice %121 {offsets = [0, 15], sizes = [8, 497], strides = [1, 1]} : vector<8x512xf32> to vector<8x497xf32>
    %159 = tpu.concatenate %158, %157 in 1 : vector<8x497xf32>, vector<8x15xf32> -> vector<8x512xf32>
    %160 = vector.extract_strided_slice %0 {offsets = [6, 0], sizes = [1, 512], strides = [1, 1]} : vector<9x512xf32> to vector<1x512xf32>
    %161 = vector.broadcast %160 : vector<1x512xf32> to vector<8x512xf32>
    %162 = arith.mulf %159, %161 : vector<8x512xf32>
    %cst_44 = arith.constant 0.000000e+00 : f32
    %163 = vector.broadcast %cst_44 : f32 to vector<8x16xf32>
    %164 = vector.extract_strided_slice %121 {offsets = [0, 16], sizes = [8, 496], strides = [1, 1]} : vector<8x512xf32> to vector<8x496xf32>
    %165 = tpu.concatenate %164, %163 in 1 : vector<8x496xf32>, vector<8x16xf32> -> vector<8x512xf32>
    %166 = vector.extract_strided_slice %0 {offsets = [7, 0], sizes = [1, 512], strides = [1, 1]} : vector<9x512xf32> to vector<1x512xf32>
    %167 = vector.broadcast %166 : vector<1x512xf32> to vector<8x512xf32>
    %168 = arith.mulf %165, %167 : vector<8x512xf32>
    %cst_45 = arith.constant 0.000000e+00 : f32
    %169 = vector.broadcast %cst_45 : f32 to vector<8x17xf32>
    %170 = vector.extract_strided_slice %121 {offsets = [0, 17], sizes = [8, 495], strides = [1, 1]} : vector<8x512xf32> to vector<8x495xf32>
    %171 = tpu.concatenate %170, %169 in 1 : vector<8x495xf32>, vector<8x17xf32> -> vector<8x512xf32>
    %172 = vector.extract_strided_slice %0 {offsets = [8, 0], sizes = [1, 512], strides = [1, 1]} : vector<9x512xf32> to vector<1x512xf32>
    %173 = vector.broadcast %172 : vector<1x512xf32> to vector<8x512xf32>
    %174 = arith.mulf %171, %173 : vector<8x512xf32>
    %175 = tpu.concatenate %129, %135, %141, %147, %150, %156, %162, %168, %174 in 0 : vector<8x512xf32>, vector<8x512xf32>, vector<8x512xf32>, vector<8x512xf32>, vector<8x512xf32>, vector<8x512xf32>, vector<8x512xf32>, vector<8x512xf32>, vector<8x512xf32> -> vector<72x512xf32>
    %cst_46 = arith.constant dense<0.000000e+00> : vector<8x512xf32>
    %176 = tpu.matmul %122, %175, %cst_46 {dimension_numbers = #tpu.dot_dimension_numbers<[1], [0], [0], [1], [0, 0, 1, 1], [], []>} : vector<8x72xf32>, vector<72x512xf32>, vector<8x512xf32> -> vector<8x512xf32>
    %177 = vector.broadcast %123 : vector<8x1xf32> to vector<8x512xf32>
    %178 = arith.addf %176, %177 : vector<8x512xf32>
    %179 = arith.addf %178, %62 : vector<8x512xf32>
    %cst_47 = arith.constant 0.000000e+00 : f32
    %180 = vector.broadcast %cst_47 : f32 to vector<8x512xf32>
    %181 = arith.maximumf %179, %180 : vector<8x512xf32>
    %cst_48 = arith.constant dense<0.000000e+00> : vector<8x128xf32>
    %182 = tpu.matmul %181, %2, %cst_48 {dimension_numbers = #tpu.dot_dimension_numbers<[1], [0], [0], [1], [0, 0, 1, 1], [], []>} : vector<8x512xf32>, vector<512x128xf32>, vector<8x128xf32> -> vector<8x128xf32>
    %c0_49 = arith.constant 0 : index
    %c0_50 = arith.constant 0 : index
    %183 = vector.load %arg11[%c0_49, %c0_50] : memref<16x8xf32, #tpu.memory_space<vmem>>, vector<16x8xf32>
    %cst_51 = arith.constant dense<0.000000e+00> : vector<16x128xf32>
    %184 = tpu.matmul %183, %182, %cst_51 {dimension_numbers = #tpu.dot_dimension_numbers<[1], [0], [0], [1], [0, 0, 1, 1], [], []>} : vector<16x8xf32>, vector<8x128xf32>, vector<16x128xf32> -> vector<16x128xf32>
    %c0_52 = arith.constant 0 : index
    %c0_53 = arith.constant 0 : index
    %185 = vector.load %arg12[%c0_52, %c0_53] : memref<16x1xf32, #tpu.memory_space<vmem>>, vector<16x1xf32>
    %186 = vector.broadcast %185 : vector<16x1xf32> to vector<16x128xf32>
    %187 = arith.addf %184, %186 : vector<16x128xf32>
    %c0_54 = arith.constant 0 : index
    %c0_55 = arith.constant 0 : index
    %188 = vector.load %arg7[%c0_54, %c0_55] : memref<16x72xf32, #tpu.memory_space<vmem>>, vector<16x72xf32>
    %c0_56 = arith.constant 0 : index
    %c0_57 = arith.constant 0 : index
    %189 = vector.load %arg8[%c0_56, %c0_57] : memref<16x1xf32, #tpu.memory_space<vmem>>, vector<16x1xf32>
    %cst_58 = arith.constant 0.000000e+00 : f32
    %190 = vector.broadcast %cst_58 : f32 to vector<8x17xf32>
    %191 = vector.extract_strided_slice %181 {offsets = [0, 0], sizes = [8, 495], strides = [1, 1]} : vector<8x512xf32> to vector<8x495xf32>
    %192 = tpu.concatenate %190, %191 in 1 : vector<8x17xf32>, vector<8x495xf32> -> vector<8x512xf32>
    %193 = vector.extract_strided_slice %0 {offsets = [0, 0], sizes = [1, 512], strides = [1, 1]} : vector<9x512xf32> to vector<1x512xf32>
    %194 = vector.broadcast %193 : vector<1x512xf32> to vector<8x512xf32>
    %195 = arith.mulf %192, %194 : vector<8x512xf32>
    %cst_59 = arith.constant 0.000000e+00 : f32
    %196 = vector.broadcast %cst_59 : f32 to vector<8x16xf32>
    %197 = vector.extract_strided_slice %181 {offsets = [0, 0], sizes = [8, 496], strides = [1, 1]} : vector<8x512xf32> to vector<8x496xf32>
    %198 = tpu.concatenate %196, %197 in 1 : vector<8x16xf32>, vector<8x496xf32> -> vector<8x512xf32>
    %199 = vector.extract_strided_slice %0 {offsets = [1, 0], sizes = [1, 512], strides = [1, 1]} : vector<9x512xf32> to vector<1x512xf32>
    %200 = vector.broadcast %199 : vector<1x512xf32> to vector<8x512xf32>
    %201 = arith.mulf %198, %200 : vector<8x512xf32>
    %cst_60 = arith.constant 0.000000e+00 : f32
    %202 = vector.broadcast %cst_60 : f32 to vector<8x15xf32>
    %203 = vector.extract_strided_slice %181 {offsets = [0, 0], sizes = [8, 497], strides = [1, 1]} : vector<8x512xf32> to vector<8x497xf32>
    %204 = tpu.concatenate %202, %203 in 1 : vector<8x15xf32>, vector<8x497xf32> -> vector<8x512xf32>
    %205 = vector.extract_strided_slice %0 {offsets = [2, 0], sizes = [1, 512], strides = [1, 1]} : vector<9x512xf32> to vector<1x512xf32>
    %206 = vector.broadcast %205 : vector<1x512xf32> to vector<8x512xf32>
    %207 = arith.mulf %204, %206 : vector<8x512xf32>
    %cst_61 = arith.constant 0.000000e+00 : f32
    %208 = vector.broadcast %cst_61 : f32 to vector<8x1xf32>
    %209 = vector.extract_strided_slice %181 {offsets = [0, 0], sizes = [8, 511], strides = [1, 1]} : vector<8x512xf32> to vector<8x511xf32>
    %210 = tpu.concatenate %208, %209 in 1 : vector<8x1xf32>, vector<8x511xf32> -> vector<8x512xf32>
    %211 = vector.extract_strided_slice %0 {offsets = [3, 0], sizes = [1, 512], strides = [1, 1]} : vector<9x512xf32> to vector<1x512xf32>
    %212 = vector.broadcast %211 : vector<1x512xf32> to vector<8x512xf32>
    %213 = arith.mulf %210, %212 : vector<8x512xf32>
    %214 = vector.extract_strided_slice %0 {offsets = [4, 0], sizes = [1, 512], strides = [1, 1]} : vector<9x512xf32> to vector<1x512xf32>
    %215 = vector.broadcast %214 : vector<1x512xf32> to vector<8x512xf32>
    %216 = arith.mulf %181, %215 : vector<8x512xf32>
    %cst_62 = arith.constant 0.000000e+00 : f32
    %217 = vector.broadcast %cst_62 : f32 to vector<8x1xf32>
    %218 = vector.extract_strided_slice %181 {offsets = [0, 1], sizes = [8, 511], strides = [1, 1]} : vector<8x512xf32> to vector<8x511xf32>
    %219 = tpu.concatenate %218, %217 in 1 : vector<8x511xf32>, vector<8x1xf32> -> vector<8x512xf32>
    %220 = vector.extract_strided_slice %0 {offsets = [5, 0], sizes = [1, 512], strides = [1, 1]} : vector<9x512xf32> to vector<1x512xf32>
    %221 = vector.broadcast %220 : vector<1x512xf32> to vector<8x512xf32>
    %222 = arith.mulf %219, %221 : vector<8x512xf32>
    %cst_63 = arith.constant 0.000000e+00 : f32
    %223 = vector.broadcast %cst_63 : f32 to vector<8x15xf32>
    %224 = vector.extract_strided_slice %181 {offsets = [0, 15], sizes = [8, 497], strides = [1, 1]} : vector<8x512xf32> to vector<8x497xf32>
    %225 = tpu.concatenate %224, %223 in 1 : vector<8x497xf32>, vector<8x15xf32> -> vector<8x512xf32>
    %226 = vector.extract_strided_slice %0 {offsets = [6, 0], sizes = [1, 512], strides = [1, 1]} : vector<9x512xf32> to vector<1x512xf32>
    %227 = vector.broadcast %226 : vector<1x512xf32> to vector<8x512xf32>
    %228 = arith.mulf %225, %227 : vector<8x512xf32>
    %cst_64 = arith.constant 0.000000e+00 : f32
    %229 = vector.broadcast %cst_64 : f32 to vector<8x16xf32>
    %230 = vector.extract_strided_slice %181 {offsets = [0, 16], sizes = [8, 496], strides = [1, 1]} : vector<8x512xf32> to vector<8x496xf32>
    %231 = tpu.concatenate %230, %229 in 1 : vector<8x496xf32>, vector<8x16xf32> -> vector<8x512xf32>
    %232 = vector.extract_strided_slice %0 {offsets = [7, 0], sizes = [1, 512], strides = [1, 1]} : vector<9x512xf32> to vector<1x512xf32>
    %233 = vector.broadcast %232 : vector<1x512xf32> to vector<8x512xf32>
    %234 = arith.mulf %231, %233 : vector<8x512xf32>
    %cst_65 = arith.constant 0.000000e+00 : f32
    %235 = vector.broadcast %cst_65 : f32 to vector<8x17xf32>
    %236 = vector.extract_strided_slice %181 {offsets = [0, 17], sizes = [8, 495], strides = [1, 1]} : vector<8x512xf32> to vector<8x495xf32>
    %237 = tpu.concatenate %236, %235 in 1 : vector<8x495xf32>, vector<8x17xf32> -> vector<8x512xf32>
    %238 = vector.extract_strided_slice %0 {offsets = [8, 0], sizes = [1, 512], strides = [1, 1]} : vector<9x512xf32> to vector<1x512xf32>
    %239 = vector.broadcast %238 : vector<1x512xf32> to vector<8x512xf32>
    %240 = arith.mulf %237, %239 : vector<8x512xf32>
    %241 = tpu.concatenate %195, %201, %207, %213, %216, %222, %228, %234, %240 in 0 : vector<8x512xf32>, vector<8x512xf32>, vector<8x512xf32>, vector<8x512xf32>, vector<8x512xf32>, vector<8x512xf32>, vector<8x512xf32>, vector<8x512xf32>, vector<8x512xf32> -> vector<72x512xf32>
    %cst_66 = arith.constant dense<0.000000e+00> : vector<16x512xf32>
    %242 = tpu.matmul %188, %241, %cst_66 {dimension_numbers = #tpu.dot_dimension_numbers<[1], [0], [0], [1], [0, 0, 1, 1], [], []>} : vector<16x72xf32>, vector<72x512xf32>, vector<16x512xf32> -> vector<16x512xf32>
    %cst_67 = arith.constant dense<0.000000e+00> : vector<16x128xf32>
    %243 = tpu.matmul %242, %2, %cst_67 {dimension_numbers = #tpu.dot_dimension_numbers<[1], [0], [0], [1], [0, 0, 1, 1], [], []>} : vector<16x512xf32>, vector<512x128xf32>, vector<16x128xf32> -> vector<16x128xf32>
    %244 = vector.broadcast %189 : vector<16x1xf32> to vector<16x128xf32>
    %245 = arith.addf %243, %244 : vector<16x128xf32>
    %cst_68 = arith.constant 0.000000e+00 : f32
    %246 = vector.broadcast %cst_68 : f32 to vector<16x128xf32>
    %247 = arith.maximumf %245, %246 : vector<16x128xf32>
    %c0_69 = arith.constant 0 : index
    %c0_70 = arith.constant 0 : index
    %248 = vector.load %arg9[%c0_69, %c0_70] : memref<16x144xf32, #tpu.memory_space<vmem>>, vector<16x144xf32>
    %c0_71 = arith.constant 0 : index
    %c0_72 = arith.constant 0 : index
    %249 = vector.load %arg10[%c0_71, %c0_72] : memref<16x1xf32, #tpu.memory_space<vmem>>, vector<16x1xf32>
    %cst_73 = arith.constant 0.000000e+00 : f32
    %250 = vector.broadcast %cst_73 : f32 to vector<16x9xf32>
    %251 = vector.extract_strided_slice %247 {offsets = [0, 0], sizes = [16, 119], strides = [1, 1]} : vector<16x128xf32> to vector<16x119xf32>
    %252 = tpu.concatenate %250, %251 in 1 : vector<16x9xf32>, vector<16x119xf32> -> vector<16x128xf32>
    %253 = vector.extract_strided_slice %1 {offsets = [0, 0], sizes = [1, 128], strides = [1, 1]} : vector<9x128xf32> to vector<1x128xf32>
    %254 = vector.broadcast %253 : vector<1x128xf32> to vector<16x128xf32>
    %255 = arith.mulf %252, %254 : vector<16x128xf32>
    %cst_74 = arith.constant 0.000000e+00 : f32
    %256 = vector.broadcast %cst_74 : f32 to vector<16x8xf32>
    %257 = vector.extract_strided_slice %247 {offsets = [0, 0], sizes = [16, 120], strides = [1, 1]} : vector<16x128xf32> to vector<16x120xf32>
    %258 = tpu.concatenate %256, %257 in 1 : vector<16x8xf32>, vector<16x120xf32> -> vector<16x128xf32>
    %259 = vector.extract_strided_slice %1 {offsets = [1, 0], sizes = [1, 128], strides = [1, 1]} : vector<9x128xf32> to vector<1x128xf32>
    %260 = vector.broadcast %259 : vector<1x128xf32> to vector<16x128xf32>
    %261 = arith.mulf %258, %260 : vector<16x128xf32>
    %cst_75 = arith.constant 0.000000e+00 : f32
    %262 = vector.broadcast %cst_75 : f32 to vector<16x7xf32>
    %263 = vector.extract_strided_slice %247 {offsets = [0, 0], sizes = [16, 121], strides = [1, 1]} : vector<16x128xf32> to vector<16x121xf32>
    %264 = tpu.concatenate %262, %263 in 1 : vector<16x7xf32>, vector<16x121xf32> -> vector<16x128xf32>
    %265 = vector.extract_strided_slice %1 {offsets = [2, 0], sizes = [1, 128], strides = [1, 1]} : vector<9x128xf32> to vector<1x128xf32>
    %266 = vector.broadcast %265 : vector<1x128xf32> to vector<16x128xf32>
    %267 = arith.mulf %264, %266 : vector<16x128xf32>
    %cst_76 = arith.constant 0.000000e+00 : f32
    %268 = vector.broadcast %cst_76 : f32 to vector<16x1xf32>
    %269 = vector.extract_strided_slice %247 {offsets = [0, 0], sizes = [16, 127], strides = [1, 1]} : vector<16x128xf32> to vector<16x127xf32>
    %270 = tpu.concatenate %268, %269 in 1 : vector<16x1xf32>, vector<16x127xf32> -> vector<16x128xf32>
    %271 = vector.extract_strided_slice %1 {offsets = [3, 0], sizes = [1, 128], strides = [1, 1]} : vector<9x128xf32> to vector<1x128xf32>
    %272 = vector.broadcast %271 : vector<1x128xf32> to vector<16x128xf32>
    %273 = arith.mulf %270, %272 : vector<16x128xf32>
    %274 = vector.extract_strided_slice %1 {offsets = [4, 0], sizes = [1, 128], strides = [1, 1]} : vector<9x128xf32> to vector<1x128xf32>
    %275 = vector.broadcast %274 : vector<1x128xf32> to vector<16x128xf32>
    %276 = arith.mulf %247, %275 : vector<16x128xf32>
    %cst_77 = arith.constant 0.000000e+00 : f32
    %277 = vector.broadcast %cst_77 : f32 to vector<16x1xf32>
    %278 = vector.extract_strided_slice %247 {offsets = [0, 1], sizes = [16, 127], strides = [1, 1]} : vector<16x128xf32> to vector<16x127xf32>
    %279 = tpu.concatenate %278, %277 in 1 : vector<16x127xf32>, vector<16x1xf32> -> vector<16x128xf32>
    %280 = vector.extract_strided_slice %1 {offsets = [5, 0], sizes = [1, 128], strides = [1, 1]} : vector<9x128xf32> to vector<1x128xf32>
    %281 = vector.broadcast %280 : vector<1x128xf32> to vector<16x128xf32>
    %282 = arith.mulf %279, %281 : vector<16x128xf32>
    %cst_78 = arith.constant 0.000000e+00 : f32
    %283 = vector.broadcast %cst_78 : f32 to vector<16x7xf32>
    %284 = vector.extract_strided_slice %247 {offsets = [0, 7], sizes = [16, 121], strides = [1, 1]} : vector<16x128xf32> to vector<16x121xf32>
    %285 = tpu.concatenate %284, %283 in 1 : vector<16x121xf32>, vector<16x7xf32> -> vector<16x128xf32>
    %286 = vector.extract_strided_slice %1 {offsets = [6, 0], sizes = [1, 128], strides = [1, 1]} : vector<9x128xf32> to vector<1x128xf32>
    %287 = vector.broadcast %286 : vector<1x128xf32> to vector<16x128xf32>
    %288 = arith.mulf %285, %287 : vector<16x128xf32>
    %cst_79 = arith.constant 0.000000e+00 : f32
    %289 = vector.broadcast %cst_79 : f32 to vector<16x8xf32>
    %290 = vector.extract_strided_slice %247 {offsets = [0, 8], sizes = [16, 120], strides = [1, 1]} : vector<16x128xf32> to vector<16x120xf32>
    %291 = tpu.concatenate %290, %289 in 1 : vector<16x120xf32>, vector<16x8xf32> -> vector<16x128xf32>
    %292 = vector.extract_strided_slice %1 {offsets = [7, 0], sizes = [1, 128], strides = [1, 1]} : vector<9x128xf32> to vector<1x128xf32>
    %293 = vector.broadcast %292 : vector<1x128xf32> to vector<16x128xf32>
    %294 = arith.mulf %291, %293 : vector<16x128xf32>
    %cst_80 = arith.constant 0.000000e+00 : f32
    %295 = vector.broadcast %cst_80 : f32 to vector<16x9xf32>
    %296 = vector.extract_strided_slice %247 {offsets = [0, 9], sizes = [16, 119], strides = [1, 1]} : vector<16x128xf32> to vector<16x119xf32>
    %297 = tpu.concatenate %296, %295 in 1 : vector<16x119xf32>, vector<16x9xf32> -> vector<16x128xf32>
    %298 = vector.extract_strided_slice %1 {offsets = [8, 0], sizes = [1, 128], strides = [1, 1]} : vector<9x128xf32> to vector<1x128xf32>
    %299 = vector.broadcast %298 : vector<1x128xf32> to vector<16x128xf32>
    %300 = arith.mulf %297, %299 : vector<16x128xf32>
    %301 = tpu.concatenate %255, %261, %267, %273, %276, %282, %288, %294, %300 in 0 : vector<16x128xf32>, vector<16x128xf32>, vector<16x128xf32>, vector<16x128xf32>, vector<16x128xf32>, vector<16x128xf32>, vector<16x128xf32>, vector<16x128xf32>, vector<16x128xf32> -> vector<144x128xf32>
    %cst_81 = arith.constant dense<0.000000e+00> : vector<16x128xf32>
    %302 = tpu.matmul %248, %301, %cst_81 {dimension_numbers = #tpu.dot_dimension_numbers<[1], [0], [0], [1], [0, 0, 1, 1], [], []>} : vector<16x144xf32>, vector<144x128xf32>, vector<16x128xf32> -> vector<16x128xf32>
    %303 = vector.broadcast %249 : vector<16x1xf32> to vector<16x128xf32>
    %304 = arith.addf %302, %303 : vector<16x128xf32>
    %305 = arith.addf %304, %187 : vector<16x128xf32>
    %cst_82 = arith.constant 0.000000e+00 : f32
    %306 = vector.broadcast %cst_82 : f32 to vector<16x128xf32>
    %307 = arith.maximumf %305, %306 : vector<16x128xf32>
    %c0_83 = arith.constant 0 : index
    %c0_84 = arith.constant 0 : index
    %308 = vector.load %arg19[%c0_83, %c0_84] : memref<128x2xf32, #tpu.memory_space<vmem>>, vector<128x2xf32>
    %cst_85 = arith.constant dense<0.000000e+00> : vector<16x2xf32>
    %309 = tpu.matmul %307, %308, %cst_85 {dimension_numbers = #tpu.dot_dimension_numbers<[1], [0], [0], [1], [0, 0, 1, 1], [], []>} : vector<16x128xf32>, vector<128x2xf32>, vector<16x2xf32> -> vector<16x2xf32>
    %c0_86 = arith.constant 0 : index
    %c0_87 = arith.constant 0 : index
    %310 = vector.load %arg15[%c0_86, %c0_87] : memref<16x2xf32, #tpu.memory_space<vmem>>, vector<16x2xf32>
    %311 = arith.mulf %309, %310 : vector<16x2xf32>
    %c0_88 = arith.constant 0 : index
    %c0_89 = arith.constant 0 : index
    %312 = vector.load %arg13[%c0_88, %c0_89] : memref<4x16xf32, #tpu.memory_space<vmem>>, vector<4x16xf32>
    %cst_90 = arith.constant dense<0.000000e+00> : vector<4x2xf32>
    %313 = tpu.matmul %312, %311, %cst_90 {dimension_numbers = #tpu.dot_dimension_numbers<[1], [0], [0], [1], [0, 0, 1, 1], [], []>} : vector<4x16xf32>, vector<16x2xf32>, vector<4x2xf32> -> vector<4x2xf32>
    %c0_91 = arith.constant 0 : index
    %c0_92 = arith.constant 0 : index
    %314 = vector.load %arg14[%c0_91, %c0_92] : memref<4x1xf32, #tpu.memory_space<vmem>>, vector<4x1xf32>
    %315 = vector.broadcast %314 : vector<4x1xf32> to vector<4x2xf32>
    %316 = arith.addf %313, %315 : vector<4x2xf32>
    %c0_93 = arith.constant 0 : index
    %c0_94 = arith.constant 0 : index
    %317 = vector.load %arg20[%c0_93, %c0_94] : memref<4x2xf32, #tpu.memory_space<vmem>>, vector<4x2xf32>
    tpu.vector_store %arg20[%c0_93, %c0_94], %316 {strides = array<i32>} : memref<4x2xf32, #tpu.memory_space<vmem>>, vector<4x2xf32>,
    return
  }
}

</mosaic_0001>

<bundles_post_ra>
// kernel: resnet_with_dropout_forward.1
= control target key start
LH: loop header
LB: loop body
LE: loop exit
PB: predicated region body
PF: predicated region fallthrough
CT: control target
= control target key end

     0   :  { %s5001_s0 = inlined_call_operand.vmem [shape: f32[3,512], index: 0, kind: input, shape index: {}]   ;;  %s5002_s1 = inlined_call_operand.hbm [shape: f32[8,27], index: 1, kind: input, shape index: {}]   ;;  %s5003_s2 = inlined_call_operand.vmem [shape: f32[8,1], index: 2, kind: input, shape index: {}]   ;;  %s5004_s3 = inlined_call_operand.hbm [shape: f32[8,72], index: 3, kind: input, shape index: {}]   ;;  %s5005_s4 = inlined_call_operand.vmem [shape: f32[8,1], index: 4, kind: input, shape index: {}]   ;;  %s5006_s5 = inlined_call_operand.hbm [shape: f32[8,72], index: 5, kind: input, shape index: {}]   ;;  %s5007_s6 = inlined_call_operand.vmem [shape: f32[8,1], index: 6, kind: input, shape index: {}]   ;;  %s5008_s7 = inlined_call_operand.vmem [shape: f32[16,72], index: 7, kind: input, shape index: {}]   ;;  %s5009_s8 = inlined_call_operand.vmem [shape: f32[16,1], index: 8, kind: input, shape index: {}]   ;;  %s5010_s9 = inlined_call_operand.hbm [shape: f32[16,144], index: 9, kind: input, shape index: {}]   ;;  %s5011_s10 = inlined_call_operand.vmem [shape: f32[16,1], index: 10, kind: input, shape index: {}]   ;;  %s5012_s11 = inlined_call_operand.vmem [shape: f32[16,8], index: 11, kind: input, shape index: {}]   ;;  %s5013_s12 = inlined_call_operand.vmem [shape: f32[16,1], index: 12, kind: input, shape index: {}]   ;;  %s5014_s13 = inlined_call_operand.vmem [shape: f32[4,16], index: 13, kind: input, shape index: {}]   ;;  %s5015_s14 = inlined_call_operand.vmem [shape: f32[4,1], index: 14, kind: input, shape index: {}]   ;;  %s5016_s15 = inlined_call_operand.vmem [shape: f32[16,2], index: 15, kind: input, shape index: {}]   ;;  %s5017_s16 = inlined_call_operand.hbm [shape: f32[9,512], index: 16, kind: input, shape index: {}]   ;;  %s5018_s17 = inlined_call_operand.hbm [shape: f32[9,128], index: 17, kind: input, shape index: {}]   ;;  %s5019_s18 = inlined_call_operand.vmem [shape: f32[512,128], index: 18, kind: input, shape index: {}]   ;;  %s5020_s19 = inlined_call_operand.vmem [shape: f32[128,2], index: 19, kind: input, shape index: {}]   ;;  %s5021_s20 = inlined_call_operand.vmem [shape: f32[4,2], index: 20, kind: output, shape index: {}]  }
   0x1   :  { %5086 = sst [smem:[#allocation58_spill]] %s5001_s0 }
   0x2   :  { %5087 = sst [smem:[#allocation59_spill]] %s5002_s1 }
   0x3   :  { %5088 = sst [smem:[#allocation60_spill]] %s5003_s2 }
   0x4   :  { %5089 = sst [smem:[#allocation61_spill]] %s5004_s3 }
   0x5   :  { %5090 = sst [smem:[#allocation62_spill]] %s5005_s4 }
   0x6   :  { %5091 = sst [smem:[#allocation63_spill]] %s5014_s13 }
   0x7   :  { %5092 = sst [smem:[#allocation64_spill]] %s5021_s20 }
   0x8   :  { %25 = vsyncpa [#allocation3], 0 }
   0x9   :  { %26 = vsyncpa [#allocation5], 0 }
   0xa   :  { %27 = vsyncpa [#allocation8], 0 }
   0xb   :  { %28 = vsyncpa [#allocation11], 0  ;;  %s3343_s1 = smov [#allocation4]   ;;  %s3344_s23 = smov [#allocation7]  }
   0xc   :  { %s49_s22 = sshll.u32 %s3343_s1, 4  ;;  %s76_s24 = sshll.u32 %s3344_s23, 4  ;;  %s50_s22 = int_to_ptr.vmem [resolvable:$true] %s49_s22  ;;  %s3477_s24 = int_to_ptr.vmem [resolvable:$true] %s76_s24 }
   0xd   :  { %s5093_s3 = sld [smem:[#allocation61_spill]] }
  0x13   :  { %s3203_s26 = scalar_lea.hbm %s5093_s3, 128 }
  0x14   :  { %p3204_p0 = scmp.ne.s32.totalorder %s5093_s3, %s3203_s26  ;;  %p3207_p1 = scmp.lt.u32.totalorder %s3203_s26, %s5093_s3 }
  0x16   :  { %p3209_p2 = pnand %p3207_p1, %p3204_p0 }
  0x18   :  { %3212 = shalt.err (!%p3209_p2)
}
  0x19   :  { %s3213_s30 = scalar_lea.vmem %s50_s22, 128  ;;  %p3218_p4 = scmp.lt.s32.totalorder %s50_s22, %s50_s22 }
  0x1a   :  { %p3214_p3 = scmp.ne.s32.totalorder %s50_s22, %s3213_s30  ;;  %p3219_p5 = scmp.lt.s32.totalorder %s3213_s30, %s3213_s30 }
  0x1c   :  { %p3220_p6 = por %p3219_p5, %p3218_p4 }
  0x1e   :  { %p3221_p7 = pnand %p3220_p6, %p3214_p3 }
  0x20   :  { %3224 = shalt.err (!%p3221_p7)
}
  0x21   :  { %52 = dma.hbm_to_vmem [thread:$0]  %s5093_s3, 128, %s50_s22, [#allocation5]  }
  0x22   :  { %s3225_s2 = scalar_lea.hbm %s5010_s9, 512 }
  0x23   :  { %p3226_p8 = scmp.ne.s32.totalorder %s5010_s9, %s3225_s2  ;;  %p3229_p9 = scmp.lt.u32.totalorder %s3225_s2, %s5010_s9 }
  0x25   :  { %p3231_p10 = pnand %p3229_p9, %p3226_p8 }
  0x27   :  { %3234 = shalt.err (!%p3231_p10)
}
  0x28   :  { %s3235_s4 = scalar_lea.vmem %s3477_s24, 512  ;;  %p3240_p12 = scmp.lt.s32.totalorder %s3477_s24, %s3477_s24 }
  0x29   :  { %p3236_p11 = scmp.ne.s32.totalorder %s3477_s24, %s3235_s4  ;;  %p3241_p13 = scmp.lt.s32.totalorder %s3235_s4, %s3235_s4 }
  0x2b   :  { %p3242_p0 = por %p3241_p13, %p3240_p12 }
  0x2d   :  { %p3243_p1 = pnand %p3242_p0, %p3236_p11 }
  0x2f   :  { %3246 = shalt.err (!%p3243_p1)
}
  0x30   :  { %s3345_s22 = smov 256   ;;  %s3346_s3 = smov 16  }
  0x31   :  { %82 = dma.hbm_to_vmem [thread:$0]  %s5010_s9, 512, %s3477_s24, [#allocation8], %s3345_s22, %s3345_s22, %s3346_s3  }
  0x32   :  { %s3347_s0 = smov [#allocation2]   ;;  %s3348_s1 = smov [#allocation6]  }
  0x33   :  { %s37_s21 = sshll.u32 %s3347_s0, 4  ;;  %s61_s23 = sshll.u32 %s3348_s1, 4  ;;  %s38_s21 = int_to_ptr.vmem [resolvable:$true] %s37_s21  ;;  %s62_s23 = int_to_ptr.vmem [resolvable:$true] %s61_s23 }
  0x34   :  { %s5094_s27 = sld [smem:[#allocation59_spill]] }
  0x3a   :  { %s3247_s26 = scalar_lea.hbm %s5094_s27, 128 }
  0x3b   :  { %p3248_p2 = scmp.ne.s32.totalorder %s5094_s27, %s3247_s26  ;;  %p3251_p3 = scmp.lt.u32.totalorder %s3247_s26, %s5094_s27 }
  0x3d   :  { %p3253_p4 = pnand %p3251_p3, %p3248_p2 }
  0x3f   :  { %3256 = shalt.err (!%p3253_p4)
}
  0x40   :  { %s3257_s9 = scalar_lea.vmem %s38_s21, 128  ;;  %p3262_p6 = scmp.lt.s32.totalorder %s38_s21, %s38_s21 }
  0x41   :  { %p3258_p5 = scmp.ne.s32.totalorder %s38_s21, %s3257_s9  ;;  %p3263_p7 = scmp.lt.s32.totalorder %s3257_s9, %s3257_s9 }
  0x43   :  { %p3264_p8 = por %p3263_p7, %p3262_p6 }
  0x45   :  { %p3265_p9 = pnand %p3264_p8, %p3258_p5 }
  0x47   :  { %3268 = shalt.err (!%p3265_p9)
}
  0x48   :  { %40 = dma.hbm_to_vmem [thread:$0]  %s5094_s27, 128, %s38_s21, [#allocation3]  }
  0x49   :  { %s3269_s0 = scalar_lea.hbm %s5006_s5, 128 }
  0x4a   :  { %p3270_p10 = scmp.ne.s32.totalorder %s5006_s5, %s3269_s0  ;;  %p3273_p11 = scmp.lt.u32.totalorder %s3269_s0, %s5006_s5 }
  0x4c   :  { %p3275_p12 = pnand %p3273_p11, %p3270_p10 }
  0x4e   :  { %3278 = shalt.err (!%p3275_p12)
}
  0x4f   :  { %s3279_s25 = scalar_lea.vmem %s62_s23, 128  ;;  %p3284_p0 = scmp.lt.s32.totalorder %s62_s23, %s62_s23 }
  0x50   :  { %p3280_p13 = scmp.ne.s32.totalorder %s62_s23, %s3279_s25  ;;  %p3285_p1 = scmp.lt.s32.totalorder %s3279_s25, %s3279_s25 }
  0x52   :  { %p3286_p2 = por %p3285_p1, %p3284_p0 }
  0x54   :  { %p3287_p3 = pnand %p3286_p2, %p3280_p13 }
  0x56   :  { %3290 = shalt.err (!%p3287_p3)
}
  0x57   :  { %64 = dma.hbm_to_vmem [thread:$0]  %s5006_s5, 128, %s62_s23, [#allocation5]  }
  0x58   :  { %s3349_s26 = smov [#allocation9]   ;;  %s3291_s24 = scalar_lea.hbm %s5017_s16, 1024 }
  0x59   :  { %s100_s28 = sshll.u32 %s3349_s26, 4  ;;  %p3292_p4 = scmp.ne.s32.totalorder %s5017_s16, %s3291_s24  ;;  %s101_s28 = int_to_ptr.vmem [resolvable:$true] %s100_s28 }
  0x5a   :  { %p3295_p5 = scmp.lt.u32.totalorder %s3291_s24, %s5017_s16 }
  0x5c   :  { %p3297_p6 = pnand %p3295_p5, %p3292_p4 }
  0x5e   :  { %3300 = shalt.err (!%p3297_p6)
}
  0x5f   :  { %s3301_s1 = scalar_lea.vmem %s101_s28, 1024  ;;  %p3306_p8 = scmp.lt.s32.totalorder %s101_s28, %s101_s28 }
  0x60   :  { %p3302_p7 = scmp.ne.s32.totalorder %s101_s28, %s3301_s1  ;;  %p3307_p9 = scmp.lt.s32.totalorder %s3301_s1, %s3301_s1 }
  0x62   :  { %p3308_p10 = por %p3307_p9, %p3306_p8 }
  0x64   :  { %p3309_p11 = pnand %p3308_p10, %p3302_p7 }
  0x66   :  { %3312 = shalt.err (!%p3309_p11)
}
  0x67   :  { %s3350_s5 = smov 512   ;;  %s3351_s23 = smov 32  }
  0x68   :  { %106 = dma.hbm_to_vmem [thread:$0]  %s5017_s16, 1024, %s101_s28, [#allocation8], %s3350_s5, %s3350_s5, %s3351_s23  }
  0x69   :  { %s3352_s2 = smov [#allocation10]   ;;  %s3313_s26 = scalar_lea.hbm %s5018_s17, 256 }
  0x6a   :  { %s112_s25 = sshll.u32 %s3352_s2, 4  ;;  %p3314_p12 = scmp.ne.s32.totalorder %s5018_s17, %s3313_s26  ;;  %s113_s25 = int_to_ptr.vmem [resolvable:$true] %s112_s25 }
  0x6b   :  { %p3317_p13 = scmp.lt.u32.totalorder %s3313_s26, %s5018_s17 }
  0x6d   :  { %p3319_p0 = pnand %p3317_p13, %p3314_p12 }
  0x6f   :  { %3322 = shalt.err (!%p3319_p0)
}
  0x70   :  { %s3323_s29 = scalar_lea.vmem %s113_s25, 256  ;;  %p3328_p2 = scmp.lt.s32.totalorder %s113_s25, %s113_s25 }
  0x71   :  { %p3324_p1 = scmp.ne.s32.totalorder %s113_s25, %s3323_s29  ;;  %p3329_p3 = scmp.lt.s32.totalorder %s3323_s29, %s3323_s29 }
  0x73   :  { %p3330_p4 = por %p3329_p3, %p3328_p2 }
  0x75   :  { %p3331_p5 = pnand %p3330_p4, %p3324_p1 }
  0x77   :  { %3334 = shalt.err (!%p3331_p5)
}
  0x78   :  { %s3353_s16 = smov 128   ;;  %s3354_s28 = smov 8  }
  0x79   :  { %118 = dma.hbm_to_vmem [thread:$0]  %s5018_s17, 256, %s113_s25, [#allocation11], %s3353_s16, %s3353_s16, %s3354_s28  }
  0x7a   :  { %3335 = dma.done.wait [#allocation3], 128  }
  0x7b   :  { %3336 = vsyncadd [#allocation3], 4294967168 }
  0x7c   :  { %3337 = dma.done.wait [#allocation5], 256  }
  0x7d   :  { %3338 = vsyncadd [#allocation5], 4294967040 }
  0x7e   :  { %3339 = dma.done.wait [#allocation8], 1536  }
  0x7f   :  { %3340 = vsyncadd [#allocation8], 4294965760 }
  0x80   :  { %3341 = dma.done.wait [#allocation11], 256  }
  0x81   :  { %3342 = vsyncadd [#allocation11], 4294967040  ;;  %s5095_s23 = sld [smem:[#allocation58_spill]]  ;;  %s3355_s2 = smov 15   ;;  %v5025_v4 = vmov 0.0   ;;  %v3363_v5 = vmov 0   ;;  %v240_v7 = vlaneseq }
  0x82   :  { %s3356_s17 = smov 1   ;;  %s3357_s25 = smov 127   ;;  %743 = vmatprep.mubr.f32.mxu0 %v5025_v4  ;;  %814 = vmatprep.mubr.f32.mxu1 %v5025_v4  ;;  %v3630_v14 = vld [vmem:[#allocation9] sm:$0xff]  ;;  %v3632_v15 = vld [vmem:[#allocation9 + $0x8] sm:$0xff]  ;;  %v3642_v20 = vld [vmem:[#allocation9 + $0x18] sm:$0xff]  ;;  %vm305_vm0 = vcmask 121856  }
  0x83   :  { %s3358_s21 = smov 17   ;;  %s3359_s27 = smov 113   ;;  %3195 = vset.pattern.permute.xlu0 %v3363_v5  ;;  %3196 = vset.pattern.permute.xlu1 %v3363_v5  ;;  %v3625_v9 = vshrl.u32 %v240_v7, 7  ;;  %v3644_v21 = vld [vmem:[#allocation9 + $0x10] sm:$0xff]  ;;  %vm342_vm1 = vcmask 7168   ;;  %vm268_vm2 = vcmask 130048  }
  0x84   :  { %s3360_s26 = smov 112   ;;  %s3362_s4 = smov 111   ;;  %vm633_vm3 = vcmask 1040384   ;;  %vm405_vm4 = vcmask 1039360   ;;  %vm231_vm5 = vcmask 138240   ;;  %vm638_vm6 = vcmask 1043456  }
  0x85   :  { %s5096_s22 = sld [smem:[#allocation60_spill]]  ;;  %v3628_v13 = vsub.s32 4, %v3625_v9  ;;  %v3655_v24 = vsub.s32 2, %v3625_v9  ;;  %v3658_v25 = vsub.s32 3, %v3625_v9  ;;  %v3673_v32 = vsub.s32 1, %v3625_v9  ;;  %s5128_s30 = sld [smem:[#allocation62_spill]] }
  0x86   :  { %v3703_v42 = vsub.s32 5, %v3625_v9  ;;  %v3717_v49 = vsub.s32 0, %v3625_v9  ;;  %vm643_vm7 = vcmask 1046528   ;;  %vm623_vm8 = vcmask 1042432   ;;  %s3367_s5 = smov 7   ;;  %s3369_s13 = smov 120  }
  0x87   :  { %v3561_v0 = vld [vmem:[%s5095_s23 + $0x8] sm:$0x77]  ;;  %v3566_v1 = vld [vmem:[%s5095_s23] sm:$0x77]  ;;  %5097 = vst [vmem:[#allocation16_spill] sm:$0xff] %v3628_v13  ;;  %v3636_v18 = vrot.slane %v3630_v14, %v3628_v13  ;;  %v3640_v19 = vrot.slane %v3632_v15, %v3628_v13  ;;  %v3648_v22 = vrot.slane %v3644_v21, %v3628_v13  ;;  %v3652_v23 = vrot.slane %v3642_v20, %v3628_v13  ;;  %s3368_s23 = smov 121  }
  0x88   :  { %301 = vrot.lane.b32.xlu1 %v3561_v0, %s3355_s2  ;;  %297 = vrot.lane.b32.xlu0 %v3566_v1, %s3355_s2  ;;  %v222_v2 = vcombine.high %v3561_v0, %v3561_v0  ;;  %v221_v3 = vcombine.high %v3566_v1, %v3566_v1  ;;  %5099 = vst [vmem:[#allocation18_spill] sm:$0xff] %v3655_v24  ;;  %5100 = vst [vmem:[#allocation19_spill] sm:$0xff] %v3658_v25  ;;  %vm628_vm9 = vcmask 1045504   ;;  %vm442_vm10 = vcmask 924672   ;;  %s3370_s20 = smov 119  }
  0x89   :  { %5098 = vst [vmem:[#allocation17_spill] sm:$0xff] %v3652_v23  ;;  %v391_v28 = vcombine.low %v3636_v18, %v3640_v19  ;;  %v392_v29 = vcombine.low %v3648_v22, %v3652_v23  ;;  %v3666_v30 = vrot.slane %v3630_v14, %v3655_v24  ;;  %v3670_v31 = vrot.slane %v3642_v20, %v3655_v24 }
  0x8a   :  { %5101 = vst [vmem:[#allocation20_spill] sm:$0xff] %v3673_v32  ;;  %v3677_v33 = vrot.slane %v3630_v14, %v3658_v25  ;;  %v3681_v34 = vrot.slane %v3632_v15, %v3658_v25  ;;  %v3685_v35 = vrot.slane %v3632_v15, %v3655_v24  ;;  %v3692_v39 = vrot.slane %v3644_v21, %v3655_v24 }
  0x8b   :  { %v218_v6 = vld [vmem:[%s5096_s22] sm:$0xff]  ;;  %v3688_v38 = vmul.f32 %v391_v28, %v3566_v1  ;;  %v3696_v40 = vrot.slane %v3644_v21, %v3658_v25  ;;  %v3700_v41 = vrot.slane %v3642_v20, %v3658_v25  ;;  %5102 = vst [vmem:[#allocation21_spill] sm:$0xff] %v3703_v42  ;;  %v3708_v44 = vrot.slane %v3630_v14, %v3673_v32 }
  0x8c   :  { %303 = vrot.lane.b32.xlu1 %v222_v2, %s3355_s2  ;;  %334 = vrot.lane.b32.xlu0 %v3566_v1, %s3356_s17  ;;  %v3711_v45 = vmul.f32 %v392_v29, %v3561_v0  ;;  %5104 = vst [vmem:[#allocation23_spill] sm:$0xff] %v3717_v49  ;;  %v3721_v50 = vrot.slane %v3632_v15, %v3673_v32  ;;  %vm479_vm11 = vcmask 916480   ;;  %vm648_vm12 = vcmask 1041408  }
  0x8d   :  { %5103 = vst [vmem:[#allocation22_spill] sm:$0xff] %v3708_v44  ;;  %v3725_v53 = vrot.slane %v3644_v21, %v3673_v32  ;;  %v3729_v54 = vrot.slane %v3642_v20, %v3673_v32  ;;  %v3739_v58 = vrot.slane %v3632_v15, %v3703_v42  ;;  %v3763_v7 = vrot.slane %v3642_v20, %v3703_v42 }
  0x8e   :  { %vm516_vm13 = vcmask 908288   ;;  %vm653_vm14 = vcmask 1044480   ;;  %vm3364_vm15 = vmmov 1  }
  0x8f   :  { %5106 = vst [vmem:[#allocation25_spill] sm:$0xff] %v3763_v7 }
  0x90   :  { %336 = vrot.lane.b32.xlu1 %v221_v3, %s3356_s17  ;;  %299 = vrot.lane.b32.xlu0 %v221_v3, %s3355_s2 }
  0x94   :  { %340 = vrot.lane.b32.xlu1 %v222_v2, %s3356_s17  ;;  %338 = vrot.lane.b32.xlu0 %v3561_v0, %s3356_s17 }
  0x98   :  { %262 = vrot.lane.b32.xlu1 %v221_v3, %s3346_s3  ;;  %260 = vrot.lane.b32.xlu0 %v3566_v1, %s3346_s3 }
  0x9c   :  { %266 = vrot.lane.b32.xlu1 %v222_v2, %s3346_s3  ;;  %264 = vrot.lane.b32.xlu0 %v3561_v0, %s3346_s3 }
  0xa0   :  { %401 = vrot.lane.b32.xlu1 %v3561_v0, %s3357_s25  ;;  %399 = vrot.lane.b32.xlu0 %v221_v3, %s3357_s25 }
  0xa4   :  { %223 = vrot.lane.b32.xlu1 %v3566_v1, %s3358_s21  ;;  %403 = vrot.lane.b32.xlu0 %v222_v2, %s3357_s25 }
  0xa8   :  { %227 = vrot.lane.b32.xlu1 %v3561_v0, %s3358_s21  ;;  %225 = vrot.lane.b32.xlu0 %v221_v3, %s3358_s21 }
  0xac   :  { %397 = vrot.lane.b32.xlu1 %v3566_v1, %s3357_s25  ;;  %229 = vrot.lane.b32.xlu0 %v222_v2, %s3358_s21 }
  0xb0   :  { %438 = vrot.lane.b32.xlu1 %v3561_v0, %s3359_s27  ;;  %436 = vrot.lane.b32.xlu0 %v221_v3, %s3359_s27 }
  0xb4   :  { %434 = vrot.lane.b32.xlu1 %v3566_v1, %s3359_s27  ;;  %440 = vrot.lane.b32.xlu0 %v222_v2, %s3359_s27 }
  0xb8   :  { %475 = vrot.lane.b32.xlu1 %v3561_v0, %s3360_s26  ;;  %473 = vrot.lane.b32.xlu0 %v221_v3, %s3360_s26 }
  0xbc   :  { %471 = vrot.lane.b32.xlu1 %v3566_v1, %s3360_s26  ;;  %477 = vrot.lane.b32.xlu0 %v222_v2, %s3360_s26 }
  0xc0   :  { %512 = vrot.lane.b32.xlu1 %v3561_v0, %s3362_s4  ;;  %510 = vrot.lane.b32.xlu0 %v221_v3, %s3362_s4  ;;  %v3750_v0 = vrot.slane %v3630_v14, %v3717_v49 }
  0xc2   :  { %5105 = vst [vmem:[#allocation24_spill] sm:$0xff] %v3750_v0 }
  0xc4   :  { %508 = vrot.lane.b32.xlu1 %v3566_v1, %s3362_s4  ;;  %514 = vrot.lane.b32.xlu0 %v222_v2, %s3362_s4 }
  0xc8   :  { %660 = vperm.xlu0 %3195, %v218_v6   ;;  %v3759_v6 = vrot.slane %v3644_v21, %v3703_v42 }
  0xfa   :  { %v302_v8 = vpop.permute.xlu1 %301  ;;  %v298_v10 = vpop.permute.xlu0 %297 }
  0xfb   :  { %v313_v43 = vsel %vm305_vm0, 0.0, %v298_v10 }
  0xfc   :  { %v3734_v56 = vmul.f32 %v3666_v30, %v313_v43 }
  0xfe   :  { %v304_v11 = vpop.permute.xlu1 %303  ;;  %v335_v12 = vpop.permute.xlu0 %334 }
  0xff   :  { %v350_v46 = vsel %vm342_vm1, 0.0, %v335_v12  ;;  %v308_v57 = vsel %vm305_vm0, %v302_v8, %v304_v11 }
 0x100   :  { %v367_v59 = vmul.f32 %v3677_v33, %v350_v46  ;;  %v3771_v11 = vmul.f32 %v3670_v31, %v308_v57  ;;  %v3784_v46 = vrot.slane %v3644_v21, %v3717_v49 }
 0x102   :  { %v337_v16 = vpop.permute.xlu1 %336  ;;  %v300_v17 = vpop.permute.xlu0 %299 }
 0x103   :  { %v343_v47 = vsel %vm342_vm1, %v335_v12, %v337_v16  ;;  %v306_v48 = vsel %vm305_vm0, %v298_v10, %v300_v17  ;;  %v307_v63 = vsel %vm305_vm0, %v300_v17, %v302_v8  ;;  %v3767_v8 = vrot.slane %v3632_v15, %v3717_v49 }
 0x104   :  { %v368_v60 = vmul.f32 %v3681_v34, %v343_v47  ;;  %v3744_v61 = vmul.f32 %v3685_v35, %v306_v48  ;;  %v5030_v10 = vrot.slane %v3734_v56, 2  ;;  %v573_v17 = vrot.slane %v367_v59, 7 }
 0x105   :  { %v3788_v47 = vrot.slane %v3630_v14, %v3703_v42 }
 0x106   :  { %v341_v26 = vpop.permute.xlu1 %340  ;;  %v339_v27 = vpop.permute.xlu0 %338  ;;  %v562_v28 = vrot.slane %v3744_v61, 2  ;;  %v634_v55 = vsel %vm633_vm3, %v5030_v10, %v573_v17 }
 0x107   :  { %v345_v62 = vsel %vm342_vm1, %v339_v27, %v341_v26  ;;  %v344_v2 = vsel %vm342_vm1, %v337_v16, %v339_v27  ;;  %v574_v26 = vrot.slane %v368_v60, 7  ;;  %v3777_v27 = vmul.f32 %v3692_v39, %v307_v63 }
 0x108   :  { %v370_v12 = vmul.f32 %v3700_v41, %v345_v62  ;;  %v369_v29 = vmul.f32 %v3696_v40, %v344_v2  ;;  %v3797_v62 = vrot.slane %v3642_v20, %v3717_v49  ;;  %v564_v63 = vrot.slane %v3771_v11, 2 }
 0x10a   :  { %v263_v36 = vpop.permute.xlu1 %262  ;;  %v261_v37 = vpop.permute.xlu0 %260  ;;  %v576_v2 = vrot.slane %v370_v12, 7  ;;  %v575_v42 = vrot.slane %v369_v29, 7 }
 0x10b   :  { %v269_v43 = vsel %vm268_vm2, %v261_v37, %v263_v36  ;;  %v276_v48 = vsel %vm268_vm2, 0.0, %v261_v37  ;;  %v563_v37 = vrot.slane %v3777_v27, 2 }
 0x10c   :  { %v293_v25 = vmul.f32 %v3708_v44, %v276_v48 }
 0x10e   :  { %v267_v51 = vpop.permute.xlu1 %266  ;;  %v265_v52 = vpop.permute.xlu0 %264  ;;  %v549_v10 = vrot.slane %v293_v25, 5 }
 0x10f   :  { %v270_v57 = vsel %vm268_vm2, %v263_v36, %v265_v52  ;;  %v271_v4 = vsel %vm268_vm2, %v265_v52, %v267_v51  ;;  %v294_v36 = vmul.f32 %v3721_v50, %v269_v43 }
 0x110   :  { %v295_v11 = vmul.f32 %v3725_v53, %v270_v57  ;;  %v296_v51 = vmul.f32 %v3729_v54, %v271_v4 }
 0x111   :  { %v550_v57 = vrot.slane %v294_v36, 5 }
 0x112   :  { %v402_v3 = vpop.permute.xlu1 %401  ;;  %v3755_v5 = vpop.permute.xlu0 %399  ;;  %v551_v52 = vrot.slane %v295_v11, 5 }
 0x113   :  { %v407_v16 = vsel %vm405_vm4, %v3755_v5, %v402_v3 }
 0x114   :  { %v3793_v59 = vmul.f32 %v3739_v58, %v407_v16  ;;  %v635_v16 = vsel %vm633_vm3, %v562_v28, %v574_v26 }
 0x115   :  { %v640_v48 = vsel %vm638_vm6, %v635_v16, %v3688_v38 }
 0x116   :  { %v224_v60 = vpop.permute.xlu1 %223  ;;  %v404_v61 = vpop.permute.xlu0 %403  ;;  %v5107_v36 = vrot.slane %v3793_v59, 1 }
 0x117   :  { %v413_v1 = vsel %vm405_vm4, %v404_v61, 0.0  ;;  %v408_v12 = vsel %vm405_vm4, %v402_v3, %v404_v61  ;;  %v239_v27 = vsel %vm231_vm5, 0.0, %v224_v60  ;;  %v637_v3 = vsel %vm633_vm3, %v564_v63, %v576_v2 }
 0x118   :  { %v3815_v43 = vmul.f32 %v3763_v7, %v413_v1  ;;  %v3823_v4 = vmul.f32 %v3759_v6, %v408_v12  ;;  %v256_v32 = vmul.f32 %v3750_v0, %v239_v27  ;;  %v645_v12 = vsel %vm643_vm7, %v640_v48, %v5107_v36 }
 0x119   :  { %v5110_v36 = vcombine.low %v3711_v45, %v3711_v45 }
 0x11a   :  { %v228_v26 = vpop.permute.xlu1 %227  ;;  %v226_v24 = vpop.permute.xlu0 %225  ;;  %v5034_v49 = vrot.slane %v3815_v43, 1  ;;  %v624_v48 = vsel %vm623_vm8, %v256_v32, %v549_v10  ;;  %v5109_v32 = vcombine.low %v3688_v38, %v3688_v38 }
 0x11b   :  { %v232_v17 = vsel %vm231_vm5, %v224_v60, %v226_v24  ;;  %v233_v29 = vsel %vm231_vm5, %v226_v24, %v228_v26  ;;  %v636_v60 = vsel %vm633_vm3, %v563_v37, %v575_v42  ;;  %v552_v24 = vrot.slane %v296_v51, 5  ;;  %vm3940_vm3 = vmpackc.low %vm623_vm8, %vm3364_vm15 }
 0x11c   :  { %v257_v61 = vmul.f32 %v3767_v8, %v232_v17  ;;  %v258_v1 = vmul.f32 %v3784_v46, %v233_v29  ;;  %v593_v51 = vrot.slane %v3823_v4, 1  ;;  %v639_v10 = vsel %vm638_vm6, %v634_v55, %v5109_v32 }
 0x11e   :  { %v398_v16 = vpop.permute.xlu1 %397  ;;  %v230_v13 = vpop.permute.xlu0 %229  ;;  %v625_v2 = vsel %vm623_vm8, %v257_v61, %v550_v57  ;;  %v626_v42 = vsel %vm623_vm8, %v258_v1, %v551_v52  ;;  %v3845_v61 = vsub.s32 6, %v3625_v9  ;;  %v642_v52 = vsel %vm638_vm6, %v637_v3, %v3711_v45 }
 0x11f   :  { %v406_v17 = vsel %vm405_vm4, %v398_v16, %v3755_v5  ;;  %v234_v25 = vsel %vm231_vm5, %v228_v26, %v230_v13  ;;  %v630_v11 = vsel %vm628_vm9, %v625_v2, %v562_v28  ;;  %v631_v1 = vsel %vm628_vm9, %v626_v42, %v563_v37 }
 0x120   :  { %v3841_v27 = vmul.f32 %v3788_v47, %v406_v17  ;;  %v259_v29 = vmul.f32 %v3797_v62, %v234_v25  ;;  %v2860_v57 = vpack.c.bf16 %v645_v12, %v630_v11  ;;  %5108 = vst [vmem:[#allocation26_spill] sm:$0xff] %v3845_v61  ;;  %v647_v2 = vsel %vm643_vm7, %v642_v52, %v5034_v49  ;;  %v3937_v49 = vld [vmem:[#allocation9 + $0x38] ss:$0 sm:$0xff] }
 0x121   :  { %v5111_v3 = vrot.slane %v3734_v56, 2  ;;  %v3875_v25 = vsub.s32 7, %v3625_v9  ;;  %v3879_v56 = vrot.slane %v3632_v15, %v3845_v61  ;;  %v3888_v9 = vrot.slane %v3630_v14, %v3845_v61  ;;  %5119 = vst [vmem:[#allocation33_spill] sm:$0xff] %v3937_v49 }
 0x122   :  { %v591_v5 = vrot.slane %v3841_v27, 1  ;;  %v439_v13 = vpop.permute.xlu1 %438  ;;  %v437_v26 = vpop.permute.xlu0 %436  ;;  %2861 = vmatprep.subr.bf16.mxu0 %v2860_v57  ;;  %v627_v28 = vsel %vm623_vm8, %v259_v29, %v552_v24  ;;  %v641_v24 = vsel %vm638_vm6, %v636_v60, %v5110_v36  ;;  %vm663_vm6 = vcmask 220160  }
 0x123   :  { %v632_v16 = vsel %vm628_vm9, %v627_v28, %v564_v63  ;;  %v629_v37 = vsel %vm628_vm9, %v624_v48, %v5111_v3  ;;  %v646_v38 = vsel %vm643_vm7, %v641_v24, %v593_v51  ;;  %5112 = vst [vmem:[#allocation27_spill] sm:$0xff] %v3875_v25  ;;  %v444_v11 = vsel %vm442_vm10, %v437_v26, %v439_v13 }
 0x124   :  { %v2870_v12 = vpack.c.bf16 %v647_v2, %v632_v16  ;;  %v644_v63 = vsel %vm643_vm7, %v639_v10, %v591_v5  ;;  %v2872_v55 = vpack.c.bf16 %v646_v38, %v631_v1  ;;  %v3884_v42 = vrot.slane %v3632_v15, %v3875_v25 }
 0x125   :  { %v2862_v17 = vpack.c.bf16 %v644_v63, %v629_v37  ;;  %v3893_v28 = vrot.slane %v3644_v21, %v3845_v61  ;;  %v468_v1 = vmul.f32 %v3879_v56, %v444_v11  ;;  %v3900_v15 = vrot.slane %v3642_v20, %v3845_v61 }
 0x126   :  { %v435_v45 = vpop.permute.xlu1 %434  ;;  %v441_v60 = vpop.permute.xlu0 %440  ;;  %2871 = vmatprep.subr.bf16.mxu1 %v2870_v12  ;;  %v3904_v2 = vrot.slane %v3630_v14, %v3875_v25  ;;  %v3910_v10 = vrot.slane %v3644_v21, %v3875_v25  ;;  %v3914_v36 = vrot.slane %v3642_v20, %v3875_v25  ;;  %vm1000_vm7 = vcmask 588800  }
 0x127   :  { %2863 = vmatpush1.bf16.msra.mxu0 %v2862_v17  ;;  %2873 = vmatpush1.bf16.msra.mxu1 %v2872_v55  ;;  %v443_v48 = vsel %vm442_vm10, %v435_v45, %v437_v26  ;;  %v445_v16 = vsel %vm442_vm10, %v439_v13, %v441_v60  ;;  %5113 = vst [vmem:[#allocation28_spill] sm:$0xff] %v3900_v15  ;;  %v450_v26 = vsel %vm442_vm10, %v441_v60, 0.0  ;;  %v604_v38 = vrot.slane %v468_v1, 6  ;;  %v3925_v60 = vld [vmem:[#allocation9 + $0x28] ss:$0 sm:$0xff] }
 0x128   :  { %5114 = vst [vmem:[#allocation29_spill] sm:$0xff] %v3914_v36  ;;  %v467_v13 = vmul.f32 %v3888_v9, %v443_v48  ;;  %v469_v3 = vmul.f32 %v3893_v28, %v445_v16  ;;  %v470_v21 = vmul.f32 %v3900_v15, %v450_v26  ;;  %5115 = vst [vmem:[#allocation30_spill] sm:$0xff] %v3925_v60  ;;  %v5116_v1 = vrot.slane %v3793_v59, 1 }
 0x129   :  { %vm1632_vm8 = vcmask 64512   ;;  %vm2330_vm9 = vcmask 973824  }
 0x12a   :  { %v476_v29 = vpop.permute.xlu1 %475  ;;  %v474_v57 = vpop.permute.xlu0 %473  ;;  %v603_v11 = vrot.slane %v467_v13, 6  ;;  %v605_v48 = vrot.slane %v469_v3, 6  ;;  %v650_v16 = vsel %vm648_vm12, %v5116_v1, %v604_v38  ;;  %v606_v26 = vrot.slane %v470_v21, 6 }
 0x12b   :  { %v481_v52 = vsel %vm479_vm11, %v474_v57, %v476_v29  ;;  %v5122_v1 = vrot.slane %v3815_v43, 1 }
 0x12c   :  { %v505_v32 = vmul.f32 %v3884_v42, %v481_v52  ;;  %v649_v3 = vsel %vm648_vm12, %v591_v5, %v603_v11 }
 0x12e   :  { %v472_v24 = vpop.permute.xlu1 %471  ;;  %v478_v12 = vpop.permute.xlu0 %477  ;;  %v616_v17 = vrot.slane %v505_v32, 3 }
 0x12f   :  { %v480_v14 = vsel %vm479_vm11, %v472_v24, %v474_v57  ;;  %v482_v37 = vsel %vm479_vm11, %v476_v29, %v478_v12  ;;  %v487_v63 = vsel %vm479_vm11, %v478_v12, 0.0  ;;  %v3932_v24 = vld [vmem:[#allocation9 + $0x20] ss:$0 sm:$0xff]  ;;  %v3934_v12 = vld [vmem:[#allocation9 + $0x30] ss:$0 sm:$0xff] }
 0x130   :  { %v504_v20 = vmul.f32 %v3904_v2, %v480_v14  ;;  %v506_v55 = vmul.f32 %v3910_v10, %v482_v37  ;;  %v507_v45 = vmul.f32 %v3914_v36, %v487_v63  ;;  %5117 = vst [vmem:[#allocation31_spill] sm:$0xff] %v3932_v24  ;;  %5118 = vst [vmem:[#allocation32_spill] sm:$0xff] %v3934_v12 }
 0x131   :  { %v655_v63 = vsel %vm653_vm14, %v650_v16, %v616_v17  ;;  %v652_v16 = vsel %vm648_vm12, %v5122_v1, %v606_v26  ;;  %v217_v26 = vld [vmem:[#allocation2] sm:$0xff] }
 0x132   :  { %v513_v57 = vpop.permute.xlu1 %512  ;;  %v511_v29 = vpop.permute.xlu0 %510  ;;  %v615_v14 = vrot.slane %v504_v20, 3  ;;  %v617_v37 = vrot.slane %v506_v55, 3  ;;  %v618_v13 = vrot.slane %v507_v45, 3  ;;  %v651_v20 = vsel %vm648_vm12, %v593_v51, %v605_v48  ;;  %v826_v1 = vld [vmem:[%s5128_s30] sm:$0xff] }
 0x133   :  { %v518_v52 = vsel %vm516_vm13, %v511_v29, %v513_v57 }
 0x134   :  { %v542_v32 = vmul.f32 %v3925_v60, %v518_v52  ;;  %v654_v4 = vsel %vm653_vm14, %v649_v3, %v615_v14  ;;  %v656_v51 = vsel %vm653_vm14, %v651_v20, %v617_v37 }
 0x136   :  { %v2864_v38 = vpack.c.bf16 %v542_v32, %v655_v63  ;;  %v509_v21 = vpop.permute.xlu1 %508  ;;  %v515_v52 = vpop.permute.xlu0 %514  ;;  %v5123_v32 = vmov 0.0  }
 0x137   :  { %v517_v17 = vsel %vm516_vm13, %v509_v21, %v511_v29  ;;  %v519_v55 = vsel %vm516_vm13, %v513_v57, %v515_v52  ;;  %v524_v45 = vsel %vm516_vm13, %v515_v52, 0.0  ;;  %v657_v57 = vsel %vm653_vm14, %v652_v16, %v618_v13 }
 0x138   :  { %v541_v27 = vmul.f32 %v3932_v24, %v517_v17  ;;  %v543_v5 = vmul.f32 %v3934_v12, %v519_v55  ;;  %v544_v11 = vmul.f32 %v3937_v49, %v524_v45  ;;  %2866 = vmatprep.subr.msk.bf16.mxu0 %vm3940_vm3, %v2864_v38 }
 0x13a   :  { %v2867_v29 = vpack.c.bf16 %v541_v27, %v654_v4  ;;  %v2874_v48 = vpack.c.bf16 %v544_v11, %v657_v57  ;;  %v2877_v43 = vpack.c.bf16 %v543_v5, %v656_v51 }
 0x13c   :  { %2869 = vmatpush1.bf16.msk.msra.mxu0 %vm3940_vm3, %v2867_v29  ;;  %2876 = vmatprep.subr.msk.bf16.mxu1 %vm3940_vm3, %v2874_v48 }
 0x13d   :  { %2879 = vmatpush1.bf16.msk.msra.mxu1 %vm3940_vm3, %v2877_v43 }
 0x13f   :  { %2625 = vmatmul.mubr.msk.f32.vlgmr.msra.gmra.mrb[0].mxu0 %vm663_vm6, %v217_v26 }
 0x140   :  { %2628 = vmatmul.mubr.msk.f32.vlgmr.msra.gmra.mrb[0].mxu1 %vm663_vm6, %v217_v26  ;;  %1068 = vmatprep.mubr.f32.mxu0 %v5123_v32 }
 0x141   :  { %1139 = vmatprep.mubr.f32.mxu1 %v5123_v32 }
 0x147   :  { %v661_v14 = vpop.permute.xlu0 %660 }
 0x212   :  { %v745_v37 = vpop.f32.mrb[0].mxu0 }
 0x213   :  { %v746_v13 = vadd.f32 %v745_v37, %v661_v14  ;;  %v747_v63 = vpop.f32.mrb[1].mxu0  ;;  %v816_v3 = vpop.f32.mrb[0].mxu1 }
 0x214   :  { %v817_v38 = vadd.f32 %v816_v3, %v661_v14  ;;  %v818_v21 = vpop.f32.mrb[1].mxu1  ;;  %v748_v59 = vadd.f32 %v747_v63, %v661_v14 }
 0x215   :  { %v3972_v52 = vmax.f32 %v746_v13, 0.0  ;;  %v819_v55 = vadd.f32 %v818_v21, %v661_v14 }
 0x216   :  { %v3974_v20 = vmax.f32 %v817_v38, 0.0  ;;  %v3996_v17 = vmax.f32 %v748_v59, 0.0 }
 0x217   :  { %5124 = vst [vmem:[#allocation34_spill] sm:$0xff] %v3972_v52  ;;  %831 = vrot.lane.b32.xlu1 %v3972_v52, %s3358_s21  ;;  %v4002_v45 = vmax.f32 %v819_v55, 0.0 }
 0x218   :  { %5125 = vst [vmem:[#allocation35_spill] sm:$0xff] %v3974_v20  ;;  %835 = vrot.lane.b32.xlu0 %v3974_v20, %s3358_s21  ;;  %5126 = vst [vmem:[#allocation36_spill] sm:$0xff] %v3996_v17 }
 0x219   :  { %5127 = vst [vmem:[#allocation37_spill] sm:$0xff] %v4002_v45 }
 0x21b   :  { %919 = vrot.lane.b32.xlu1 %v3974_v20, %s3357_s25 }
 0x21c   :  { %851 = vrot.lane.b32.xlu0 %v3972_v52, %s3346_s3 }
 0x21f   :  { %915 = vrot.lane.b32.xlu1 %v3972_v52, %s3357_s25 }
 0x220   :  { %855 = vrot.lane.b32.xlu0 %v3974_v20, %s3346_s3 }
 0x223   :  { %939 = vrot.lane.b32.xlu1 %v3974_v20, %s3359_s27 }
 0x224   :  { %871 = vrot.lane.b32.xlu0 %v3972_v52, %s3355_s2 }
 0x227   :  { %955 = vrot.lane.b32.xlu1 %v3972_v52, %s3360_s26 }
 0x228   :  { %875 = vrot.lane.b32.xlu0 %v3974_v20, %s3355_s2 }
 0x22b   :  { %833 = vrot.lane.b32.xlu1 %v3996_v17, %s3358_s21 }
 0x22c   :  { %891 = vrot.lane.b32.xlu0 %v3972_v52, %s3356_s17 }
 0x22f   :  { %837 = vrot.lane.b32.xlu1 %v4002_v45, %s3358_s21 }
 0x230   :  { %895 = vrot.lane.b32.xlu0 %v3974_v20, %s3356_s17 }
 0x233   :  { %853 = vrot.lane.b32.xlu1 %v3996_v17, %s3346_s3 }
 0x234   :  { %959 = vrot.lane.b32.xlu0 %v3974_v20, %s3360_s26 }
 0x237   :  { %857 = vrot.lane.b32.xlu1 %v4002_v45, %s3346_s3 }
 0x238   :  { %935 = vrot.lane.b32.xlu0 %v3972_v52, %s3359_s27 }
 0x23b   :  { %873 = vrot.lane.b32.xlu1 %v3996_v17, %s3355_s2 }
 0x23c   :  { %917 = vrot.lane.b32.xlu0 %v3996_v17, %s3357_s25 }
 0x23f   :  { %877 = vrot.lane.b32.xlu1 %v4002_v45, %s3355_s2 }
 0x240   :  { %921 = vrot.lane.b32.xlu0 %v4002_v45, %s3357_s25 }
 0x243   :  { %893 = vrot.lane.b32.xlu1 %v3996_v17, %s3356_s17 }
 0x244   :  { %937 = vrot.lane.b32.xlu0 %v3996_v17, %s3359_s27 }
 0x247   :  { %897 = vrot.lane.b32.xlu1 %v4002_v45, %s3356_s17 }
 0x248   :  { %941 = vrot.lane.b32.xlu0 %v4002_v45, %s3359_s27 }
 0x24b   :  { %957 = vrot.lane.b32.xlu1 %v3996_v17, %s3360_s26 }
 0x24c   :  { %977 = vrot.lane.b32.xlu0 %v3996_v17, %s3362_s4 }
 0x24f   :  { %961 = vrot.lane.b32.xlu1 %v4002_v45, %s3360_s26 }
 0x250   :  { %981 = vrot.lane.b32.xlu0 %v4002_v45, %s3362_s4 }
 0x253   :  { %979 = vrot.lane.b32.xlu1 %v3974_v20, %s3362_s4 }
 0x254   :  { %997 = vperm.xlu0 %3195, %v826_v1  }
 0x257   :  { %975 = vrot.lane.b32.xlu1 %v3972_v52, %s3362_s4 }
 0x289   :  { %v832_v16 = vpop.permute.xlu1 %831 }
 0x28a   :  { %v836_v27 = vpop.permute.xlu0 %835  ;;  %v846_v38 = vsel %vm231_vm5, 0.0, %v832_v16 }
 0x28b   :  { %v847_v24 = vmul.f32 %v846_v38, %v3750_v0 }
 0x28d   :  { %v4047_v5 = vpop.permute.xlu1 %919 }
 0x28e   :  { %v852_v11 = vpop.permute.xlu0 %851 }
 0x28f   :  { %v866_v63 = vsel %vm268_vm2, 0.0, %v852_v11 }
 0x290   :  { %v867_v59 = vmul.f32 %v866_v63, %v3708_v44 }
 0x291   :  { %v916_v4 = vpop.permute.xlu1 %915 }
 0x292   :  { %v856_v51 = vpop.permute.xlu0 %855  ;;  %v2882_v36 = vpack.c.bf16 %v867_v59, %v847_v24 }
 0x295   :  { %v4049_v57 = vpop.permute.xlu1 %939 }
 0x296   :  { %v872_v29 = vpop.permute.xlu0 %871 }
 0x299   :  { %v4051_v48 = vpop.permute.xlu1 %955 }
 0x29a   :  { %v876_v43 = vpop.permute.xlu0 %875 }
 0x29d   :  { %v834_v26 = vpop.permute.xlu1 %833 }
 0x29e   :  { %v892_v14 = vpop.permute.xlu0 %891  ;;  %v839_v3 = vsel %vm231_vm5, %v832_v16, %v834_v26  ;;  %v840_v60 = vsel %vm231_vm5, %v834_v26, %v836_v27 }
 0x29f   :  { %v848_v25 = vmul.f32 %v839_v3, %v3767_v8 }
 0x2a1   :  { %v838_v37 = vpop.permute.xlu1 %837 }
 0x2a2   :  { %v896_v13 = vpop.permute.xlu0 %895  ;;  %v841_v12 = vsel %vm231_vm5, %v836_v27, %v838_v37 }
 0x2a3   :  { %v850_v3 = vmul.f32 %v841_v12, %v3797_v62 }
 0x2a5   :  { %v854_v21 = vpop.permute.xlu1 %853 }
 0x2a6   :  { %v859_v55 = vsel %vm268_vm2, %v852_v11, %v854_v21  ;;  %v4058_v1 = vpop.permute.xlu0 %959  ;;  %v860_v61 = vsel %vm268_vm2, %v854_v21, %v856_v51 }
 0x2a7   :  { %v868_v32 = vmul.f32 %v859_v55, %v3721_v50  ;;  %v869_v63 = vmul.f32 %v860_v61, %v3725_v53  ;;  %v849_v55 = vmul.f32 %v840_v60, %v3784_v46  ;;  %v906_v61 = vsel %vm342_vm1, 0.0, %v892_v14 }
 0x2a8   :  { %v907_v60 = vmul.f32 %v906_v61, %v3677_v33 }
 0x2a9   :  { %v858_v16 = vpop.permute.xlu1 %857  ;;  %v2880_v49 = vpack.c.bf16 %v868_v32, %v848_v25  ;;  %v2898_v0 = vpack.c.bf16 %v869_v63, %v849_v55  ;;  %v886_v32 = vsel %vm305_vm0, 0.0, %v872_v29  ;;  %v912_v55 = vmul.f32 %v3996_v17, %v3640_v19 }
 0x2aa   :  { %v861_v11 = vsel %vm268_vm2, %v856_v51, %v858_v16  ;;  %v936_v44 = vpop.permute.xlu0 %935  ;;  %v887_v51 = vmul.f32 %v886_v32, %v3666_v30 }
 0x2ab   :  { %v870_v21 = vmul.f32 %v861_v11, %v3729_v54  ;;  %2881 = vmatprep.subr.bf16.mxu0 %v2880_v49 }
 0x2ac   :  { %2883 = vmatpush1.bf16.msra.mxu0 %v2882_v36 }
 0x2ad   :  { %v874_v38 = vpop.permute.xlu1 %873  ;;  %v2896_v37 = vpack.c.bf16 %v870_v21, %v850_v3 }
 0x2ae   :  { %v918_v27 = vpop.permute.xlu0 %917  ;;  %v879_v12 = vsel %vm305_vm0, %v872_v29, %v874_v38  ;;  %v880_v61 = vsel %vm305_vm0, %v874_v38, %v876_v43 }
 0x2af   :  { %2897 = vmatprep.subr.bf16.mxu1 %v2896_v37  ;;  %v924_v49 = vsel %vm405_vm4, %v918_v27, %v4047_v5  ;;  %v888_v26 = vmul.f32 %v879_v12, %v3685_v35  ;;  %v2886_v37 = vpack.c.bf16 %v907_v60, %v887_v51  ;;  %v889_v51 = vmul.f32 %v880_v61, %v3692_v39 }
 0x2b0   :  { %2899 = vmatpush1.bf16.msra.mxu1 %v2898_v0  ;;  %v923_v0 = vsel %vm405_vm4, %v916_v4, %v918_v27  ;;  %v932_v63 = vmul.f32 %v924_v49, %v3739_v58 }
 0x2b1   :  { %v878_v25 = vpop.permute.xlu1 %877  ;;  %v931_v4 = vmul.f32 %v923_v0, %v3788_v47 }
 0x2b2   :  { %v922_v24 = vpop.permute.xlu0 %921  ;;  %v881_v21 = vsel %vm305_vm0, %v876_v43, %v878_v25  ;;  %v2888_v38 = vpack.c.bf16 %v932_v63, %v912_v55 }
 0x2b3   :  { %v930_v11 = vsel %vm405_vm4, %v922_v24, 0.0  ;;  %v925_v32 = vsel %vm405_vm4, %v4047_v5, %v922_v24  ;;  %v890_v60 = vmul.f32 %v881_v21, %v3670_v31 }
 0x2b4   :  { %v934_v12 = vmul.f32 %v930_v11, %v3763_v7  ;;  %v933_v0 = vmul.f32 %v925_v32, %v3759_v6 }
 0x2b5   :  { %v894_v36 = vpop.permute.xlu1 %893 }
 0x2b6   :  { %v899_v59 = vsel %vm342_vm1, %v892_v14, %v894_v36  ;;  %v938_v16 = vpop.permute.xlu0 %937  ;;  %v900_v29 = vsel %vm342_vm1, %v894_v36, %v896_v13 }
 0x2b7   :  { %v908_v3 = vmul.f32 %v899_v59, %v3681_v34  ;;  %v909_v49 = vmul.f32 %v900_v29, %v3696_v40  ;;  %v911_v59 = vmul.f32 %v3972_v52, %v3636_v18  ;;  %v943_v5 = vsel %vm442_vm10, %v936_v44, %v938_v16 }
 0x2b8   :  { %v944_v24 = vsel %vm442_vm10, %v938_v16, %v4049_v57  ;;  %v951_v16 = vmul.f32 %v943_v5, %v3888_v9 }
 0x2b9   :  { %v898_v14 = vpop.permute.xlu1 %897  ;;  %v2884_v27 = vpack.c.bf16 %v908_v3, %v888_v26  ;;  %v2890_v26 = vpack.c.bf16 %v931_v4, %v911_v59  ;;  %v2902_v3 = vpack.c.bf16 %v909_v49, %v889_v51 }
 0x2ba   :  { %v901_v36 = vsel %vm342_vm1, %v896_v13, %v898_v14  ;;  %v942_v25 = vpop.permute.xlu0 %941  ;;  %v914_v13 = vmul.f32 %v4002_v45, %v3652_v23  ;;  %v913_v14 = vmul.f32 %v3974_v20, %v3648_v22  ;;  %v5136_v20 = vld [vmem:[#allocation24_spill] sm:$0xff] }
 0x2bb   :  { %v910_v43 = vmul.f32 %v901_v36, %v3700_v41  ;;  %2885 = vmatprep.subr.bf16.mxu0 %v2884_v27  ;;  %v950_v27 = vsel %vm442_vm10, %v942_v25, 0.0 }
 0x2bc   :  { %2887 = vmatpush1.bf16.msra.mxu0 %v2886_v37  ;;  %v2904_v55 = vpack.c.bf16 %v934_v12, %v914_v13  ;;  %v952_v37 = vmul.f32 %v944_v24, %v3879_v56  ;;  %v2906_v36 = vpack.c.bf16 %v933_v0, %v913_v14  ;;  %v954_v51 = vmul.f32 %v950_v27, %v3900_v15  ;;  %v5133_v14 = vld [vmem:[#allocation31_spill] sm:$0xff] }
 0x2bd   :  { %2889 = vmatprep.subr.bf16.mxu0 %v2888_v38  ;;  %v958_v11 = vpop.permute.xlu1 %957  ;;  %v2900_v29 = vpack.c.bf16 %v910_v43, %v890_v60  ;;  %v5134_v27 = vmov 0.0  }
 0x2be   :  { %v963_v63 = vsel %vm479_vm11, %v4051_v48, %v958_v11  ;;  %v964_v44 = vsel %vm479_vm11, %v958_v11, %v4058_v1  ;;  %v978_v21 = vpop.permute.xlu0 %977  ;;  %v945_v48 = vsel %vm442_vm10, %v4049_v57, %v942_v25  ;;  %v5129_v25 = vld [vmem:[#allocation29_spill] sm:$0xff] }
 0x2bf   :  { %v971_v61 = vmul.f32 %v963_v63, %v3904_v2  ;;  %v972_v4 = vmul.f32 %v964_v44, %v3884_v42  ;;  %2901 = vmatprep.subr.bf16.mxu1 %v2900_v29  ;;  %v953_v38 = vmul.f32 %v945_v48, %v3893_v28  ;;  %v5130_v11 = vld [vmem:[#allocation33_spill] sm:$0xff]  ;;  %v5131_v63 = vld [vmem:[#allocation30_spill] sm:$0xff] }
 0x2c0   :  { %2891 = vmatpush1.bf16.msra.mxu0 %v2890_v26  ;;  %2903 = vmatpush1.bf16.msra.mxu1 %v2902_v3 }
 0x2c1   :  { %v2894_v32 = vpack.c.bf16 %v971_v61, %v951_v16  ;;  %2905 = vmatprep.subr.bf16.mxu1 %v2904_v55  ;;  %v962_v12 = vpop.permute.xlu1 %961  ;;  %v2892_v49 = vpack.c.bf16 %v972_v4, %v952_v37  ;;  %v5132_v16 = vld [vmem:[#allocation32_spill] sm:$0xff] }
 0x2c2   :  { %v965_v59 = vsel %vm479_vm11, %v4058_v1, %v962_v12  ;;  %v970_v60 = vsel %vm479_vm11, %v962_v12, 0.0  ;;  %v982_v43 = vpop.permute.xlu0 %981  ;;  %v825_v4 = vld [vmem:[#allocation4] sm:$0xff] }
 0x2c3   :  { %v973_v57 = vmul.f32 %v965_v59, %v3910_v10  ;;  %v974_v5 = vmul.f32 %v970_v60, %v5129_v25  ;;  %2893 = vmatprep.subr.bf16.mxu0 %v2892_v49  ;;  %v990_v24 = vsel %vm516_vm13, %v982_v43, 0.0 }
 0x2c4   :  { %2895 = vmatpush1.bf16.msra.mxu0 %v2894_v32  ;;  %2907 = vmatpush1.bf16.msra.mxu1 %v2906_v36  ;;  %v994_v29 = vmul.f32 %v5130_v11, %v990_v24 }
 0x2c5   :  { %v2910_v13 = vpack.c.bf16 %v973_v57, %v953_v38  ;;  %v980_v26 = vpop.permute.xlu1 %979  ;;  %v2908_v0 = vpack.c.bf16 %v974_v5, %v954_v51 }
 0x2c6   :  { %v984_v1 = vsel %vm516_vm13, %v978_v21, %v980_v26  ;;  %v985_v3 = vsel %vm516_vm13, %v980_v26, %v982_v43 }
 0x2c7   :  { %v992_v44 = vmul.f32 %v5131_v63, %v984_v1  ;;  %2909 = vmatprep.subr.bf16.mxu1 %v2908_v0  ;;  %v993_v37 = vmul.f32 %v5132_v16, %v985_v3 }
 0x2c8   :  { %2911 = vmatpush1.bf16.msra.mxu1 %v2910_v13  ;;  %v1151_v13 = vld [vmem:[%s5007_s6] sm:$0xff] }
 0x2c9   :  { %1091 = vmatprep.subr.mxu1 %v994_v29  ;;  %v976_v55 = vpop.permute.xlu1 %975  ;;  %1020 = vmatprep.subr.mxu0 %v992_v44 }
 0x2ca   :  { %v983_v61 = vsel %vm516_vm13, %v976_v55, %v978_v21 }
 0x2cb   :  { %v991_v48 = vmul.f32 %v5133_v14, %v983_v61 }
 0x2cc   :  { %1092 = vmatpush1.msra.mxu1 %v993_v37 }
 0x2cd   :  { %1021 = vmatpush1.msra.mxu0 %v991_v48  ;;  %2630 = vmatmul.mubr.msk.f32.vlgmr.msra.gmra.mrb[2].mxu1 %vm1000_vm7, %v825_v4 }
 0x2ce   :  { %2629 = vmatmul.mubr.msk.f32.vlgmr.msra.gmra.mrb[2].mxu0 %vm1000_vm7, %v825_v4  ;;  %1463 = vmatprep.mubr.f32.mxu1 %v5134_v27 }
 0x2cf   :  { %1392 = vmatprep.mubr.f32.mxu0 %v5134_v27 }
 0x2d3   :  { %v998_v32 = vpop.permute.xlu0 %997 }
 0x3a0   :  { %v1141_v12 = vpop.f32.mrb[2].mxu1 }
 0x3a1   :  { %v1142_v49 = vadd.f32 %v1141_v12, %v998_v32  ;;  %v1070_v36 = vpop.f32.mrb[2].mxu0  ;;  %v1143_v59 = vpop.f32.mrb[3].mxu1 }
 0x3a2   :  { %v1071_v21 = vadd.f32 %v1070_v36, %v998_v32  ;;  %v1072_v60 = vpop.f32.mrb[3].mxu0  ;;  %v1144_v57 = vadd.f32 %v1143_v59, %v998_v32 }
 0x3a3   :  { %v4138_v43 = vmax.f32 %v1142_v49, 0.0  ;;  %v1073_v51 = vadd.f32 %v1072_v60, %v998_v32 }
 0x3a4   :  { %v4140_v38 = vmax.f32 %v1071_v21, 0.0  ;;  %v4164_v24 = vmax.f32 %v1144_v57, 0.0  ;;  %v5135_v21 = vld [vmem:[#allocation22_spill] sm:$0xff] }
 0x3a5   :  { %1244 = vrot.lane.b32.xlu0 %v4138_v43, %s3357_s25  ;;  %v4158_v5 = vmax.f32 %v1073_v51, 0.0 }
 0x3a6   :  { %1156 = vrot.lane.b32.xlu1 %v4140_v38, %s3358_s21 }
 0x3a9   :  { %1240 = vrot.lane.b32.xlu0 %v4140_v38, %s3357_s25 }
 0x3aa   :  { %1160 = vrot.lane.b32.xlu1 %v4138_v43, %s3358_s21 }
 0x3ad   :  { %1264 = vrot.lane.b32.xlu0 %v4138_v43, %s3359_s27 }
 0x3ae   :  { %1176 = vrot.lane.b32.xlu1 %v4140_v38, %s3346_s3 }
 0x3b1   :  { %1280 = vrot.lane.b32.xlu0 %v4140_v38, %s3360_s26 }
 0x3b2   :  { %1180 = vrot.lane.b32.xlu1 %v4138_v43, %s3346_s3 }
 0x3b5   :  { %1158 = vrot.lane.b32.xlu0 %v4158_v5, %s3358_s21 }
 0x3b6   :  { %1196 = vrot.lane.b32.xlu1 %v4140_v38, %s3355_s2 }
 0x3b9   :  { %1162 = vrot.lane.b32.xlu0 %v4164_v24, %s3358_s21 }
 0x3ba   :  { %1200 = vrot.lane.b32.xlu1 %v4138_v43, %s3355_s2 }
 0x3bd   :  { %1178 = vrot.lane.b32.xlu0 %v4158_v5, %s3346_s3 }
 0x3be   :  { %1216 = vrot.lane.b32.xlu1 %v4140_v38, %s3356_s17 }
 0x3c1   :  { %1182 = vrot.lane.b32.xlu0 %v4164_v24, %s3346_s3 }
 0x3c2   :  { %1220 = vrot.lane.b32.xlu1 %v4138_v43, %s3356_s17 }
 0x3c5   :  { %1198 = vrot.lane.b32.xlu0 %v4158_v5, %s3355_s2 }
 0x3c6   :  { %1284 = vrot.lane.b32.xlu1 %v4138_v43, %s3360_s26 }
 0x3c9   :  { %1202 = vrot.lane.b32.xlu0 %v4164_v24, %s3355_s2 }
 0x3ca   :  { %1260 = vrot.lane.b32.xlu1 %v4140_v38, %s3359_s27 }
 0x3cd   :  { %1218 = vrot.lane.b32.xlu0 %v4158_v5, %s3356_s17 }
 0x3ce   :  { %1242 = vrot.lane.b32.xlu1 %v4158_v5, %s3357_s25 }
 0x3d1   :  { %1222 = vrot.lane.b32.xlu0 %v4164_v24, %s3356_s17 }
 0x3d2   :  { %1246 = vrot.lane.b32.xlu1 %v4164_v24, %s3357_s25 }
 0x3d5   :  { %1282 = vrot.lane.b32.xlu0 %v4158_v5, %s3360_s26 }
 0x3d6   :  { %1262 = vrot.lane.b32.xlu1 %v4158_v5, %s3359_s27 }
 0x3d9   :  { %1286 = vrot.lane.b32.xlu0 %v4164_v24, %s3360_s26 }
 0x3da   :  { %1266 = vrot.lane.b32.xlu1 %v4164_v24, %s3359_s27 }
 0x3dd   :  { %1304 = vrot.lane.b32.xlu0 %v4138_v43, %s3362_s4 }
 0x3de   :  { %1302 = vrot.lane.b32.xlu1 %v4158_v5, %s3362_s4 }
 0x3e1   :  { %1300 = vrot.lane.b32.xlu0 %v4140_v38, %s3362_s4 }
 0x3e2   :  { %1306 = vrot.lane.b32.xlu1 %v4164_v24, %s3362_s4 }
 0x3e6   :  { %1322 = vperm.xlu1 %3196, %v1151_v13  }
 0x417   :  { %v4213_v26 = vpop.permute.xlu0 %1244 }
 0x418   :  { %v1157_v0 = vpop.permute.xlu1 %1156 }
 0x419   :  { %v1171_v36 = vsel %vm231_vm5, 0.0, %v1157_v0 }
 0x41a   :  { %v1172_v17 = vmul.f32 %v1171_v36, %v5136_v20 }
 0x41b   :  { %v1241_v1 = vpop.permute.xlu0 %1240 }
 0x41c   :  { %v1161_v29 = vpop.permute.xlu1 %1160 }
 0x41f   :  { %v4215_v3 = vpop.permute.xlu0 %1264 }
 0x420   :  { %v1177_v44 = vpop.permute.xlu1 %1176 }
 0x421   :  { %v1191_v12 = vsel %vm268_vm2, 0.0, %v1177_v44 }
 0x422   :  { %v1192_v60 = vmul.f32 %v1191_v12, %v5135_v21 }
 0x423   :  { %v4217_v55 = vpop.permute.xlu0 %1280 }
 0x424   :  { %v1181_v37 = vpop.permute.xlu1 %1180  ;;  %v2914_v14 = vpack.c.bf16 %v1192_v60, %v1172_v17 }
 0x427   :  { %v1159_v61 = vpop.permute.xlu0 %1158 }
 0x428   :  { %v1197_v4 = vpop.permute.xlu1 %1196  ;;  %v1164_v49 = vsel %vm231_vm5, %v1157_v0, %v1159_v61  ;;  %v1165_v11 = vsel %vm231_vm5, %v1159_v61, %v1161_v29 }
 0x429   :  { %v1173_v13 = vmul.f32 %v1164_v49, %v3767_v8 }
 0x42b   :  { %v1163_v48 = vpop.permute.xlu0 %1162 }
 0x42c   :  { %v1201_v32 = vpop.permute.xlu1 %1200  ;;  %v1166_v52 = vsel %vm231_vm5, %v1161_v29, %v1163_v48 }
 0x42d   :  { %v1175_v49 = vmul.f32 %v1166_v52, %v3797_v62 }
 0x42f   :  { %v1179_v59 = vpop.permute.xlu0 %1178 }
 0x430   :  { %v1184_v51 = vsel %vm268_vm2, %v1177_v44, %v1179_v59  ;;  %v1217_v57 = vpop.permute.xlu1 %1216  ;;  %v1185_v27 = vsel %vm268_vm2, %v1179_v59, %v1181_v37 }
 0x431   :  { %v1193_v45 = vmul.f32 %v1184_v51, %v3721_v50  ;;  %v1194_v12 = vmul.f32 %v1185_v27, %v3725_v53  ;;  %v1174_v51 = vmul.f32 %v1165_v11, %v3784_v46  ;;  %v1211_v27 = vsel %vm305_vm0, 0.0, %v1197_v4 }
 0x432   :  { %v1212_v11 = vmul.f32 %v1211_v27, %v3666_v30 }
 0x433   :  { %v1183_v16 = vpop.permute.xlu0 %1182  ;;  %v2912_v0 = vpack.c.bf16 %v1193_v45, %v1173_v13  ;;  %v2930_v20 = vpack.c.bf16 %v1194_v12, %v1174_v51  ;;  %v1231_v45 = vsel %vm342_vm1, 0.0, %v1217_v57  ;;  %v1237_v51 = vmul.f32 %v4158_v5, %v3640_v19 }
 0x434   :  { %v1186_v44 = vsel %vm268_vm2, %v1181_v37, %v1183_v16  ;;  %v1221_v21 = vpop.permute.xlu1 %1220  ;;  %v1232_v37 = vmul.f32 %v1231_v45, %v3677_v33 }
 0x435   :  { %v1195_v59 = vmul.f32 %v1186_v44, %v3729_v54  ;;  %2913 = vmatprep.subr.bf16.mxu0 %v2912_v0 }
 0x436   :  { %2915 = vmatpush1.bf16.msra.mxu0 %v2914_v14 }
 0x437   :  { %v1199_v36 = vpop.permute.xlu0 %1198  ;;  %v2928_v48 = vpack.c.bf16 %v1195_v59, %v1175_v49 }
 0x438   :  { %v4235_v29 = vpop.permute.xlu1 %1284  ;;  %v1204_v52 = vsel %vm305_vm0, %v1197_v4, %v1199_v36  ;;  %v1205_v14 = vsel %vm305_vm0, %v1199_v36, %v1201_v32 }
 0x439   :  { %2929 = vmatprep.subr.bf16.mxu1 %v2928_v48  ;;  %v1213_v0 = vmul.f32 %v1204_v52, %v3685_v35  ;;  %v1214_v27 = vmul.f32 %v1205_v14, %v3692_v39 }
 0x43a   :  { %2931 = vmatpush1.bf16.msra.mxu1 %v2930_v20 }
 0x43b   :  { %v1203_v17 = vpop.permute.xlu0 %1202 }
 0x43c   :  { %v1261_v16 = vpop.permute.xlu1 %1260  ;;  %v1206_v49 = vsel %vm305_vm0, %v1201_v32, %v1203_v17 }
 0x43d   :  { %v1215_v32 = vmul.f32 %v1206_v49, %v3670_v31 }
 0x43f   :  { %v1219_v61 = vpop.permute.xlu0 %1218 }
 0x440   :  { %v1224_v60 = vsel %vm342_vm1, %v1217_v57, %v1219_v61  ;;  %v1225_v13 = vsel %vm342_vm1, %v1219_v61, %v1221_v21  ;;  %v1243_v20 = vpop.permute.xlu1 %1242  ;;  %v2918_v57 = vpack.c.bf16 %v1232_v37, %v1212_v11  ;;  %v1236_v11 = vmul.f32 %v4140_v38, %v3636_v18 }
 0x441   :  { %v1233_v12 = vmul.f32 %v1224_v60, %v3681_v34  ;;  %v1248_v44 = vsel %vm405_vm4, %v1241_v1, %v1243_v20  ;;  %v1249_v4 = vsel %vm405_vm4, %v1243_v20, %v4213_v26  ;;  %v1234_v36 = vmul.f32 %v1225_v13, %v3696_v40 }
 0x442   :  { %v1257_v59 = vmul.f32 %v1249_v4, %v3739_v58  ;;  %v1256_v52 = vmul.f32 %v1248_v44, %v3788_v47  ;;  %v1238_v20 = vmul.f32 %v4138_v43, %v3648_v22 }
 0x443   :  { %v1223_v48 = vpop.permute.xlu0 %1222  ;;  %v2916_v45 = vpack.c.bf16 %v1233_v12, %v1213_v0  ;;  %v2934_v13 = vpack.c.bf16 %v1234_v36, %v1214_v27 }
 0x444   :  { %v1226_v1 = vsel %vm342_vm1, %v1221_v21, %v1223_v48  ;;  %v1247_v61 = vpop.permute.xlu1 %1246  ;;  %v2920_v60 = vpack.c.bf16 %v1257_v59, %v1237_v51  ;;  %v1239_v21 = vmul.f32 %v4164_v24, %v3652_v23  ;;  %v2922_v44 = vpack.c.bf16 %v1256_v52, %v1236_v11  ;;  %v5170_v23 = vld [vmem:[#allocation22_spill] sm:$0xff] }
 0x445   :  { %v1235_v17 = vmul.f32 %v1226_v1, %v3700_v41  ;;  %v1250_v5 = vsel %vm405_vm4, %v4213_v26, %v1247_v61  ;;  %v1255_v37 = vsel %vm405_vm4, %v1247_v61, 0.0  ;;  %2917 = vmatprep.subr.bf16.mxu0 %v2916_v45 }
 0x446   :  { %v1259_v14 = vmul.f32 %v1255_v37, %v3763_v7  ;;  %2919 = vmatpush1.bf16.msra.mxu0 %v2918_v57  ;;  %v1258_v0 = vmul.f32 %v1250_v5, %v3759_v6 }
 0x447   :  { %v1283_v12 = vpop.permute.xlu0 %1282  ;;  %2921 = vmatprep.subr.bf16.mxu0 %v2920_v60  ;;  %v2932_v26 = vpack.c.bf16 %v1235_v17, %v1215_v32 }
 0x448   :  { %v1288_v4 = vsel %vm479_vm11, %v4217_v55, %v1283_v12  ;;  %v1289_v38 = vsel %vm479_vm11, %v1283_v12, %v4235_v29  ;;  %v1263_v49 = vpop.permute.xlu1 %1262  ;;  %v2936_v59 = vpack.c.bf16 %v1259_v14, %v1239_v21  ;;  %v2938_v55 = vpack.c.bf16 %v1258_v0, %v1238_v20  ;;  %v168_v12 = vld [vmem:[%s5019_s18 + $0x88] sm:$0xff] }
 0x449   :  { %v1296_v24 = vmul.f32 %v1288_v4, %v3904_v2  ;;  %v1297_v51 = vmul.f32 %v1289_v38, %v3884_v42  ;;  %v1268_v43 = vsel %vm442_vm10, %v1261_v16, %v1263_v49  ;;  %v1269_v57 = vsel %vm442_vm10, %v1263_v49, %v4215_v3  ;;  %2933 = vmatprep.subr.bf16.mxu1 %v2932_v26  ;;  %v152_v4 = vld [vmem:[%s5019_s18 + $0x8] sm:$0xff] }
 0x44a   :  { %v1276_v36 = vmul.f32 %v1268_v43, %v3888_v9  ;;  %v1277_v48 = vmul.f32 %v1269_v57, %v3879_v56  ;;  %2923 = vmatpush1.bf16.msra.mxu0 %v2922_v44  ;;  %2935 = vmatpush1.bf16.msra.mxu1 %v2934_v13  ;;  %v151_v44 = vld [vmem:[%s5019_s18] sm:$0xff] }
 0x44b   :  { %v1287_v45 = vpop.permute.xlu0 %1286  ;;  %2937 = vmatprep.subr.bf16.mxu1 %v2936_v59  ;;  %v200_v59 = vld [vmem:[%s5019_s18 + $0x188] sm:$0xff]  ;;  %v5137_v43 = vld [vmem:[#allocation31_spill] sm:$0xff] }
 0x44c   :  { %v2926_v27 = vpack.c.bf16 %v1296_v24, %v1276_v36  ;;  %v1290_v52 = vsel %vm479_vm11, %v4235_v29, %v1287_v45  ;;  %v1295_v1 = vsel %vm479_vm11, %v1287_v45, 0.0  ;;  %v1267_v16 = vpop.permute.xlu1 %1266  ;;  %v2924_v61 = vpack.c.bf16 %v1297_v51, %v1277_v48  ;;  %v169_v24 = vld [vmem:[%s5019_s18 + $0x90] sm:$0xff]  ;;  %v170_v51 = vld [vmem:[%s5019_s18 + $0x98] sm:$0xff] }
 0x44d   :  { %v1298_v60 = vmul.f32 %v1290_v52, %v3910_v10  ;;  %v1299_v32 = vmul.f32 %v1295_v1, %v5129_v25  ;;  %v1270_v17 = vsel %vm442_vm10, %v4215_v3, %v1267_v16  ;;  %v1275_v5 = vsel %vm442_vm10, %v1267_v16, 0.0  ;;  %v167_v3 = vld [vmem:[%s5019_s18 + $0x80] sm:$0xff]  ;;  %v184_v52 = vld [vmem:[%s5019_s18 + $0x108] sm:$0xff] }
 0x44e   :  { %v1278_v37 = vmul.f32 %v1270_v17, %v3893_v28  ;;  %v1279_v11 = vmul.f32 %v1275_v5, %v3900_v15  ;;  %2925 = vmatprep.subr.bf16.mxu0 %v2924_v61  ;;  %2939 = vmatpush1.bf16.msra.mxu1 %v2938_v55  ;;  %v1150_v55 = vld [vmem:[#allocation6] sm:$0xff]  ;;  %v4322_v45 = vpack.c.bf16 %v168_v12, %v167_v3  ;;  %v5138_v1 = vld [vmem:[#allocation32_spill] sm:$0xff]  ;;  %v202_v5 = vld [vmem:[%s5019_s18 + $0x198] sm:$0xff] }
 0x44f   :  { %v1305_v29 = vpop.permute.xlu0 %1304  ;;  %2927 = vmatpush1.bf16.msra.mxu0 %v2926_v27  ;;  %v183_v27 = vld [vmem:[%s5019_s18 + $0x100] sm:$0xff]  ;;  %v5139_v61 = vld [vmem:[#allocation33_spill] sm:$0xff]  ;;  %v186_v12 = vld [vmem:[%s5019_s18 + $0x118] sm:$0xff] }
 0x450   :  { %v2942_v14 = vpack.c.bf16 %v1298_v60, %v1278_v37  ;;  %v1303_v21 = vpop.permute.xlu1 %1302  ;;  %v2940_v13 = vpack.c.bf16 %v1299_v32, %v1279_v11  ;;  %v4332_v32 = vpack.c.bf16 %v152_v4, %v151_v44  ;;  %v201_v17 = vld [vmem:[%s5019_s18 + $0x190] sm:$0xff]  ;;  %v4342_v11 = vpack.c.bf16 %v170_v51, %v169_v24  ;;  %v203_v44 = vld [vmem:[%s5019_s18 + $0x1a0] sm:$0xff]  ;;  %v204_v4 = vld [vmem:[%s5019_s18 + $0x1a8] sm:$0xff] }
 0x451   :  { %v1309_v20 = vsel %vm516_vm13, %v1303_v21, %v1305_v29  ;;  %v185_v3 = vld [vmem:[%s5019_s18 + $0x110] sm:$0xff]  ;;  %v174_v51 = vld [vmem:[%s5019_s18 + $0xb8] sm:$0xff] }
 0x452   :  { %v1317_v0 = vmul.f32 %v5131_v63, %v1309_v20  ;;  %2941 = vmatprep.subr.bf16.mxu1 %v2940_v13  ;;  %v199_v63 = vld [vmem:[%s5019_s18 + $0x180] sm:$0xff]  ;;  %v172_v20 = vld [vmem:[%s5019_s18 + $0xa8] sm:$0xff]  ;;  %v173_v24 = vld [vmem:[%s5019_s18 + $0xb0] sm:$0xff] }
 0x453   :  { %v1301_v26 = vpop.permute.xlu0 %1300  ;;  %2943 = vmatpush1.bf16.msra.mxu1 %v2942_v14  ;;  %v4340_v37 = vpack.c.bf16 %v200_v59, %v199_v63  ;;  %v154_v14 = vld [vmem:[%s5019_s18 + $0x18] sm:$0xff]  ;;  %v171_v13 = vld [vmem:[%s5019_s18 + $0xa0] sm:$0xff]  ;;  %v4389_v59 = vpack.c.bf16 %v186_v12, %v185_v3  ;;  %v208_v3 = vld [vmem:[%s5019_s18 + $0x1c8] sm:$0xff] }
 0x454   :  { %v1308_v38 = vsel %vm516_vm13, %v1301_v26, %v1303_v21  ;;  %v1307_v49 = vpop.permute.xlu1 %1306  ;;  %1344 = vmatprep.subr.mxu0 %v1317_v0  ;;  %v4351_v21 = vpack.c.bf16 %v184_v52, %v183_v27  ;;  %v4360_v0 = vpack.c.bf16 %v202_v5, %v201_v17  ;;  %v4380_v63 = vpack.c.bf16 %v172_v20, %v171_v13  ;;  %v206_v27 = vld [vmem:[%s5019_s18 + $0x1b8] sm:$0xff]  ;;  %v176_v17 = vld [vmem:[%s5019_s18 + $0xc8] sm:$0xff]  ;;  %v207_v20 = vld [vmem:[%s5019_s18 + $0x1c0] sm:$0xff] }
 0x455   :  { %v1316_v57 = vmul.f32 %v5137_v43, %v1308_v38  ;;  %v1310_v36 = vsel %vm516_vm13, %v1305_v29, %v1307_v49  ;;  %v1315_v48 = vsel %vm516_vm13, %v1307_v49, 0.0  ;;  %5140 = vst [vmem:[#allocation30_spill] sm:$0xff] %v4340_v37  ;;  %v153_v29 = vld [vmem:[%s5019_s18 + $0x10] sm:$0xff]  ;;  %v155_v38 = vld [vmem:[%s5019_s18 + $0x20] sm:$0xff]  ;;  %v156_v49 = vld [vmem:[%s5019_s18 + $0x28] sm:$0xff]  ;;  %v4398_v43 = vpack.c.bf16 %v204_v4, %v203_v44 }
 0x456   :  { %v1318_v16 = vmul.f32 %v5138_v1, %v1310_v36  ;;  %v1319_v60 = vmul.f32 %v5139_v61, %v1315_v48  ;;  %5141 = vst [vmem:[#allocation31_spill] sm:$0xff] %v4351_v21  ;;  %5142 = vst [vmem:[#allocation32_spill] sm:$0xff] %v4360_v0  ;;  %v4370_v26 = vpack.c.bf16 %v154_v14, %v153_v29  ;;  %v188_v36 = vld [vmem:[%s5019_s18 + $0x128] sm:$0xff]  ;;  %v157_v1 = vld [vmem:[%s5019_s18 + $0x30] sm:$0xff] }
 0x457   :  { %1345 = vmatpush1.msra.mxu0 %v1316_v57  ;;  %5143 = vst [vmem:[#allocation33_spill] sm:$0xff] %v4389_v59  ;;  %5144 = vst [vmem:[#allocation38_spill] sm:$0xff] %v4398_v43  ;;  %v187_v57 = vld [vmem:[%s5019_s18 + $0x120] sm:$0xff]  ;;  %v4407_v48 = vpack.c.bf16 %v156_v49, %v155_v38  ;;  %v4416_v52 = vpack.c.bf16 %v174_v51, %v173_v24  ;;  %v189_v29 = vld [vmem:[%s5019_s18 + $0x130] sm:$0xff]  ;;  %v4470_v51 = vpack.c.bf16 %v208_v3, %v207_v20 }
 0x458   :  { %2631 = vmatmul.mubr.msk.f32.vlgmr.msra.gmra.mrb[4].mxu0 %vm1000_vm7, %v1150_v55  ;;  %1415 = vmatprep.subr.mxu1 %v1319_v60  ;;  %v4425_v61 = vpack.c.bf16 %v188_v36, %v187_v57  ;;  %v175_v60 = vld [vmem:[%s5019_s18 + $0xc0] sm:$0xff]  ;;  %v190_v14 = vld [vmem:[%s5019_s18 + $0x138] sm:$0xff]  ;;  %v160_v4 = vld [vmem:[%s5019_s18 + $0x48] sm:$0xff] }
 0x459   :  { %1416 = vmatpush1.msra.mxu1 %v1318_v16  ;;  %2945 = vmatprep.subr.bf16.mxu0 %v4322_v45  ;;  %v158_v16 = vld [vmem:[%s5019_s18 + $0x38] sm:$0xff]  ;;  %v4452_v12 = vpack.c.bf16 %v176_v17, %v175_v60  ;;  %v159_v44 = vld [vmem:[%s5019_s18 + $0x40] sm:$0xff]  ;;  %v4461_v38 = vpack.c.bf16 %v190_v14, %v189_v29  ;;  %v177_v49 = vld [vmem:[%s5019_s18 + $0xd0] sm:$0xff]  ;;  %5149 = vst [vmem:[#allocation43_spill] sm:$0xff] %v4470_v51 }
 0x45a   :  { %2632 = vmatmul.mubr.msk.f32.vlgmr.msra.gmra.mrb[4].mxu1 %vm1000_vm7, %v1150_v55  ;;  %2947 = vmatpush3.bf16.msra.mxu0 %v4332_v32  ;;  %v205_v55 = vld [vmem:[%s5019_s18 + $0x1b0] sm:$0xff]  ;;  %5145 = vst [vmem:[#allocation39_spill] sm:$0xff] %v4425_v61  ;;  %v4443_v13 = vpack.c.bf16 %v158_v16, %v157_v1  ;;  %v178_v24 = vld [vmem:[%s5019_s18 + $0xd8] sm:$0xff]  ;;  %v191_v57 = vld [vmem:[%s5019_s18 + $0x140] sm:$0xff] }
 0x45b   :  { %2977 = vmatprep.subr.bf16.mxu1 %v4340_v37  ;;  %2949 = vmatprep.subr.bf16.mxu0 %v4342_v11  ;;  %v4434_v5 = vpack.c.bf16 %v206_v27, %v205_v55  ;;  %5147 = vst [vmem:[#allocation41_spill] sm:$0xff] %v4452_v12  ;;  %5148 = vst [vmem:[#allocation42_spill] sm:$0xff] %v4461_v38  ;;  %v192_v36 = vld [vmem:[%s5019_s18 + $0x148] sm:$0xff]  ;;  %v4479_v55 = vpack.c.bf16 %v160_v4, %v159_v44  ;;  %v209_v27 = vld [vmem:[%s5019_s18 + $0x1d0] sm:$0xff] }
 0x45c   :  { %2979 = vmatpush3.bf16.msra.mxu1 %v4351_v21  ;;  %v210_v1 = vld [vmem:[%s5019_s18 + $0x1d8] sm:$0xff]  ;;  %v4488_v16 = vpack.c.bf16 %v178_v24, %v177_v49  ;;  %v161_v60 = vld [vmem:[%s5019_s18 + $0x50] sm:$0xff]  ;;  %v4497_v29 = vpack.c.bf16 %v192_v36, %v191_v57  ;;  %v179_v49 = vld [vmem:[%s5019_s18 + $0xe0] sm:$0xff] }
 0x45d   :  { %2981 = vmatprep.subr.bf16.mxu1 %v4360_v0  ;;  %5146 = vst [vmem:[#allocation40_spill] sm:$0xff] %v4434_v5  ;;  %5150 = vst [vmem:[#allocation44_spill] sm:$0xff] %v4479_v55  ;;  %v162_v17 = vld [vmem:[%s5019_s18 + $0x58] sm:$0xff]  ;;  %v4500_v14 = vpack.c.bf16 %v210_v1, %v209_v27  ;;  %v193_v20 = vld [vmem:[%s5019_s18 + $0x150] sm:$0xff] }
 0x45e   :  { %2951 = vmatpush3.bf16.msra.mxu0 %v4370_v26  ;;  %5151 = vst [vmem:[#allocation45_spill] sm:$0xff] %v4488_v16  ;;  %5152 = vst [vmem:[#allocation46_spill] sm:$0xff] %v4497_v29  ;;  %v194_v3 = vld [vmem:[%s5019_s18 + $0x158] sm:$0xff]  ;;  %v4509_v44 = vpack.c.bf16 %v162_v17, %v161_v60  ;;  %v180_v24 = vld [vmem:[%s5019_s18 + $0xe8] sm:$0xff] }
 0x45f   :  { %2953 = vmatprep.subr.bf16.mxu0 %v4380_v63  ;;  %5153 = vst [vmem:[#allocation47_spill] sm:$0xff] %v4500_v14  ;;  %v4513_v4 = vpack.c.bf16 %v194_v3, %v193_v20  ;;  %v4524_v57 = vpack.c.bf16 %v180_v24, %v179_v49  ;;  %v163_v36 = vld [vmem:[%s5019_s18 + $0x60] sm:$0xff]  ;;  %v164_v27 = vld [vmem:[%s5019_s18 + $0x68] sm:$0xff] }
 0x460   :  { %2983 = vmatpush3.bf16.msra.mxu1 %v4389_v59  ;;  %5154 = vst [vmem:[#allocation48_spill] sm:$0xff] %v4509_v44  ;;  %v4532_v1 = vpack.c.bf16 %v164_v27, %v163_v36  ;;  %v211_v60 = vld [vmem:[%s5019_s18 + $0x1e0] sm:$0xff]  ;;  %v212_v17 = vld [vmem:[%s5019_s18 + $0x1e8] sm:$0xff]  ;;  %v181_v36 = vld [vmem:[%s5019_s18 + $0xf0] sm:$0xff] }
 0x461   :  { %2985 = vmatprep.subr.bf16.mxu1 %v4398_v43  ;;  %5155 = vst [vmem:[#allocation49_spill] sm:$0xff] %v4513_v4  ;;  %5156 = vst [vmem:[#allocation50_spill] sm:$0xff] %v4524_v57  ;;  %v4541_v20 = vpack.c.bf16 %v212_v17, %v211_v60  ;;  %v195_v3 = vld [vmem:[%s5019_s18 + $0x160] sm:$0xff]  ;;  %v196_v49 = vld [vmem:[%s5019_s18 + $0x168] sm:$0xff] }
 0x462   :  { %2955 = vmatpush3.bf16.msra.mxu0 %v4407_v48  ;;  %5157 = vst [vmem:[#allocation51_spill] sm:$0xff] %v4532_v1  ;;  %v4550_v24 = vpack.c.bf16 %v196_v49, %v195_v3  ;;  %v182_v27 = vld [vmem:[%s5019_s18 + $0xf8] sm:$0xff]  ;;  %v165_v17 = vld [vmem:[%s5019_s18 + $0x70] sm:$0xff]  ;;  %v5165_v59 = vld [vmem:[#allocation36_spill] sm:$0xff] }
 0x463   :  { %2957 = vmatprep.subr.bf16.mxu0 %v4416_v52  ;;  %5158 = vst [vmem:[#allocation52_spill] sm:$0xff] %v4541_v20  ;;  %v4559_v60 = vpack.c.bf16 %v182_v27, %v181_v36  ;;  %v166_v3 = vld [vmem:[%s5019_s18 + $0x78] sm:$0xff] }
 0x464   :  { %2987 = vmatpush3.bf16.msra.mxu1 %v4425_v61  ;;  %5159 = vst [vmem:[#allocation53_spill] sm:$0xff] %v4550_v24  ;;  %v4568_v49 = vpack.c.bf16 %v166_v3, %v165_v17  ;;  %v214_v36 = vld [vmem:[%s5019_s18 + $0x1f8] sm:$0xff] }
 0x465   :  { %2989 = vmatprep.subr.bf16.mxu1 %v4434_v5  ;;  %5160 = vst [vmem:[#allocation54_spill] sm:$0xff] %v4559_v60  ;;  %v198_v17 = vld [vmem:[%s5019_s18 + $0x178] sm:$0xff] }
 0x466   :  { %2959 = vmatpush3.bf16.msra.mxu0 %v4443_v13  ;;  %5161 = vst [vmem:[#allocation55_spill] sm:$0xff] %v4568_v49 }
 0x467   :  { %2961 = vmatprep.subr.bf16.mxu0 %v4452_v12 }
 0x468   :  { %2991 = vmatpush3.bf16.msra.mxu1 %v4461_v38  ;;  %v5164_v38 = vld [vmem:[#allocation34_spill] sm:$0xff] }
 0x469   :  { %2993 = vmatprep.subr.bf16.mxu1 %v4470_v51 }
 0x46a   :  { %2963 = vmatpush3.bf16.msra.mxu0 %v4479_v55  ;;  %v5171_v55 = vld [vmem:[#allocation24_spill] sm:$0xff] }
 0x46b   :  { %2965 = vmatprep.subr.bf16.mxu0 %v4488_v16 }
 0x46c   :  { %2995 = vmatpush3.bf16.msra.mxu1 %v4497_v29 }
 0x46d   :  { %2997 = vmatprep.subr.bf16.mxu1 %v4500_v14 }
 0x46e   :  { %2967 = vmatpush3.bf16.msra.mxu0 %v4509_v44 }
 0x46f   :  { %2969 = vmatprep.subr.bf16.mxu0 %v4524_v57 }
 0x470   :  { %2999 = vmatpush3.bf16.msra.mxu1 %v4513_v4  ;;  %v213_v4 = vld [vmem:[%s5019_s18 + $0x1f0] sm:$0xff] }
 0x471   :  { %3001 = vmatprep.subr.bf16.mxu1 %v4541_v20  ;;  %v4577_v27 = vpack.c.bf16 %v214_v36, %v213_v4  ;;  %v197_v20 = vld [vmem:[%s5019_s18 + $0x170] sm:$0xff] }
 0x472   :  { %2971 = vmatpush3.bf16.msra.mxu0 %v4532_v1  ;;  %v4586_v3 = vpack.c.bf16 %v198_v17, %v197_v20  ;;  %v5166_v20 = vld [vmem:[#allocation35_spill] sm:$0xff] }
 0x473   :  { %2973 = vmatprep.subr.bf16.mxu0 %v4559_v60  ;;  %5162 = vst [vmem:[#allocation56_spill] sm:$0xff] %v4577_v27 }
 0x474   :  { %3003 = vmatpush3.bf16.msra.mxu1 %v4550_v24  ;;  %5163 = vst [vmem:[#allocation57_spill] sm:$0xff] %v4586_v3  ;;  %v1323_v24 = vpop.permute.xlu1 %1322 }
 0x475   :  { %3005 = vmatprep.subr.bf16.mxu1 %v4577_v27 }
 0x476   :  { %2975 = vmatpush3.bf16.msra.mxu0 %v4568_v49 }
 0x478   :  { %3007 = vmatpush3.bf16.msra.mxu1 %v4586_v3  ;;  %v5167_v3 = vld [vmem:[#allocation37_spill] sm:$0xff] }
 0x52b   :  { %v1394_v14 = vpop.f32.mrb[4].mxu0 }
 0x52c   :  { %v1395_v4 = vadd.f32 %v1394_v14, %v1323_v24  ;;  %v1396_v36 = vpop.f32.mrb[5].mxu0 }
 0x52d   :  { %v1397_v29 = vadd.f32 %v1396_v36, %v1323_v24  ;;  %v1465_v51 = vpop.f32.mrb[4].mxu1 }
 0x52e   :  { %v1470_v5 = vadd.f32 %v1395_v4, %v5164_v38  ;;  %v1466_v61 = vadd.f32 %v1465_v51, %v1323_v24  ;;  %v1467_v43 = vpop.f32.mrb[5].mxu1 }
 0x52f   :  { %v1471_v0 = vadd.f32 %v1397_v29, %v5165_v59  ;;  %v1468_v21 = vadd.f32 %v1467_v43, %v1323_v24  ;;  %v1618_v59 = vld [vmem:[%s5012_s11] sm:$0xff] }
 0x530   :  { %v4592_v37 = vmax.f32 %v1470_v5, 0.0  ;;  %v1472_v17 = vadd.f32 %v1466_v61, %v5166_v20 }
 0x531   :  { %v4595_v27 = vmax.f32 %v1471_v0, 0.0  ;;  %v1473_v15 = vadd.f32 %v1468_v21, %v5167_v3  ;;  %v5169_v21 = vmov 0.0   ;;  %v1717_v0 = vld [vmem:[%s5009_s8 + $0x8] sm:$0xff] }
 0x532   :  { %v4598_v25 = vmax.f32 %v1472_v17, 0.0  ;;  %1722 = vrot.lane.b32.xlu0 %v4592_v37, %s3358_s21 }
 0x533   :  { %v4602_v14 = vmax.f32 %v1473_v15, 0.0  ;;  %1542 = vmatprep.mubr.f32.mxu0 %v4595_v27  ;;  %v1716_v15 = vld [vmem:[%s5009_s8] sm:$0xff] }
 0x534   :  { %1810 = vrot.lane.b32.xlu1 %v4598_v25, %s3357_s25  ;;  %1543 = vmatmul.mubr.f32.vlgmr.msra.gmra.mrb[6].mxu0 %v4592_v37 }
 0x535   :  { %5168 = vst [vmem:[#allocation34_spill] sm:$0xff] %v4602_v14  ;;  %1612 = vmatprep.mubr.f32.mxu1 %v4602_v14  ;;  %2815 = vmatprep.mubr.msk.f32.mxu0 %vm1632_vm8, %v1618_v59 }
 0x536   :  { %1613 = vmatmul.mubr.f32.vlgmr.msra.gmra.mrb[6].mxu1 %v4598_v25  ;;  %1742 = vrot.lane.b32.xlu0 %v4592_v37, %s3346_s3 }
 0x537   :  { %1956 = vmatprep.mubr.f32.mxu1 %v5169_v21 }
 0x538   :  { %1830 = vrot.lane.b32.xlu1 %v4598_v25, %s3359_s27 }
 0x53a   :  { %1726 = vrot.lane.b32.xlu0 %v4598_v25, %s3358_s21 }
 0x53c   :  { %1850 = vrot.lane.b32.xlu1 %v4598_v25, %s3360_s26 }
 0x53e   :  { %1746 = vrot.lane.b32.xlu0 %v4598_v25, %s3346_s3 }
 0x540   :  { %1846 = vrot.lane.b32.xlu1 %v4592_v37, %s3360_s26 }
 0x542   :  { %1762 = vrot.lane.b32.xlu0 %v4592_v37, %s3355_s2 }
 0x544   :  { %1724 = vrot.lane.b32.xlu1 %v4595_v27, %s3358_s21 }
 0x546   :  { %1782 = vrot.lane.b32.xlu0 %v4592_v37, %s3356_s17 }
 0x548   :  { %1744 = vrot.lane.b32.xlu1 %v4595_v27, %s3346_s3 }
 0x54a   :  { %1766 = vrot.lane.b32.xlu0 %v4598_v25, %s3355_s2 }
 0x54c   :  { %1728 = vrot.lane.b32.xlu1 %v4602_v14, %s3358_s21 }
 0x54e   :  { %1786 = vrot.lane.b32.xlu0 %v4598_v25, %s3356_s17 }
 0x550   :  { %1748 = vrot.lane.b32.xlu1 %v4602_v14, %s3346_s3 }
 0x552   :  { %1806 = vrot.lane.b32.xlu0 %v4592_v37, %s3357_s25 }
 0x554   :  { %1764 = vrot.lane.b32.xlu1 %v4595_v27, %s3355_s2 }
 0x556   :  { %1826 = vrot.lane.b32.xlu0 %v4592_v37, %s3359_s27 }
 0x558   :  { %1784 = vrot.lane.b32.xlu1 %v4595_v27, %s3356_s17 }
 0x55a   :  { %1808 = vrot.lane.b32.xlu0 %v4595_v27, %s3357_s25 }
 0x55c   :  { %1768 = vrot.lane.b32.xlu1 %v4602_v14, %s3355_s2 }
 0x55e   :  { %1828 = vrot.lane.b32.xlu0 %v4595_v27, %s3359_s27 }
 0x560   :  { %1788 = vrot.lane.b32.xlu1 %v4602_v14, %s3356_s17 }
 0x562   :  { %1848 = vrot.lane.b32.xlu0 %v4595_v27, %s3360_s26 }
 0x564   :  { %1812 = vrot.lane.b32.xlu1 %v4602_v14, %s3357_s25 }
 0x566   :  { %1832 = vrot.lane.b32.xlu0 %v4602_v14, %s3359_s27 }
 0x568   :  { %1852 = vrot.lane.b32.xlu1 %v4602_v14, %s3360_s26 }
 0x56a   :  { %1868 = vrot.lane.b32.xlu0 %v4595_v27, %s3362_s4 }
 0x56c   :  { %1870 = vrot.lane.b32.xlu1 %v4598_v25, %s3362_s4 }
 0x56e   :  { %1866 = vrot.lane.b32.xlu0 %v4592_v37, %s3362_s4 }
 0x570   :  { %1872 = vrot.lane.b32.xlu1 %v4602_v14, %s3362_s4 }
 0x572   :  { %2048 = vperm.xlu0 %3195, %v1716_v15  }
 0x574   :  { %2053 = vperm.xlu1 %3196, %v1717_v0  }
 0x5a4   :  { %v1723_v43 = vpop.permute.xlu0 %1722 }
 0x5a5   :  { %v1737_v59 = vsel %vm231_vm5, 0.0, %v1723_v43 }
 0x5a6   :  { %v4681_v61 = vpop.permute.xlu1 %1810 }
 0x5a8   :  { %v1743_v5 = vpop.permute.xlu0 %1742 }
 0x5a9   :  { %v1757_v17 = vsel %vm268_vm2, 0.0, %v1743_v5 }
 0x5aa   :  { %v4683_v38 = vpop.permute.xlu1 %1830  ;;  %v1758_v7 = vmul.f32 %v1757_v17, %v5170_v23 }
 0x5ac   :  { %v1727_v51 = vpop.permute.xlu0 %1726 }
 0x5ae   :  { %v4685_v29 = vpop.permute.xlu1 %1850 }
 0x5b0   :  { %v1747_v24 = vpop.permute.xlu0 %1746 }
 0x5b2   :  { %v4687_v3 = vpop.permute.xlu1 %1846 }
 0x5b4   :  { %v1763_v4 = vpop.permute.xlu0 %1762 }
 0x5b6   :  { %v1725_v36 = vpop.permute.xlu1 %1724 }
 0x5b7   :  { %v1731_v20 = vsel %vm231_vm5, %v1725_v36, %v1727_v51  ;;  %v1730_v0 = vsel %vm231_vm5, %v1723_v43, %v1725_v36  ;;  %v1738_v43 = vmul.f32 %v1737_v59, %v5171_v55 }
 0x5b8   :  { %v1783_v15 = vpop.permute.xlu0 %1782  ;;  %v1739_v1 = vmul.f32 %v1730_v0, %v3767_v8  ;;  %v4698_v57 = vmul.f32 %v1731_v20, %v3784_v46 }
 0x5b9   :  { %v3010_v12 = vpack.c.bf16 %v1758_v7, %v1738_v43 }
 0x5ba   :  { %v1745_v14 = vpop.permute.xlu1 %1744 }
 0x5bb   :  { %v1750_v49 = vsel %vm268_vm2, %v1743_v5, %v1745_v14  ;;  %v1751_v60 = vsel %vm268_vm2, %v1745_v14, %v1747_v24 }
 0x5bc   :  { %v1759_v44 = vmul.f32 %v1750_v49, %v3721_v50  ;;  %v4702_v16 = vmul.f32 %v1751_v60, %v3725_v53  ;;  %v1767_v36 = vpop.permute.xlu0 %1766 }
 0x5be   :  { %v3026_v23 = vpack.c.bf16 %v4702_v16, %v4698_v57  ;;  %v1729_v17 = vpop.permute.xlu1 %1728  ;;  %v3008_v5 = vpack.c.bf16 %v1759_v44, %v1739_v1  ;;  %v1797_v1 = vsel %vm342_vm1, 0.0, %v1783_v15  ;;  %v5184_v16 = vld [vmem:[#allocation28_spill] sm:$0xff] }
 0x5bf   :  { %v1732_v14 = vsel %vm231_vm5, %v1727_v51, %v1729_v17  ;;  %vm2251_vm5 = vcmask 56320  }
 0x5c0   :  { %3009 = vmatprep.subr.bf16.mxu1 %v3008_v5  ;;  %v1787_v8 = vpop.permute.xlu0 %1786  ;;  %v4710_v53 = vmul.f32 %v1732_v14, %v3797_v62  ;;  %v1798_v62 = vmul.f32 %v1797_v1, %v3677_v33 }
 0x5c1   :  { %3011 = vmatpush1.bf16.msra.mxu1 %v3010_v12 }
 0x5c2   :  { %v1749_v46 = vpop.permute.xlu1 %1748 }
 0x5c3   :  { %v1752_v50 = vsel %vm268_vm2, %v1747_v24, %v1749_v46  ;;  %v1777_v24 = vsel %vm305_vm0, 0.0, %v1763_v4 }
 0x5c4   :  { %v4713_v60 = vmul.f32 %v1752_v50, %v3729_v54  ;;  %v1807_v55 = vpop.permute.xlu0 %1806 }
 0x5c6   :  { %v1765_v49 = vpop.permute.xlu1 %1764  ;;  %v3024_v44 = vpack.c.bf16 %v4713_v60, %v4710_v53  ;;  %v5183_v60 = vld [vmem:[#allocation29_spill] sm:$0xff] }
 0x5c7   :  { %v1771_v7 = vsel %vm305_vm0, %v1765_v49, %v1767_v36  ;;  %v1770_v12 = vsel %vm305_vm0, %v1763_v4, %v1765_v49  ;;  %v1778_v4 = vmul.f32 %v1777_v24, %v3666_v30 }
 0x5c8   :  { %v1827_v51 = vpop.permute.xlu0 %1826  ;;  %v1779_v59 = vmul.f32 %v1770_v12, %v3685_v35  ;;  %v4726_v43 = vmul.f32 %v1771_v7, %v3692_v39 }
 0x5ca   :  { %v1785_v20 = vpop.permute.xlu1 %1784 }
 0x5cb   :  { %v1790_v54 = vsel %vm342_vm1, %v1783_v15, %v1785_v20  ;;  %v1791_v0 = vsel %vm342_vm1, %v1785_v20, %v1787_v8 }
 0x5cc   :  { %v1799_v17 = vmul.f32 %v1790_v54, %v3681_v34  ;;  %v4730_v5 = vmul.f32 %v1791_v0, %v3696_v40  ;;  %v1809_v14 = vpop.permute.xlu0 %1808  ;;  %v1803_v34 = vmul.f32 %v4595_v27, %v3640_v19  ;;  %v3014_v40 = vpack.c.bf16 %v1798_v62, %v1778_v4 }
 0x5cd   :  { %v1814_v46 = vsel %vm405_vm4, %v1807_v55, %v1809_v14  ;;  %v1815_v33 = vsel %vm405_vm4, %v1809_v14, %v4681_v61  ;;  %v1802_v55 = vmul.f32 %v4592_v37, %v3636_v18 }
 0x5ce   :  { %v3030_v15 = vpack.c.bf16 %v4730_v5, %v4726_v43  ;;  %v1823_v35 = vmul.f32 %v1815_v33, %v3739_v58  ;;  %v1769_v39 = vpop.permute.xlu1 %1768  ;;  %v3012_v50 = vpack.c.bf16 %v1799_v17, %v1779_v59  ;;  %v1822_v49 = vmul.f32 %v1814_v46, %v3788_v47  ;;  %v3199_v33 = vld [vmem:[#allocation9 + $0x28] ss:$0 sm:$0xff]  ;;  %v3202_v43 = vld [vmem:[#allocation9 + $0x30] ss:$0 sm:$0xff] }
 0x5cf   :  { %v1772_v1 = vsel %vm305_vm0, %v1767_v36, %v1769_v39  ;;  %vm2222_vm0 = vcmask 72704  }
 0x5d0   :  { %3013 = vmatprep.subr.bf16.mxu1 %v3012_v50  ;;  %v1829_v30 = vpop.permute.xlu0 %1828  ;;  %v3016_v7 = vpack.c.bf16 %v1823_v35, %v1803_v34  ;;  %v3018_v24 = vpack.c.bf16 %v1822_v49, %v1802_v55  ;;  %v4750_v47 = vmul.f32 %v1772_v1, %v3670_v31  ;;  %v5174_v49 = vld [vmem:[#allocation45_spill] sm:$0xff] }
 0x5d1   :  { %3015 = vmatpush1.bf16.msra.mxu1 %v3014_v40  ;;  %v1834_v12 = vsel %vm442_vm10, %v1827_v51, %v1829_v30  ;;  %v1835_v19 = vsel %vm442_vm10, %v1829_v30, %v4683_v38  ;;  %v5173_v40 = vld [vmem:[#allocation44_spill] sm:$0xff]  ;;  %v5177_v30 = vld [vmem:[#allocation51_spill] sm:$0xff] }
 0x5d2   :  { %v1789_v58 = vpop.permute.xlu1 %1788  ;;  %3017 = vmatprep.subr.bf16.mxu1 %v3016_v7  ;;  %v1842_v37 = vmul.f32 %v1834_v12, %v3888_v9  ;;  %v1843_v62 = vmul.f32 %v1835_v19, %v3879_v56  ;;  %v5180_v19 = vld [vmem:[#allocation25_spill] sm:$0xff] }
 0x5d3   :  { %v1792_v27 = vsel %vm342_vm1, %v1787_v8, %v1789_v58 }
 0x5d4   :  { %v4753_v20 = vmul.f32 %v1792_v27, %v3700_v41  ;;  %v1849_v18 = vpop.permute.xlu0 %1848 }
 0x5d5   :  { %v1854_v36 = vsel %vm479_vm11, %v4687_v3, %v1849_v18  ;;  %v1855_v51 = vsel %vm479_vm11, %v1849_v18, %v4685_v29  ;;  %3019 = vmatpush1.bf16.msra.mxu1 %v3018_v24  ;;  %v4769_v3 = vmul.f32 %v4598_v25, %v3648_v22  ;;  %v1619_v24 = vld [vmem:[%s5012_s11 + $0x8] sm:$0xff]  ;;  %s3366_s11 = smov 9  }
 0x5d6   :  { %v1862_v8 = vmul.f32 %v1854_v36, %v3904_v2  ;;  %v1863_v31 = vmul.f32 %v1855_v51, %v3884_v42  ;;  %v1813_v54 = vpop.permute.xlu1 %1812  ;;  %v3028_v41 = vpack.c.bf16 %v4753_v20, %v4750_v47  ;;  %v5182_v36 = vld [vmem:[#allocation34_spill] sm:$0xff] }
 0x5d7   :  { %v1816_v9 = vsel %vm405_vm4, %v4681_v61, %v1813_v54  ;;  %v1821_v58 = vsel %vm405_vm4, %v1813_v54, 0.0 }
 0x5d8   :  { %v3022_v0 = vpack.c.bf16 %v1862_v8, %v1842_v37  ;;  %v4772_v59 = vmul.f32 %v1816_v9, %v3759_v6  ;;  %v1833_v56 = vpop.permute.xlu0 %1832  ;;  %v3020_v17 = vpack.c.bf16 %v1863_v31, %v1843_v62  ;;  %v1825_v27 = vmul.f32 %v1821_v58, %v5180_v19  ;;  %v5181_v37 = vld [vmem:[#allocation17_spill] sm:$0xff]  ;;  %v5187_v9 = vld [vmem:[#allocation32_spill] sm:$0xff] }
 0x5d9   :  { %v1836_v42 = vsel %vm442_vm10, %v4683_v38, %v1833_v56  ;;  %v1805_v51 = vmul.f32 %v5182_v36, %v5181_v37  ;;  %v1841_v53 = vsel %vm442_vm10, %v1833_v56, 0.0  ;;  %v3201_v31 = vld [vmem:[#allocation9 + $0x38] ss:$0 sm:$0xff]  ;;  %v5191_v56 = vld [vmem:[#allocation40_spill] sm:$0xff]  ;;  %vm3371_vm10 = vmmov 0  }
 0x5da   :  { %v3034_v2 = vpack.c.bf16 %v4772_v59, %v4769_v3  ;;  %v1853_v14 = vpop.permute.xlu1 %1852  ;;  %3021 = vmatprep.subr.bf16.mxu1 %v3020_v17  ;;  %v4781_v22 = vmul.f32 %v1836_v42, %v3893_v28  ;;  %v1714_v28 = vld [vmem:[%s5008_s7] sm:$0xff]  ;;  %v1845_v57 = vmul.f32 %v1841_v53, %v5184_v16  ;;  %v5189_v3 = vld [vmem:[#allocation38_spill] sm:$0xff]  ;;  %v5201_v36 = vld [vmem:[#allocation16_spill] sm:$0xff] }
 0x5db   :  { %v1856_v61 = vsel %vm479_vm11, %v4685_v29, %v1853_v14  ;;  %3023 = vmatpush1.bf16.msra.mxu1 %v3022_v0  ;;  %v3200_v29 = vld [vmem:[#allocation9 + $0x20] ss:$0 sm:$0xff]  ;;  %v1861_v18 = vsel %vm479_vm11, %v1853_v14, 0.0  ;;  %v3032_v62 = vpack.c.bf16 %v1825_v27, %v1805_v51  ;;  %v5188_v0 = vld [vmem:[#allocation33_spill] sm:$0xff]  ;;  %v5190_v59 = vld [vmem:[#allocation39_spill] sm:$0xff]  ;;  %vm2609_vm11 = vcmask 11264  }
 0x5dc   :  { %v4784_v6 = vmul.f32 %v1856_v61, %v3910_v10  ;;  %v1869_v25 = vpop.permute.xlu0 %1868  ;;  %v1715_v10 = vld [vmem:[%s5008_s7 + $0x8] sm:$0xff]  ;;  %v5192_v17 = vld [vmem:[#allocation42_spill] sm:$0xff]  ;;  %v5193_v42 = vld [vmem:[#allocation43_spill] sm:$0xff] }
 0x5dd   :  { %v5195_v14 = vld [vmem:[#allocation47_spill] sm:$0xff]  ;;  %v5196_v61 = vld [vmem:[#allocation49_spill] sm:$0xff] }
 0x5de   :  { %v3038_v4 = vpack.c.bf16 %v4784_v6, %v4781_v22  ;;  %v1871_v38 = vpop.permute.xlu1 %1870  ;;  %v5197_v22 = vld [vmem:[#allocation52_spill] sm:$0xff]  ;;  %v5198_v6 = vld [vmem:[#allocation53_spill] sm:$0xff]  ;;  %v2209_v16 = vld [vmem:[#allocation7 + $0x8] sm:$0xff] }
 0x5df   :  { %v1875_v46 = vsel %vm516_vm13, %v1869_v25, %v1871_v38 }
 0x5e0   :  { %v1883_v35 = vmul.f32 %v3199_v33, %v1875_v46  ;;  %v1867_v39 = vpop.permute.xlu0 %1866 }
 0x5e1   :  { %v1874_v50 = vsel %vm516_vm13, %v1867_v39, %v1869_v25  ;;  %v5199_v25 = vld [vmem:[#allocation56_spill] sm:$0xff] }
 0x5e2   :  { %v1882_v34 = vmul.f32 %v3200_v29, %v1874_v50  ;;  %1908 = vmatprep.subr.mxu1 %v1883_v35 }
 0x5e4   :  { %1909 = vmatpush1.msra.mxu1 %v1882_v34 }
 0x5e5   :  { %2635 = vmatmul.mubr.msk.f32.vlgmr.msra.gmra.mrb[8].mxu1 %vm1000_vm7, %v1714_v28  ;;  %3041 = vmatprep.subr.bf16.mxu1 %v4322_v45  ;;  %v5172_v45 = vld [vmem:[#allocation41_spill] sm:$0xff] }
 0x5e6   :  { %1962 = vmatprep.mubr.f32.mxu1 %v5169_v21  ;;  %3043 = vmatpush3.bf16.msra.mxu1 %v4332_v32  ;;  %v5175_v32 = vld [vmem:[#allocation48_spill] sm:$0xff] }
 0x5e7   :  { %3045 = vmatprep.subr.bf16.mxu1 %v4342_v11  ;;  %v5176_v11 = vld [vmem:[#allocation50_spill] sm:$0xff] }
 0x5e9   :  { %2636 = vmatmul.mubr.msk.f32.gmra.mrb[10].mxu1 %vm1000_vm7, %v1715_v10 }
 0x5ea   :  { %3047 = vmatpush3.bf16.msra.mxu1 %v4370_v26  ;;  %v5178_v26 = vld [vmem:[#allocation54_spill] sm:$0xff] }
 0x5eb   :  { %3049 = vmatprep.subr.bf16.mxu1 %v4380_v63  ;;  %v5179_v63 = vld [vmem:[#allocation55_spill] sm:$0xff] }
 0x5ee   :  { %3051 = vmatpush3.bf16.msra.mxu1 %v4407_v48 }
 0x5ef   :  { %3053 = vmatprep.subr.bf16.mxu1 %v4416_v52 }
 0x5f2   :  { %3055 = vmatpush3.bf16.msra.mxu1 %v4443_v13 }
 0x5f3   :  { %3057 = vmatprep.subr.bf16.mxu1 %v5172_v45 }
 0x5f6   :  { %3059 = vmatpush3.bf16.msra.mxu1 %v5173_v40 }
 0x5f7   :  { %3061 = vmatprep.subr.bf16.mxu1 %v5174_v49 }
 0x5fa   :  { %3063 = vmatpush3.bf16.msra.mxu1 %v5175_v32 }
 0x5fb   :  { %3065 = vmatprep.subr.bf16.mxu1 %v5176_v11 }
 0x5fe   :  { %3067 = vmatpush3.bf16.msra.mxu1 %v5177_v30 }
 0x5ff   :  { %3069 = vmatprep.subr.bf16.mxu1 %v5178_v26 }
 0x602   :  { %3071 = vmatpush3.bf16.msra.mxu1 %v5179_v63  ;;  %v2049_v63 = vpop.permute.xlu0 %2048 }
 0x607   :  { %v2675_v48 = vpop.f32.mrb[6].mxu0 }
 0x608   :  { %v2676_v52 = vpop.f32.mrb[7].mxu0 }
 0x609   :  { %v2677_v7 = vadd.f32 %v2676_v52, %v2675_v48  ;;  %v2710_v13 = vpop.f32.mrb[6].mxu1 }
 0x60a   :  { %v2711_v55 = vpop.f32.mrb[7].mxu1 }
 0x60b   :  { %v2712_v1 = vadd.f32 %v2711_v55, %v2710_v13  ;;  %v3365_v13 = vmov 0.0|0.0  }
 0x60c   :  { %3104 = vmatprep.subr.bf16.mxu1 %v3365_v13 }
 0x60d   :  { %v1615_v12 = vadd.f32 %v2712_v1, %v2677_v7 }
 0x60f   :  { %2813 = vmatprep.subr.mxu0 %v1615_v12 }
 0x610   :  { %2814 = vmatpush3.msra.mxu0 %v1615_v12 }
 0x611   :  { %3025 = vmatprep.subr.bf16.mxu0 %v3024_v44  ;;  %2816 = vmatmul.mubr.msk.f32.vlgmr.msra.gmra.mrb[8].mxu0 %vm1632_vm8, %v1619_v24  ;;  %v1865_v44 = vmul.f32 %v1861_v18, %v5183_v60  ;;  %v4872_v24 = vld [vmem:[#allocation10] sm:$0xff] }
 0x612   :  { %3027 = vmatpush1.bf16.msra.mxu0 %v3026_v23  ;;  %2033 = vmatprep.mubr.f32.mxu0 %v5169_v21  ;;  %v1873_v23 = vpop.permute.xlu1 %1872  ;;  %v2277_v51 = vrot.slane %v4872_v24, %v5201_v36 }
 0x613   :  { %3029 = vmatprep.subr.bf16.mxu0 %v3028_v41  ;;  %v3036_v8 = vpack.c.bf16 %v1865_v44, %v1845_v57  ;;  %v1881_v47 = vsel %vm516_vm13, %v1873_v23, 0.0  ;;  %v1876_v20 = vsel %vm516_vm13, %v1871_v38, %v1873_v23  ;;  %v5186_v41 = vld [vmem:[#allocation31_spill] sm:$0xff] }
 0x614   :  { %v1885_v54 = vmul.f32 %v3201_v31, %v1881_v47  ;;  %v1884_v5 = vmul.f32 %v3202_v43, %v1876_v20  ;;  %v1620_v57 = vld [vmem:[%s5013_s12] sm:$0xff]  ;;  %v2213_v47 = vld [vmem:[%s5011_s10 + $0x8] sm:$0xff]  ;;  %v2436_v43 = vld [vmem:[%s5020_s19 + $0x10] sm:$0xff] }
 0x615   :  { %v2212_v23 = vld [vmem:[%s5011_s10] sm:$0xff] }
 0x616   :  { %3031 = vmatpush1.bf16.msra.mxu0 %v3030_v15  ;;  %v5185_v15 = vld [vmem:[#allocation30_spill] sm:$0xff]  ;;  %v2054_v12 = vpop.permute.xlu1 %2053  ;;  %v2530_v20 = vld [vmem:[%s5015_s14] sm:$0xf]  ;;  %s5209_s14 = sld [smem:[#allocation63_spill]] }
 0x617   :  { %3033 = vmatprep.subr.bf16.mxu0 %v3032_v62  ;;  %v2434_v31 = vld [vmem:[%s5020_s19] sm:$0xff] }
 0x61a   :  { %3035 = vmatpush1.bf16.msra.mxu0 %v3034_v2  ;;  %v5194_v2 = vld [vmem:[#allocation46_spill] sm:$0xff] }
 0x61b   :  { %3037 = vmatprep.subr.bf16.mxu0 %v3036_v8  ;;  %v1621_v8 = vld [vmem:[%s5013_s12 + $0x8] sm:$0xff] }
 0x61e   :  { %3039 = vmatpush1.bf16.msra.mxu0 %v3038_v4  ;;  %v5200_v4 = vld [vmem:[#allocation57_spill] sm:$0xff] }
 0x61f   :  { %1985 = vmatprep.subr.mxu0 %v1885_v54  ;;  %v2435_v54 = vld [vmem:[%s5020_s19 + $0x8] sm:$0xff] }
 0x622   :  { %1986 = vmatpush1.msra.mxu0 %v1884_v5  ;;  %v3131_v5 = vpack.c.bf16 %v2435_v54, %v2434_v31 }
 0x623   :  { %2637 = vmatmul.mubr.msk.f32.vlgmr.msra.gmra.mrb[10].mxu0 %vm1000_vm7, %v1714_v28  ;;  %3073 = vmatprep.subr.bf16.mxu0 %v5185_v15  ;;  %v2437_v15 = vld [vmem:[%s5020_s19 + $0x18] sm:$0xff] }
 0x624   :  { %2039 = vmatprep.mubr.f32.mxu0 %v5169_v21  ;;  %3075 = vmatpush3.bf16.msra.mxu0 %v5186_v41  ;;  %v3135_v41 = vpack.c.bf16 %v2437_v15, %v2436_v43  ;;  %v5206_v43 = vld [vmem:[#allocation21_spill] sm:$0xff] }
 0x625   :  { %3077 = vmatprep.subr.bf16.mxu0 %v5187_v9  ;;  %v2438_v9 = vld [vmem:[%s5020_s19 + $0x20] sm:$0xff] }
 0x627   :  { %2638 = vmatmul.mubr.msk.f32.gmra.mrb[12].mxu0 %vm1000_vm7, %v1715_v10 }
 0x628   :  { %3079 = vmatpush3.bf16.msra.mxu0 %v5188_v0  ;;  %v2439_v0 = vld [vmem:[%s5020_s19 + $0x28] sm:$0xff] }
 0x629   :  { %3081 = vmatprep.subr.bf16.mxu0 %v5189_v3  ;;  %v3139_v3 = vpack.c.bf16 %v2439_v0, %v2438_v9 }
 0x62c   :  { %3083 = vmatpush3.bf16.msra.mxu0 %v5190_v59  ;;  %v2440_v59 = vld [vmem:[%s5020_s19 + $0x30] sm:$0xff] }
 0x62d   :  { %3085 = vmatprep.subr.bf16.mxu0 %v5191_v56  ;;  %v2441_v56 = vld [vmem:[%s5020_s19 + $0x38] sm:$0xff] }
 0x630   :  { %3087 = vmatpush3.bf16.msra.mxu0 %v5192_v17  ;;  %v3143_v17 = vpack.c.bf16 %v2441_v56, %v2440_v59  ;;  %v5207_v59 = vld [vmem:[#allocation26_spill] sm:$0xff] }
 0x631   :  { %3089 = vmatprep.subr.bf16.mxu0 %v5193_v42  ;;  %v2442_v42 = vld [vmem:[%s5020_s19 + $0x40] sm:$0xff]  ;;  %v2306_v56 = vrot.slane %v4872_v24, %v5207_v59 }
 0x634   :  { %3091 = vmatpush3.bf16.msra.mxu0 %v5194_v2  ;;  %v2443_v2 = vld [vmem:[%s5020_s19 + $0x48] sm:$0xff] }
 0x635   :  { %3093 = vmatprep.subr.bf16.mxu0 %v5195_v14  ;;  %v3147_v14 = vpack.c.bf16 %v2443_v2, %v2442_v42 }
 0x638   :  { %3095 = vmatpush3.bf16.msra.mxu0 %v5196_v61  ;;  %v2444_v61 = vld [vmem:[%s5020_s19 + $0x50] sm:$0xff] }
 0x639   :  { %3097 = vmatprep.subr.bf16.mxu0 %v5197_v22  ;;  %v2445_v22 = vld [vmem:[%s5020_s19 + $0x58] sm:$0xff] }
 0x63c   :  { %3099 = vmatpush3.bf16.msra.mxu0 %v5198_v6  ;;  %v3151_v6 = vpack.c.bf16 %v2445_v22, %v2444_v61 }
 0x63d   :  { %3101 = vmatprep.subr.bf16.mxu0 %v5199_v25 }
 0x640   :  { %3103 = vmatpush3.bf16.msra.mxu0 %v5200_v4  ;;  %v5202_v4 = vld [vmem:[#allocation23_spill] sm:$0xff] }
 0x641   :  { %3132 = vmatprep.subr.bf16.mxu0 %v3131_v5 }
 0x6b8   :  { %v1958_v38 = vpop.f32.mrb[8].mxu1 }
 0x6b9   :  { %v1960_v46 = vpop.f32.mrb[9].mxu1 }
 0x6ba   :  { %2120 = vmatprep.mubr.f32.mxu1 %v1960_v46 }
 0x6bb   :  { %2121 = vmatmul.mubr.f32.vlgmr.msra.gmra.mrb[12].mxu1 %v1958_v38  ;;  %v2228_v38 = vrot.slane %v4872_v24, %v5202_v4 }
 0x6bc   :  { %v1964_v33 = vpop.f32.mrb[10].mxu1 }
 0x6bd   :  { %v1966_v35 = vpop.f32.mrb[11].mxu1 }
 0x6be   :  { %2125 = vmatprep.mubr.f32.mxu1 %v1966_v35 }
 0x6bf   :  { %2126 = vmatmul.mubr.f32.gmra.mrb[14].mxu1 %v1964_v33 }
 0x6c0   :  { %2640 = vmatprep.mubr.msk.f32.mxu1 %vm268_vm2, %v2209_v16 }
 0x6e4   :  { %v4867_v39 = vpop.f32.mrb[8].mxu0 }
 0x6e5   :  { %v4869_v50 = vpop.f32.mrb[9].mxu0 }
 0x6f6   :  { %v2035_v29 = vpop.f32.mrb[10].mxu0 }
 0x6f7   :  { %v2037_v34 = vpop.f32.mrb[11].mxu0 }
 0x6f8   :  { %2195 = vmatprep.mubr.f32.mxu0 %v2037_v34 }
 0x6f9   :  { %2196 = vmatmul.mubr.f32.vlgmr.msra.gmra.mrb[14].mxu0 %v2035_v29 }
 0x6fa   :  { %v2041_v28 = vpop.f32.mrb[12].mxu0  ;;  %3134 = vmatpush3.bf16.msra.mxu0 %v3131_v5  ;;  %v2291_v5 = vrot.slane %v4872_v24, %v5206_v43  ;;  %v2529_v43 = vld [vmem:[%s5209_s14] sm:$0xf] }
 0x6fb   :  { %v2043_v10 = vpop.f32.mrb[13].mxu0  ;;  %3136 = vmatprep.subr.bf16.mxu0 %v3135_v41 }
 0x6fc   :  { %2200 = vmatprep.mubr.f32.mxu0 %v2043_v10  ;;  %v5203_v10 = vld [vmem:[#allocation20_spill] sm:$0xff] }
 0x6fd   :  { %2201 = vmatmul.mubr.f32.gmra.mrb[16].mxu0 %v2041_v28 }
 0x6fe   :  { %3138 = vmatpush3.bf16.msra.mxu0 %v3135_v41 }
 0x6ff   :  { %3140 = vmatprep.subr.bf16.mxu0 %v3139_v3 }
 0x702   :  { %3142 = vmatpush3.bf16.msra.mxu0 %v3139_v3 }
 0x703   :  { %3144 = vmatprep.subr.bf16.mxu0 %v3143_v17 }
 0x706   :  { %3146 = vmatpush3.bf16.msra.mxu0 %v3143_v17 }
 0x707   :  { %3148 = vmatprep.subr.bf16.mxu0 %v3147_v14 }
 0x70a   :  { %3150 = vmatpush3.bf16.msra.mxu0 %v3147_v14 }
 0x70b   :  { %3152 = vmatprep.subr.bf16.mxu0 %v3151_v6 }
 0x70e   :  { %3154 = vmatpush3.bf16.msra.mxu0 %v3151_v6 }
 0x78e   :  { %v2748_v45 = vpop.f32.mrb[12].mxu1 }
 0x78f   :  { %v2749_v40 = vpop.f32.mrb[13].mxu1 }
 0x790   :  { %v2750_v49 = vadd.f32 %v2749_v40, %v2748_v45  ;;  %v2242_v45 = vrot.slane %v4872_v24, %v5203_v10 }
 0x792   :  { %v2751_v32 = vpop.f32.mrb[14].mxu1  ;;  %v2123_v52 = vadd.f32 %v2750_v49, %v2049_v63 }
 0x793   :  { %v2752_v11 = vpop.f32.mrb[15].mxu1 }
 0x794   :  { %v2753_v30 = vadd.f32 %v2752_v11, %v2751_v32 }
 0x796   :  { %v2128_v19 = vadd.f32 %v2753_v30, %v2054_v12 }
 0x7cc   :  { %v2786_v26 = vpop.f32.mrb[14].mxu0 }
 0x7cd   :  { %v2787_v48 = vpop.f32.mrb[15].mxu0 }
 0x7ce   :  { %v2788_v7 = vadd.f32 %v2787_v48, %v2786_v26  ;;  %v5204_v48 = vld [vmem:[#allocation18_spill] sm:$0xff] }
 0x7d0   :  { %v2198_v55 = vadd.f32 %v2788_v7, %v2123_v52  ;;  %v2789_v1 = vpop.f32.mrb[16].mxu0  ;;  %v2257_v52 = vrot.slane %v4872_v24, %v5204_v48  ;;  %v2449_v48 = vld [vmem:[%s5020_s19 + $0x78] sm:$0xff] }
 0x7d1   :  { %v2790_v58 = vpop.f32.mrb[17].mxu0 }
 0x7d2   :  { %v2206_v27 = vmax.f32 %v2198_v55, 0.0  ;;  %v2791_v18 = vadd.f32 %v2790_v58, %v2789_v1 }
 0x7d4   :  { %v2203_v37 = vadd.f32 %v2791_v18, %v2128_v19  ;;  %2216 = vrot.lane.b32.xlu0 %v2206_v27, %s3366_s11  ;;  %v4877_v60 = vmul.f32 %v2277_v51, %v2206_v27  ;;  %v5205_v18 = vld [vmem:[#allocation19_spill] sm:$0xff] }
 0x7d6   :  { %v2207_v53 = vmax.f32 %v2203_v37, 0.0  ;;  %v2271_v37 = vrot.slane %v4872_v24, %v5205_v18 }
 0x7d8   :  { %2218 = vrot.lane.b32.xlu1 %v2207_v53, %s3366_s11  ;;  %2231 = vrot.lane.b32.xlu0 %v2206_v27, %s3354_s28  ;;  %v4879_v44 = vmul.f32 %v2277_v51, %v2207_v53 }
 0x7da   :  { %v3117_v62 = vpack.c.bf16 %v4879_v44, %v4877_v60 }
 0x7dc   :  { %2233 = vrot.lane.b32.xlu1 %v2207_v53, %s3354_s28  ;;  %2245 = vrot.lane.b32.xlu0 %v2206_v27, %s3367_s5 }
 0x7e0   :  { %2247 = vrot.lane.b32.xlu1 %v2207_v53, %s3367_s5  ;;  %2260 = vrot.lane.b32.xlu0 %v2206_v27, %s3356_s17 }
 0x7e4   :  { %2262 = vrot.lane.b32.xlu1 %v2207_v53, %s3356_s17  ;;  %2280 = vrot.lane.b32.xlu0 %v2206_v27, %s3357_s25 }
 0x7e8   :  { %2282 = vrot.lane.b32.xlu1 %v2207_v53, %s3357_s25  ;;  %2294 = vrot.lane.b32.xlu0 %v2206_v27, %s3368_s23 }
 0x7ec   :  { %2296 = vrot.lane.b32.xlu1 %v2207_v53, %s3368_s23  ;;  %2309 = vrot.lane.b32.xlu0 %v2206_v27, %s3369_s13 }
 0x7f0   :  { %2311 = vrot.lane.b32.xlu1 %v2207_v53, %s3369_s13  ;;  %2324 = vrot.lane.b32.xlu0 %v2206_v27, %s3370_s20 }
 0x7f4   :  { %2326 = vrot.lane.b32.xlu1 %v2207_v53, %s3370_s20  ;;  %1624 = vperm.xlu0 %3195, %v1620_v57  }
 0x7f8   :  { %2341 = vperm.xlu1 %3196, %v2212_v23   ;;  %1629 = vperm.xlu0 %3195, %v1621_v8  }
 0x7fc   :  { %2346 = vperm.xlu1 %3196, %v2213_v47   ;;  %2533 = vperm.xlu0 %3195, %v2530_v20  }
 0x846   :  { %v2217_v25 = vpop.permute.xlu0 %2216 }
 0x847   :  { %v2223_v46 = vsel %vm2222_vm0, 0.0, %v2217_v25  ;;  %v5208_v25 = vld [vmem:[#allocation27_spill] sm:$0xff] }
 0x848   :  { %v2229_v34 = vmul.f32 %v2228_v38, %v2223_v46  ;;  %v2321_v4 = vrot.slane %v4872_v24, %v5208_v25 }
 0x84a   :  { %v2219_v33 = vpop.permute.xlu1 %2218  ;;  %v2232_v35 = vpop.permute.xlu0 %2231 }
 0x84b   :  { %v2224_v29 = vsel %vm2222_vm0, 0.0, %v2219_v33  ;;  %v2237_v40 = vsel %vm1632_vm8, 0.0, %v2232_v35 }
 0x84c   :  { %v2230_v28 = vmul.f32 %v2228_v38, %v2224_v29  ;;  %v2243_v26 = vmul.f32 %v2242_v45, %v2237_v40  ;;  %v2639_v29 = vld [vmem:[#allocation10 + $0x8] ss:$0 sm:$0xff]  ;;  %v2208_v40 = vld [vmem:[#allocation7] sm:$0xff] }
 0x84e   :  { %v3105_v49 = vpack.c.bf16 %v2230_v28, %v2229_v34  ;;  %v2234_v32 = vpop.permute.xlu1 %2233  ;;  %v2246_v11 = vpop.permute.xlu0 %2245 }
 0x84f   :  { %v2238_v30 = vsel %vm1632_vm8, 0.0, %v2234_v32  ;;  %v2252_v7 = vsel %vm2251_vm5, 0.0, %v2246_v11  ;;  %v2210_v32 = vld [vmem:[#allocation7 + $0x10] sm:$0xff]  ;;  %v2446_v11 = vld [vmem:[%s5020_s19 + $0x60] sm:$0xff] }
 0x850   :  { %v2244_v63 = vmul.f32 %v2242_v45, %v2238_v30  ;;  %3106 = vmatpush1.bf16.msra.mxu1 %v3105_v49  ;;  %v2258_v19 = vmul.f32 %v2257_v52, %v2252_v7  ;;  %v2211_v49 = vld [vmem:[#allocation7 + $0x18] sm:$0xff]  ;;  %v2447_v30 = vld [vmem:[%s5020_s19 + $0x68] sm:$0xff] }
 0x851   :  { %3107 = vmatprep.subr.bf16.mxu1 %v3365_v13 }
 0x852   :  { %v3108_v55 = vpack.c.bf16 %v2244_v63, %v2243_v26  ;;  %v2248_v1 = vpop.permute.xlu1 %2247  ;;  %v2261_v12 = vpop.permute.xlu0 %2260  ;;  %v3155_v26 = vpack.c.bf16 %v2447_v30, %v2446_v11  ;;  %v2448_v63 = vld [vmem:[%s5020_s19 + $0x70] sm:$0xff] }
 0x853   :  { %v2253_v58 = vsel %vm2251_vm5, 0.0, %v2248_v1  ;;  %v2266_v36 = vsel %vm342_vm1, 0.0, %v2261_v12 }
 0x854   :  { %v2259_v27 = vmul.f32 %v2257_v52, %v2253_v58  ;;  %3109 = vmatpush1.bf16.msra.mxu1 %v3108_v55  ;;  %v2272_v23 = vmul.f32 %v2271_v37, %v2266_v36  ;;  %3156 = vmatprep.subr.bf16.mxu0 %v3155_v26  ;;  %v3159_v52 = vpack.c.bf16 %v2449_v48, %v2448_v63 }
 0x855   :  { %3110 = vmatprep.subr.bf16.mxu1 %v3365_v13  ;;  %3158 = vmatpush3.bf16.msra.mxu0 %v3155_v26 }
 0x856   :  { %v3111_v51 = vpack.c.bf16 %v2259_v27, %v2258_v19  ;;  %v2263_v53 = vpop.permute.xlu1 %2262  ;;  %v2281_v16 = vpop.permute.xlu0 %2280  ;;  %3160 = vmatprep.subr.bf16.mxu0 %v3159_v52 }
 0x857   :  { %v2267_v57 = vsel %vm342_vm1, 0.0, %v2263_v53  ;;  %v2286_v15 = vsel %vm405_vm4, %v2281_v16, 0.0  ;;  %vm2300_vm1 = vcmask 990208  }
 0x858   :  { %v2273_v8 = vmul.f32 %v2271_v37, %v2267_v57  ;;  %3112 = vmatpush1.bf16.msra.mxu1 %v3111_v51  ;;  %v2292_v3 = vmul.f32 %v2291_v5, %v2286_v15 }
 0x859   :  { %3113 = vmatprep.subr.bf16.mxu1 %v3365_v13  ;;  %3162 = vmatpush3.bf16.msra.mxu0 %v3159_v52 }
 0x85a   :  { %v3114_v47 = vpack.c.bf16 %v2273_v8, %v2272_v23  ;;  %v2283_v20 = vpop.permute.xlu1 %2282  ;;  %v2295_v31 = vpop.permute.xlu0 %2294  ;;  %3163 = vmatprep.subr.bf16.mxu0 %v3365_v13 }
 0x85b   :  { %v2287_v54 = vsel %vm405_vm4, %v2283_v20, 0.0  ;;  %v2301_v42 = vsel %vm2300_vm1, %v2295_v31, 0.0  ;;  %vm2315_vm4 = vcmask 982016  }
 0x85c   :  { %3115 = vmatpush1.bf16.msra.mxu1 %v3114_v47  ;;  %v2293_v41 = vmul.f32 %v2291_v5, %v2287_v54  ;;  %v2307_v6 = vmul.f32 %v2306_v56, %v2301_v42 }
 0x85d   :  { %3116 = vmatprep.subr.bf16.mxu1 %v3365_v13 }
 0x85e   :  { %v2297_v9 = vpop.permute.xlu1 %2296  ;;  %v2310_v17 = vpop.permute.xlu0 %2309  ;;  %v3120_v2 = vpack.c.bf16 %v2293_v41, %v2292_v3 }
 0x85f   :  { %v2302_v0 = vsel %vm2300_vm1, %v2297_v9, 0.0  ;;  %v2316_v38 = vsel %vm2315_vm4, %v2310_v17, 0.0 }
 0x860   :  { %3118 = vmatpush1.bf16.msra.mxu1 %v3117_v62  ;;  %v2308_v14 = vmul.f32 %v2306_v56, %v2302_v0  ;;  %v2322_v35 = vmul.f32 %v2321_v4, %v2316_v38 }
 0x861   :  { %3119 = vmatprep.subr.bf16.mxu1 %v3365_v13 }
 0x862   :  { %v2312_v61 = vpop.permute.xlu1 %2311  ;;  %v3123_v46 = vpack.c.bf16 %v2308_v14, %v2307_v6  ;;  %v2325_v60 = vpop.permute.xlu0 %2324 }
 0x863   :  { %v2317_v22 = vsel %vm2315_vm4, %v2312_v61, 0.0  ;;  %v2331_v34 = vsel %vm2330_vm9, %v2325_v60, 0.0 }
 0x864   :  { %3121 = vmatpush1.bf16.msra.mxu1 %v3120_v2  ;;  %v2323_v33 = vmul.f32 %v2321_v4, %v2317_v22  ;;  %v2337_v45 = vmul.f32 %v2639_v29, %v2331_v34 }
 0x865   :  { %3122 = vmatprep.subr.bf16.mxu1 %v3365_v13 }
 0x866   :  { %v2327_v44 = vpop.permute.xlu1 %2326  ;;  %v3126_v28 = vpack.c.bf16 %v2323_v33, %v2322_v35 }
 0x867   :  { %v2332_v62 = vsel %vm2330_vm9, %v2327_v44, 0.0 }
 0x868   :  { %3124 = vmatpush1.bf16.msra.mxu1 %v3123_v46  ;;  %v2338_v10 = vmul.f32 %v2639_v29, %v2332_v62 }
 0x869   :  { %3125 = vmatprep.subr.bf16.mxu1 %v3365_v13 }
 0x86a   :  { %v3129_v24 = vpack.c.bf16 %v2338_v10, %v2337_v45 }
 0x86c   :  { %3127 = vmatpush1.bf16.msra.mxu1 %v3126_v28 }
 0x86d   :  { %3128 = vmatprep.subr.bf16.mxu1 %v3365_v13  ;;  %v2525_v13 = vld [vmem:[%s5016_s15] sm:$0xff] }
 0x870   :  { %3130 = vmatpush1.bf16.msra.mxu1 %v3129_v24 }
 0x873   :  { %2420 = vmatmul.mubr.f32.vlgmr.msra.gmra.mrb[16].mxu1 %v2208_v40  ;;  %v1625_v7 = vpop.permute.xlu0 %1624 }
 0x874   :  { %2641 = vmatprep.mubr.msk.f32.mxu1 %vm268_vm2, %v2211_v49  ;;  %v1706_v12 = vadd.f32 %v4869_v50, %v1625_v7  ;;  %v2526_v50 = vld [vmem:[%s5016_s15 + $0x8] sm:$0xff]  ;;  %s5210_s15 = sld [smem:[#allocation64_spill]] }
 0x877   :  { %2425 = vmatmul.mubr.f32.gmra.mrb[18].mxu1 %v2210_v32  ;;  %v2342_v55 = vpop.permute.xlu1 %2341  ;;  %v1630_v27 = vpop.permute.xlu0 %1629 }
 0x878   :  { %v1711_v51 = vadd.f32 %v4867_v39, %v1630_v27 }
 0x87b   :  { %v2347_v37 = vpop.permute.xlu1 %2346 }
 0x946   :  { %v2421_v1 = vpop.f32.mrb[16].mxu1 }
 0x947   :  { %v2422_v58 = vadd.f32 %v2421_v1, %v2342_v55  ;;  %v2423_v19 = vpop.f32.mrb[17].mxu1 }
 0x949   :  { %v2430_v18 = vadd.f32 %v2422_v58, %v1706_v12 }
 0x94a   :  { %v2426_v36 = vpop.f32.mrb[18].mxu1 }
 0x94b   :  { %v2432_v53 = vmax.f32 %v2430_v18, 0.0  ;;  %v2427_v16 = vadd.f32 %v2426_v36, %v2347_v37  ;;  %v2428_v57 = vpop.f32.mrb[19].mxu1 }
 0x94d   :  { %v2431_v23 = vadd.f32 %v2427_v16, %v1711_v51  ;;  %2850 = vmatprep.mubr.f32.mxu0 %v2432_v53 }
 0x94f   :  { %v2433_v8 = vmax.f32 %v2431_v23, 0.0 }
 0x951   :  { %2851 = vmatmul.mubr.f32.vlgmr.msra.gmra.mrb[18].mxu0 %v2433_v8 }
 0x952   :  { %2857 = vmatprep.mubr.msk.f32.mxu0 %vm3371_vm10, %v5169_v21  ;;  %v2534_v21 = vpop.permute.xlu0 %2533 }
 0xa24   :  { %v2852_v47 = vpop.f32.mrb[18].mxu0 }
 0xa25   :  { %v2528_v39 = vmul.f32 %v2852_v47, %v2526_v50  ;;  %v2516_v20 = vpop.f32.mrb[19].mxu0 }
 0xa26   :  { %v2527_v31 = vmul.f32 %v2525_v13, %v2516_v20 }
 0xa28   :  { %v3164_v54 = vpack.c.bf16 %v2528_v39, %v2527_v31 }
 0xa2a   :  { %3165 = vmatpush3.bf16.msra.mxu0 %v3164_v54 }
 0xa2d   :  { %2858 = vmatmul.mubr.msk.f32.vlgmr.msra.gmra.mrb[20].mxu0 %vm268_vm2, %v2529_v43 }
 0xb00   :  { %v2605_v5 = vpop.f32.mrb[20].mxu0 }
 0xb01   :  { %v2606_v15 = vadd.f32 %v2605_v5, %v2534_v21  ;;  %v2859_v41 = vpop.f32.mrb[21].mxu0 }
 0xb03   :  { %2610 = vst.msk [vmem:[%s5210_s15] sm:$0xf] %vm2609_vm11, %v2606_v15 }
 0xb04   :  { %2615 = vsyncpa [#allocation3], 1 }
 0xb05   :  { %2616 = vsyncpa [#allocation5], 1 }
 0xb06   :  { %2617 = vsyncpa [#allocation8], 1 }
 0xb07   :  { %2618 = vsyncpa [#allocation11], 1 }

</bundles_post_ra>
